<compile_context>
chip_gen: v7x
topology: tpu7x:2x2x1
jax: 0.10.0
libtpu: 0.0.40
codegen_flags: <defaults>
</compile_context>

<pallas_src>
import jax
import jax.numpy as jnp
from jax.experimental import pallas as pl
from jax.experimental.pallas import tpu as pltpu


def _round_up(x, m):
    return ((x + m - 1) // m) * m


def basic_block_kernel(xpad_ref, w1_ref, b1_ref, w2_ref, b2_ref, o_ref, mid_ref):
    _, H, W, C = o_ref.shape                # C is the lane-padded channel count
    WP = mid_ref.shape[1]                   # sublane-aligned scratch width (>= W + 2)

    # ---- conv1 (3x3, SAME) with the bn1 scale pre-folded into the weights ----
    # 9 shifted matmuls on the MXU, f32 accumulation seeded with the bn1 shift.
    # W and C are aligned (W % 8 == 0, C % 128 == 0) so the (H, W, C) ->
    # (H*W, C) reshapes are layout-preserving.
    acc1 = jnp.broadcast_to(b1_ref[...], (H * W, C))
    identity = None
    for kh in range(3):
        for kw in range(3):
            patch = xpad_ref[0, kh:kh + H, kw:kw + W, :].reshape(H * W, C)
            if kh == 1 and kw == 1:
                identity = patch            # centre tap == residual identity
            acc1 = acc1 + jnp.dot(patch, w1_ref[kh * 3 + kw],
                                  preferred_element_type=jnp.float32)
    out1 = jnp.maximum(acc1, 0.0)           # bn1 shift already in acc1; relu

    # ---- stage out1 in the persistent scratch; zero only the 1-wide halo ----
    # (the interior is fully overwritten every step; columns beyond W+1 are
    #  never read, so only rows 0 / H+1 and columns 0 / W+1 must be zero)
    zrow = jnp.zeros((1, WP, C), jnp.float32)
    zcol = jnp.zeros((H, 1, C), jnp.float32)
    mid_ref[0:1] = zrow
    mid_ref[H + 1:H + 2] = zrow
    mid_ref[1:1 + H, 0:1, :] = zcol
    mid_ref[1:1 + H, W + 1:W + 2, :] = zcol
    mid_ref[1:1 + H, 1:1 + W, :] = out1.reshape(H, W, C)

    # ---- conv2 (bn2 scale folded into weights), taps read straight from scratch ----
    acc2 = jnp.broadcast_to(b2_ref[...], (H * W, C))
    for kh in range(3):
        for kw in range(3):
            patch = mid_ref[kh:kh + H, kw:kw + W, :].reshape(H * W, C)
            acc2 = acc2 + jnp.dot(patch, w2_ref[kh * 3 + kw],
                                  preferred_element_type=jnp.float32)

    # ---- residual add + relu; identity reused from conv1's centre tap ----
    o_ref[0] = jnp.maximum(acc2 + identity, 0.0).reshape(H, W, C).astype(o_ref.dtype)


def basic_block_pallas(x_nchw, params, eps=1e-5):
    x = jnp.transpose(x_nchw, (0, 2, 3, 1)).astype(jnp.float32)       # NHWC
    N, H, W, Cin = x.shape

    w1 = params["conv1_w"]                 # (Cout, Cin, 3, 3), torch OIHW layout
    w2 = params["conv2_w"]
    Cout = w1.shape[0]
    assert Cin == Cout, "identity residual path requires Cin == Cout (no downsample)"

    C = max(128, _round_up(Cout, 128))     # lane-dense channel count
    WP = _round_up(W + 2, 8)               # sublane-aligned padded width

    def fold_bn(gamma, beta, mean, var):
        scale = (gamma / jnp.sqrt(var + eps)).astype(jnp.float32)
        shift = (beta - mean * scale).astype(jnp.float32)
        return scale, shift

    s1, b1 = fold_bn(params["bn1_g"], params["bn1_b"], params["bn1_m"], params["bn1_v"])
    s2, b2 = fold_bn(params["bn2_g"], params["bn2_b"], params["bn2_m"], params["bn2_v"])

    # (tap, Cin, Cout) weights with the BN scale folded into the output channel,
    # zero-padded to the lane-dense channel count.
    w1_k = jnp.transpose(w1, (2, 3, 1, 0)).reshape(9, Cin, Cout) * s1[None, None, :]
    w2_k = jnp.transpose(w2, (2, 3, 1, 0)).reshape(9, Cout, Cout) * s2[None, None, :]
    w1_k = jnp.pad(w1_k, ((0, 0), (0, C - Cin), (0, C - Cout))).astype(jnp.float32)
    w2_k = jnp.pad(w2_k, ((0, 0), (0, C - Cout), (0, C - Cout))).astype(jnp.float32)
    b1_p = jnp.pad(b1, (0, C - Cout)).reshape(1, C)
    b2_p = jnp.pad(b2, (0, C - Cout)).reshape(1, C)

    # Zero-pad: H by (1,1); W by (1, WP - W - 1) so the padded width is a
    # multiple of 8 (extra right columns are never read); channels to C.
    xpad = jnp.pad(x, ((0, 0), (1, 1), (1, WP - W - 1), (0, C - Cin)))

    # Advisory cost hint for the XLA scheduler: 2 convs x 9 taps of
    # (H*W, C) x (C, C) matmuls per image.
    flops = 2 * 9 * 2 * H * W * C * C * N
    bytes_accessed = (xpad.size + w1_k.size + w2_k.size + b1_p.size + b2_p.size
                      + N * H * W * C) * 4

    out = pl.pallas_call(
        basic_block_kernel,
        out_shape=jax.ShapeDtypeStruct((N, H, W, C), jnp.float32),
        grid_spec=pltpu.PrefetchScalarGridSpec(
            num_scalar_prefetch=0,
            grid=(N,),
            in_specs=[
                pl.BlockSpec((1, H + 2, WP, C), lambda n: (n, 0, 0, 0)),  # padded input
                pl.BlockSpec((9, C, C), lambda n: (0, 0, 0)),             # conv1*bn1 weights
                pl.BlockSpec((1, C), lambda n: (0, 0)),                   # bn1 shift
                pl.BlockSpec((9, C, C), lambda n: (0, 0, 0)),             # conv2*bn2 weights
                pl.BlockSpec((1, C), lambda n: (0, 0)),                   # bn2 shift
            ],
            out_specs=pl.BlockSpec((1, H, W, C), lambda n: (n, 0, 0, 0)),
            scratch_shapes=[pltpu.VMEM((H + 2, WP, C), jnp.float32)],
        ),
        compiler_params=pltpu.CompilerParams(
            dimension_semantics=("parallel",),
            vmem_limit_bytes=32 * 1024 * 1024,
        ),
        cost_estimate=pl.CostEstimate(flops=flops, transcendentals=0,
                                      bytes_accessed=bytes_accessed),
    )(xpad, w1_k, b1_p, w2_k, b2_p)

    out = out[..., :Cout]                                  # drop lane padding
    return jnp.transpose(out, (0, 3, 1, 2))                # back to NCHW


def basic_block_ref(x_nchw, params, eps=1e-5):
    """Pure-JAX reference (lax.conv) for correctness checking."""
    x = jnp.transpose(x_nchw, (0, 2, 3, 1)).astype(jnp.float32)

    def conv(v, w_oihw):
        w = jnp.transpose(w_oihw, (2, 3, 1, 0))  # HWIO
        return jax.lax.conv_general_dilated(
            v, w, window_strides=(1, 1), padding="SAME",
            dimension_numbers=("NHWC", "HWIO", "NHWC"))

    def bn(v, g, b, m, s):
        return (v - m) / jnp.sqrt(s + eps) * g + b

    out = jax.nn.relu(bn(conv(x, params["conv1_w"]),
                         params["bn1_g"], params["bn1_b"], params["bn1_m"], params["bn1_v"]))
    out = bn(conv(out, params["conv2_w"]),
             params["bn2_g"], params["bn2_b"], params["bn2_m"], params["bn2_v"])
    out = jax.nn.relu(out + x)
    return jnp.transpose(out, (0, 3, 1, 2))


if __name__ == "__main__":
    key = jax.random.PRNGKey(0)
    N, C, H, W = 2, 4, 16, 16      # batch=2, inplanes=planes=4, spatial=16
    inplanes = planes = C

    keys = jax.random.split(key, 11)
    x = jax.random.normal(keys[0], (N, C, H, W), jnp.float32)
    params = {
        "conv1_w": 0.1 * jax.random.normal(keys[1], (planes, inplanes, 3, 3), jnp.float32),
        "conv2_w": 0.1 * jax.random.normal(keys[2], (planes, planes, 3, 3), jnp.float32),
        "bn1_g": jax.random.uniform(keys[3], (planes,), jnp.float32, 0.5, 1.5),
        "bn1_b": 0.1 * jax.random.normal(keys[4], (planes,), jnp.float32),
        "bn1_m": 0.1 * jax.random.normal(keys[5], (planes,), jnp.float32),
        "bn1_v": jax.random.uniform(keys[6], (planes,), jnp.float32, 0.5, 1.5),
        "bn2_g": jax.random.uniform(keys[7], (planes,), jnp.float32, 0.5, 1.5),
        "bn2_b": 0.1 * jax.random.normal(keys[8], (planes,), jnp.float32),
        "bn2_m": 0.1 * jax.random.normal(keys[9], (planes,), jnp.float32),
        "bn2_v": jax.random.uniform(keys[10], (planes,), jnp.float32, 0.5, 1.5),
    }

    out = jax.block_until_ready(basic_block_pallas(x, params))
    ref = jax.block_until_ready(basic_block_ref(x, params))

    assert out.shape == (N, C, H, W), out.shape
    max_err = float(jnp.max(jnp.abs(out - ref)))
    assert jnp.allclose(out, ref, atol=1e-3, rtol=1e-3), f"max abs err {max_err}"
    print("KERNEL_OK")
</pallas_src>

<mosaic_0001>
module attributes {stable_mosaic.version = 11 : i64} {
  func.func @basic_block_kernel(%arg0: i32, %arg1: memref<1x18x24x128xf32, #tpu.memory_space<vmem>>, %arg2: memref<9x128x128xf32, #tpu.memory_space<vmem>>, %arg3: memref<1x128xf32, #tpu.memory_space<vmem>>, %arg4: memref<9x128x128xf32, #tpu.memory_space<vmem>>, %arg5: memref<1x128xf32, #tpu.memory_space<vmem>>, %arg6: memref<1x16x16x128xf32, #tpu.memory_space<vmem>>, %arg7: memref<18x24x128xf32, #tpu.memory_space<vmem>>) attributes {dimension_semantics = [#tpu.dimension_semantics<parallel>], iteration_bounds = array<i64: 2>, scalar_prefetch = 0 : i64, scratch_operands = 1 : i64, tpu.core_type = #tpu.core_type<tc>, window_params = [{transform_indices = @transform_0, window_bounds = array<i64: 1, 18, 24, 128>}, {pipeline_mode = #tpu.pipeline_mode<synchronous>, transform_indices = @transform_1, window_bounds = array<i64: 9, 128, 128>}, {pipeline_mode = #tpu.pipeline_mode<synchronous>, transform_indices = @transform_2, window_bounds = array<i64: 1, 128>}, {pipeline_mode = #tpu.pipeline_mode<synchronous>, transform_indices = @transform_3, window_bounds = array<i64: 9, 128, 128>}, {pipeline_mode = #tpu.pipeline_mode<synchronous>, transform_indices = @transform_4, window_bounds = array<i64: 1, 128>}, {transform_indices = @transform_5, window_bounds = array<i64: 1, 16, 16, 128>}]} {
    %c0 = arith.constant 0 : index
    %c0_0 = arith.constant 0 : index
    %0 = vector.load %arg3[%c0, %c0_0] : memref<1x128xf32, #tpu.memory_space<vmem>>, vector<1x128xf32>
    %1 = vector.shape_cast %0 : vector<1x128xf32> to vector<1x128xf32>
    %2 = vector.broadcast %1 : vector<1x128xf32> to vector<256x128xf32>
    %c0_1 = arith.constant 0 : index
    %c0_2 = arith.constant 0 : index
    %c0_3 = arith.constant 0 : index
    %c0_4 = arith.constant 0 : index
    %3 = vector.load %arg1[%c0_1, %c0_2, %c0_3, %c0_4] : memref<1x18x24x128xf32, #tpu.memory_space<vmem>>, vector<1x16x16x128xf32>
    %4 = vector.shape_cast %3 : vector<1x16x16x128xf32> to vector<16x16x128xf32>
    %5 = vector.shape_cast %4 : vector<16x16x128xf32> to vector<256x128xf32>
    %c0_5 = arith.constant 0 : index
    %c0_6 = arith.constant 0 : index
    %c0_7 = arith.constant 0 : index
    %6 = vector.load %arg2[%c0_5, %c0_6, %c0_7] : memref<9x128x128xf32, #tpu.memory_space<vmem>>, vector<1x128x128xf32>
    %7 = vector.shape_cast %6 : vector<1x128x128xf32> to vector<128x128xf32>
    %cst = arith.constant dense<0.000000e+00> : vector<256x128xf32>
    %8 = tpu.matmul %5, %7, %cst {dimension_numbers = #tpu.dot_dimension_numbers<[1], [0], [0], [1], [0, 0, 1, 1], [], []>} : vector<256x128xf32>, vector<128x128xf32>, vector<256x128xf32> -> vector<256x128xf32>
    %9 = arith.addf %2, %8 : vector<256x128xf32>
    %c0_8 = arith.constant 0 : index
    %c0_9 = arith.constant 0 : index
    %c1 = arith.constant 1 : index
    %c0_10 = arith.constant 0 : index
    %10 = vector.load %arg1[%c0_8, %c0_9, %c1, %c0_10] : memref<1x18x24x128xf32, #tpu.memory_space<vmem>>, vector<1x16x16x128xf32>
    %11 = vector.shape_cast %10 : vector<1x16x16x128xf32> to vector<16x16x128xf32>
    %12 = vector.shape_cast %11 : vector<16x16x128xf32> to vector<256x128xf32>
    %c1_11 = arith.constant 1 : index
    %c0_12 = arith.constant 0 : index
    %c0_13 = arith.constant 0 : index
    %13 = vector.load %arg2[%c1_11, %c0_12, %c0_13] : memref<9x128x128xf32, #tpu.memory_space<vmem>>, vector<1x128x128xf32>
    %14 = vector.shape_cast %13 : vector<1x128x128xf32> to vector<128x128xf32>
    %cst_14 = arith.constant dense<0.000000e+00> : vector<256x128xf32>
    %15 = tpu.matmul %12, %14, %cst_14 {dimension_numbers = #tpu.dot_dimension_numbers<[1], [0], [0], [1], [0, 0, 1, 1], [], []>} : vector<256x128xf32>, vector<128x128xf32>, vector<256x128xf32> -> vector<256x128xf32>
    %16 = arith.addf %9, %15 : vector<256x128xf32>
    %c0_15 = arith.constant 0 : index
    %c0_16 = arith.constant 0 : index
    %c2 = arith.constant 2 : index
    %c0_17 = arith.constant 0 : index
    %17 = vector.load %arg1[%c0_15, %c0_16, %c2, %c0_17] : memref<1x18x24x128xf32, #tpu.memory_space<vmem>>, vector<1x16x16x128xf32>
    %18 = vector.shape_cast %17 : vector<1x16x16x128xf32> to vector<16x16x128xf32>
    %19 = vector.shape_cast %18 : vector<16x16x128xf32> to vector<256x128xf32>
    %c2_18 = arith.constant 2 : index
    %c0_19 = arith.constant 0 : index
    %c0_20 = arith.constant 0 : index
    %20 = vector.load %arg2[%c2_18, %c0_19, %c0_20] : memref<9x128x128xf32, #tpu.memory_space<vmem>>, vector<1x128x128xf32>
    %21 = vector.shape_cast %20 : vector<1x128x128xf32> to vector<128x128xf32>
    %cst_21 = arith.constant dense<0.000000e+00> : vector<256x128xf32>
    %22 = tpu.matmul %19, %21, %cst_21 {dimension_numbers = #tpu.dot_dimension_numbers<[1], [0], [0], [1], [0, 0, 1, 1], [], []>} : vector<256x128xf32>, vector<128x128xf32>, vector<256x128xf32> -> vector<256x128xf32>
    %23 = arith.addf %16, %22 : vector<256x128xf32>
    %c0_22 = arith.constant 0 : index
    %c1_23 = arith.constant 1 : index
    %c0_24 = arith.constant 0 : index
    %c0_25 = arith.constant 0 : index
    %24 = vector.load %arg1[%c0_22, %c1_23, %c0_24, %c0_25] : memref<1x18x24x128xf32, #tpu.memory_space<vmem>>, vector<1x16x16x128xf32>
    %25 = vector.shape_cast %24 : vector<1x16x16x128xf32> to vector<16x16x128xf32>
    %26 = vector.shape_cast %25 : vector<16x16x128xf32> to vector<256x128xf32>
    %c3 = arith.constant 3 : index
    %c0_26 = arith.constant 0 : index
    %c0_27 = arith.constant 0 : index
    %27 = vector.load %arg2[%c3, %c0_26, %c0_27] : memref<9x128x128xf32, #tpu.memory_space<vmem>>, vector<1x128x128xf32>
    %28 = vector.shape_cast %27 : vector<1x128x128xf32> to vector<128x128xf32>
    %cst_28 = arith.constant dense<0.000000e+00> : vector<256x128xf32>
    %29 = tpu.matmul %26, %28, %cst_28 {dimension_numbers = #tpu.dot_dimension_numbers<[1], [0], [0], [1], [0, 0, 1, 1], [], []>} : vector<256x128xf32>, vector<128x128xf32>, vector<256x128xf32> -> vector<256x128xf32>
    %30 = arith.addf %23, %29 : vector<256x128xf32>
    %c0_29 = arith.constant 0 : index
    %c1_30 = arith.constant 1 : index
    %c1_31 = arith.constant 1 : index
    %c0_32 = arith.constant 0 : index
    %31 = vector.load %arg1[%c0_29, %c1_30, %c1_31, %c0_32] : memref<1x18x24x128xf32, #tpu.memory_space<vmem>>, vector<1x16x16x128xf32>
    %32 = vector.shape_cast %31 : vector<1x16x16x128xf32> to vector<16x16x128xf32>
    %33 = vector.shape_cast %32 : vector<16x16x128xf32> to vector<256x128xf32>
    %c4 = arith.constant 4 : index
    %c0_33 = arith.constant 0 : index
    %c0_34 = arith.constant 0 : index
    %34 = vector.load %arg2[%c4, %c0_33, %c0_34] : memref<9x128x128xf32, #tpu.memory_space<vmem>>, vector<1x128x128xf32>
    %35 = vector.shape_cast %34 : vector<1x128x128xf32> to vector<128x128xf32>
    %cst_35 = arith.constant dense<0.000000e+00> : vector<256x128xf32>
    %36 = tpu.matmul %33, %35, %cst_35 {dimension_numbers = #tpu.dot_dimension_numbers<[1], [0], [0], [1], [0, 0, 1, 1], [], []>} : vector<256x128xf32>, vector<128x128xf32>, vector<256x128xf32> -> vector<256x128xf32>
    %37 = arith.addf %30, %36 : vector<256x128xf32>
    %c0_36 = arith.constant 0 : index
    %c1_37 = arith.constant 1 : index
    %c2_38 = arith.constant 2 : index
    %c0_39 = arith.constant 0 : index
    %38 = vector.load %arg1[%c0_36, %c1_37, %c2_38, %c0_39] : memref<1x18x24x128xf32, #tpu.memory_space<vmem>>, vector<1x16x16x128xf32>
    %39 = vector.shape_cast %38 : vector<1x16x16x128xf32> to vector<16x16x128xf32>
    %40 = vector.shape_cast %39 : vector<16x16x128xf32> to vector<256x128xf32>
    %c5 = arith.constant 5 : index
    %c0_40 = arith.constant 0 : index
    %c0_41 = arith.constant 0 : index
    %41 = vector.load %arg2[%c5, %c0_40, %c0_41] : memref<9x128x128xf32, #tpu.memory_space<vmem>>, vector<1x128x128xf32>
    %42 = vector.shape_cast %41 : vector<1x128x128xf32> to vector<128x128xf32>
    %cst_42 = arith.constant dense<0.000000e+00> : vector<256x128xf32>
    %43 = tpu.matmul %40, %42, %cst_42 {dimension_numbers = #tpu.dot_dimension_numbers<[1], [0], [0], [1], [0, 0, 1, 1], [], []>} : vector<256x128xf32>, vector<128x128xf32>, vector<256x128xf32> -> vector<256x128xf32>
    %44 = arith.addf %37, %43 : vector<256x128xf32>
    %c0_43 = arith.constant 0 : index
    %c2_44 = arith.constant 2 : index
    %c0_45 = arith.constant 0 : index
    %c0_46 = arith.constant 0 : index
    %45 = vector.load %arg1[%c0_43, %c2_44, %c0_45, %c0_46] : memref<1x18x24x128xf32, #tpu.memory_space<vmem>>, vector<1x16x16x128xf32>
    %46 = vector.shape_cast %45 : vector<1x16x16x128xf32> to vector<16x16x128xf32>
    %47 = vector.shape_cast %46 : vector<16x16x128xf32> to vector<256x128xf32>
    %c6 = arith.constant 6 : index
    %c0_47 = arith.constant 0 : index
    %c0_48 = arith.constant 0 : index
    %48 = vector.load %arg2[%c6, %c0_47, %c0_48] : memref<9x128x128xf32, #tpu.memory_space<vmem>>, vector<1x128x128xf32>
    %49 = vector.shape_cast %48 : vector<1x128x128xf32> to vector<128x128xf32>
    %cst_49 = arith.constant dense<0.000000e+00> : vector<256x128xf32>
    %50 = tpu.matmul %47, %49, %cst_49 {dimension_numbers = #tpu.dot_dimension_numbers<[1], [0], [0], [1], [0, 0, 1, 1], [], []>} : vector<256x128xf32>, vector<128x128xf32>, vector<256x128xf32> -> vector<256x128xf32>
    %51 = arith.addf %44, %50 : vector<256x128xf32>
    %c0_50 = arith.constant 0 : index
    %c2_51 = arith.constant 2 : index
    %c1_52 = arith.constant 1 : index
    %c0_53 = arith.constant 0 : index
    %52 = vector.load %arg1[%c0_50, %c2_51, %c1_52, %c0_53] : memref<1x18x24x128xf32, #tpu.memory_space<vmem>>, vector<1x16x16x128xf32>
    %53 = vector.shape_cast %52 : vector<1x16x16x128xf32> to vector<16x16x128xf32>
    %54 = vector.shape_cast %53 : vector<16x16x128xf32> to vector<256x128xf32>
    %c7 = arith.constant 7 : index
    %c0_54 = arith.constant 0 : index
    %c0_55 = arith.constant 0 : index
    %55 = vector.load %arg2[%c7, %c0_54, %c0_55] : memref<9x128x128xf32, #tpu.memory_space<vmem>>, vector<1x128x128xf32>
    %56 = vector.shape_cast %55 : vector<1x128x128xf32> to vector<128x128xf32>
    %cst_56 = arith.constant dense<0.000000e+00> : vector<256x128xf32>
    %57 = tpu.matmul %54, %56, %cst_56 {dimension_numbers = #tpu.dot_dimension_numbers<[1], [0], [0], [1], [0, 0, 1, 1], [], []>} : vector<256x128xf32>, vector<128x128xf32>, vector<256x128xf32> -> vector<256x128xf32>
    %58 = arith.addf %51, %57 : vector<256x128xf32>
    %c0_57 = arith.constant 0 : index
    %c2_58 = arith.constant 2 : index
    %c2_59 = arith.constant 2 : index
    %c0_60 = arith.constant 0 : index
    %59 = vector.load %arg1[%c0_57, %c2_58, %c2_59, %c0_60] : memref<1x18x24x128xf32, #tpu.memory_space<vmem>>, vector<1x16x16x128xf32>
    %60 = vector.shape_cast %59 : vector<1x16x16x128xf32> to vector<16x16x128xf32>
    %61 = vector.shape_cast %60 : vector<16x16x128xf32> to vector<256x128xf32>
    %c8 = arith.constant 8 : index
    %c0_61 = arith.constant 0 : index
    %c0_62 = arith.constant 0 : index
    %62 = vector.load %arg2[%c8, %c0_61, %c0_62] : memref<9x128x128xf32, #tpu.memory_space<vmem>>, vector<1x128x128xf32>
    %63 = vector.shape_cast %62 : vector<1x128x128xf32> to vector<128x128xf32>
    %cst_63 = arith.constant dense<0.000000e+00> : vector<256x128xf32>
    %64 = tpu.matmul %61, %63, %cst_63 {dimension_numbers = #tpu.dot_dimension_numbers<[1], [0], [0], [1], [0, 0, 1, 1], [], []>} : vector<256x128xf32>, vector<128x128xf32>, vector<256x128xf32> -> vector<256x128xf32>
    %65 = arith.addf %58, %64 : vector<256x128xf32>
    %cst_64 = arith.constant 0.000000e+00 : f32
    %66 = vector.broadcast %cst_64 : f32 to vector<256x128xf32>
    %67 = arith.maximumf %65, %66 : vector<256x128xf32>
    %cst_65 = arith.constant 0.000000e+00 : f32
    %68 = vector.broadcast %cst_65 : f32 to vector<1x24x128xf32>
    %cst_66 = arith.constant 0.000000e+00 : f32
    %69 = vector.broadcast %cst_66 : f32 to vector<16x1x128xf32>
    %c0_67 = arith.constant 0 : index
    %c0_68 = arith.constant 0 : index
    %c0_69 = arith.constant 0 : index
    %70 = vector.load %arg7[%c0_67, %c0_68, %c0_69] : memref<18x24x128xf32, #tpu.memory_space<vmem>>, vector<1x24x128xf32>
    tpu.vector_store %arg7[%c0_67, %c0_68, %c0_69], %68 {strides = array<i32>} : memref<18x24x128xf32, #tpu.memory_space<vmem>>, vector<1x24x128xf32>,
    %c17 = arith.constant 17 : index
    %c0_70 = arith.constant 0 : index
    %c0_71 = arith.constant 0 : index
    %71 = vector.load %arg7[%c17, %c0_70, %c0_71] : memref<18x24x128xf32, #tpu.memory_space<vmem>>, vector<1x24x128xf32>
    tpu.vector_store %arg7[%c17, %c0_70, %c0_71], %68 {strides = array<i32>} : memref<18x24x128xf32, #tpu.memory_space<vmem>>, vector<1x24x128xf32>,
    %c1_72 = arith.constant 1 : index
    %c0_73 = arith.constant 0 : index
    %c0_74 = arith.constant 0 : index
    %72 = vector.load %arg7[%c1_72, %c0_73, %c0_74] : memref<18x24x128xf32, #tpu.memory_space<vmem>>, vector<16x1x128xf32>
    tpu.vector_store %arg7[%c1_72, %c0_73, %c0_74], %69 {strides = array<i32>} : memref<18x24x128xf32, #tpu.memory_space<vmem>>, vector<16x1x128xf32>,
    %c1_75 = arith.constant 1 : index
    %c17_76 = arith.constant 17 : index
    %c0_77 = arith.constant 0 : index
    %73 = vector.load %arg7[%c1_75, %c17_76, %c0_77] : memref<18x24x128xf32, #tpu.memory_space<vmem>>, vector<16x1x128xf32>
    tpu.vector_store %arg7[%c1_75, %c17_76, %c0_77], %69 {strides = array<i32>} : memref<18x24x128xf32, #tpu.memory_space<vmem>>, vector<16x1x128xf32>,
    %74 = vector.shape_cast %67 : vector<256x128xf32> to vector<16x16x128xf32>
    %c1_78 = arith.constant 1 : index
    %c1_79 = arith.constant 1 : index
    %c0_80 = arith.constant 0 : index
    %75 = vector.load %arg7[%c1_78, %c1_79, %c0_80] : memref<18x24x128xf32, #tpu.memory_space<vmem>>, vector<16x16x128xf32>
    tpu.vector_store %arg7[%c1_78, %c1_79, %c0_80], %74 {strides = array<i32>} : memref<18x24x128xf32, #tpu.memory_space<vmem>>, vector<16x16x128xf32>,
    %c0_81 = arith.constant 0 : index
    %c0_82 = arith.constant 0 : index
    %76 = vector.load %arg5[%c0_81, %c0_82] : memref<1x128xf32, #tpu.memory_space<vmem>>, vector<1x128xf32>
    %77 = vector.shape_cast %76 : vector<1x128xf32> to vector<1x128xf32>
    %78 = vector.broadcast %77 : vector<1x128xf32> to vector<256x128xf32>
    %c0_83 = arith.constant 0 : index
    %c0_84 = arith.constant 0 : index
    %c0_85 = arith.constant 0 : index
    %79 = vector.load %arg7[%c0_83, %c0_84, %c0_85] : memref<18x24x128xf32, #tpu.memory_space<vmem>>, vector<16x16x128xf32>
    %80 = vector.shape_cast %79 : vector<16x16x128xf32> to vector<256x128xf32>
    %c0_86 = arith.constant 0 : index
    %c0_87 = arith.constant 0 : index
    %c0_88 = arith.constant 0 : index
    %81 = vector.load %arg4[%c0_86, %c0_87, %c0_88] : memref<9x128x128xf32, #tpu.memory_space<vmem>>, vector<1x128x128xf32>
    %82 = vector.shape_cast %81 : vector<1x128x128xf32> to vector<128x128xf32>
    %cst_89 = arith.constant dense<0.000000e+00> : vector<256x128xf32>
    %83 = tpu.matmul %80, %82, %cst_89 {dimension_numbers = #tpu.dot_dimension_numbers<[1], [0], [0], [1], [0, 0, 1, 1], [], []>} : vector<256x128xf32>, vector<128x128xf32>, vector<256x128xf32> -> vector<256x128xf32>
    %84 = arith.addf %78, %83 : vector<256x128xf32>
    %c0_90 = arith.constant 0 : index
    %c1_91 = arith.constant 1 : index
    %c0_92 = arith.constant 0 : index
    %85 = vector.load %arg7[%c0_90, %c1_91, %c0_92] : memref<18x24x128xf32, #tpu.memory_space<vmem>>, vector<16x16x128xf32>
    %86 = vector.shape_cast %85 : vector<16x16x128xf32> to vector<256x128xf32>
    %c1_93 = arith.constant 1 : index
    %c0_94 = arith.constant 0 : index
    %c0_95 = arith.constant 0 : index
    %87 = vector.load %arg4[%c1_93, %c0_94, %c0_95] : memref<9x128x128xf32, #tpu.memory_space<vmem>>, vector<1x128x128xf32>
    %88 = vector.shape_cast %87 : vector<1x128x128xf32> to vector<128x128xf32>
    %cst_96 = arith.constant dense<0.000000e+00> : vector<256x128xf32>
    %89 = tpu.matmul %86, %88, %cst_96 {dimension_numbers = #tpu.dot_dimension_numbers<[1], [0], [0], [1], [0, 0, 1, 1], [], []>} : vector<256x128xf32>, vector<128x128xf32>, vector<256x128xf32> -> vector<256x128xf32>
    %90 = arith.addf %84, %89 : vector<256x128xf32>
    %c0_97 = arith.constant 0 : index
    %c2_98 = arith.constant 2 : index
    %c0_99 = arith.constant 0 : index
    %91 = vector.load %arg7[%c0_97, %c2_98, %c0_99] : memref<18x24x128xf32, #tpu.memory_space<vmem>>, vector<16x16x128xf32>
    %92 = vector.shape_cast %91 : vector<16x16x128xf32> to vector<256x128xf32>
    %c2_100 = arith.constant 2 : index
    %c0_101 = arith.constant 0 : index
    %c0_102 = arith.constant 0 : index
    %93 = vector.load %arg4[%c2_100, %c0_101, %c0_102] : memref<9x128x128xf32, #tpu.memory_space<vmem>>, vector<1x128x128xf32>
    %94 = vector.shape_cast %93 : vector<1x128x128xf32> to vector<128x128xf32>
    %cst_103 = arith.constant dense<0.000000e+00> : vector<256x128xf32>
    %95 = tpu.matmul %92, %94, %cst_103 {dimension_numbers = #tpu.dot_dimension_numbers<[1], [0], [0], [1], [0, 0, 1, 1], [], []>} : vector<256x128xf32>, vector<128x128xf32>, vector<256x128xf32> -> vector<256x128xf32>
    %96 = arith.addf %90, %95 : vector<256x128xf32>
    %c1_104 = arith.constant 1 : index
    %c0_105 = arith.constant 0 : index
    %c0_106 = arith.constant 0 : index
    %97 = vector.load %arg7[%c1_104, %c0_105, %c0_106] : memref<18x24x128xf32, #tpu.memory_space<vmem>>, vector<16x16x128xf32>
    %98 = vector.shape_cast %97 : vector<16x16x128xf32> to vector<256x128xf32>
    %c3_107 = arith.constant 3 : index
    %c0_108 = arith.constant 0 : index
    %c0_109 = arith.constant 0 : index
    %99 = vector.load %arg4[%c3_107, %c0_108, %c0_109] : memref<9x128x128xf32, #tpu.memory_space<vmem>>, vector<1x128x128xf32>
    %100 = vector.shape_cast %99 : vector<1x128x128xf32> to vector<128x128xf32>
    %cst_110 = arith.constant dense<0.000000e+00> : vector<256x128xf32>
    %101 = tpu.matmul %98, %100, %cst_110 {dimension_numbers = #tpu.dot_dimension_numbers<[1], [0], [0], [1], [0, 0, 1, 1], [], []>} : vector<256x128xf32>, vector<128x128xf32>, vector<256x128xf32> -> vector<256x128xf32>
    %102 = arith.addf %96, %101 : vector<256x128xf32>
    %c1_111 = arith.constant 1 : index
    %c1_112 = arith.constant 1 : index
    %c0_113 = arith.constant 0 : index
    %103 = vector.load %arg7[%c1_111, %c1_112, %c0_113] : memref<18x24x128xf32, #tpu.memory_space<vmem>>, vector<16x16x128xf32>
    %104 = vector.shape_cast %103 : vector<16x16x128xf32> to vector<256x128xf32>
    %c4_114 = arith.constant 4 : index
    %c0_115 = arith.constant 0 : index
    %c0_116 = arith.constant 0 : index
    %105 = vector.load %arg4[%c4_114, %c0_115, %c0_116] : memref<9x128x128xf32, #tpu.memory_space<vmem>>, vector<1x128x128xf32>
    %106 = vector.shape_cast %105 : vector<1x128x128xf32> to vector<128x128xf32>
    %cst_117 = arith.constant dense<0.000000e+00> : vector<256x128xf32>
    %107 = tpu.matmul %104, %106, %cst_117 {dimension_numbers = #tpu.dot_dimension_numbers<[1], [0], [0], [1], [0, 0, 1, 1], [], []>} : vector<256x128xf32>, vector<128x128xf32>, vector<256x128xf32> -> vector<256x128xf32>
    %108 = arith.addf %102, %107 : vector<256x128xf32>
    %c1_118 = arith.constant 1 : index
    %c2_119 = arith.constant 2 : index
    %c0_120 = arith.constant 0 : index
    %109 = vector.load %arg7[%c1_118, %c2_119, %c0_120] : memref<18x24x128xf32, #tpu.memory_space<vmem>>, vector<16x16x128xf32>
    %110 = vector.shape_cast %109 : vector<16x16x128xf32> to vector<256x128xf32>
    %c5_121 = arith.constant 5 : index
    %c0_122 = arith.constant 0 : index
    %c0_123 = arith.constant 0 : index
    %111 = vector.load %arg4[%c5_121, %c0_122, %c0_123] : memref<9x128x128xf32, #tpu.memory_space<vmem>>, vector<1x128x128xf32>
    %112 = vector.shape_cast %111 : vector<1x128x128xf32> to vector<128x128xf32>
    %cst_124 = arith.constant dense<0.000000e+00> : vector<256x128xf32>
    %113 = tpu.matmul %110, %112, %cst_124 {dimension_numbers = #tpu.dot_dimension_numbers<[1], [0], [0], [1], [0, 0, 1, 1], [], []>} : vector<256x128xf32>, vector<128x128xf32>, vector<256x128xf32> -> vector<256x128xf32>
    %114 = arith.addf %108, %113 : vector<256x128xf32>
    %c2_125 = arith.constant 2 : index
    %c0_126 = arith.constant 0 : index
    %c0_127 = arith.constant 0 : index
    %115 = vector.load %arg7[%c2_125, %c0_126, %c0_127] : memref<18x24x128xf32, #tpu.memory_space<vmem>>, vector<16x16x128xf32>
    %116 = vector.shape_cast %115 : vector<16x16x128xf32> to vector<256x128xf32>
    %c6_128 = arith.constant 6 : index
    %c0_129 = arith.constant 0 : index
    %c0_130 = arith.constant 0 : index
    %117 = vector.load %arg4[%c6_128, %c0_129, %c0_130] : memref<9x128x128xf32, #tpu.memory_space<vmem>>, vector<1x128x128xf32>
    %118 = vector.shape_cast %117 : vector<1x128x128xf32> to vector<128x128xf32>
    %cst_131 = arith.constant dense<0.000000e+00> : vector<256x128xf32>
    %119 = tpu.matmul %116, %118, %cst_131 {dimension_numbers = #tpu.dot_dimension_numbers<[1], [0], [0], [1], [0, 0, 1, 1], [], []>} : vector<256x128xf32>, vector<128x128xf32>, vector<256x128xf32> -> vector<256x128xf32>
    %120 = arith.addf %114, %119 : vector<256x128xf32>
    %c2_132 = arith.constant 2 : index
    %c1_133 = arith.constant 1 : index
    %c0_134 = arith.constant 0 : index
    %121 = vector.load %arg7[%c2_132, %c1_133, %c0_134] : memref<18x24x128xf32, #tpu.memory_space<vmem>>, vector<16x16x128xf32>
    %122 = vector.shape_cast %121 : vector<16x16x128xf32> to vector<256x128xf32>
    %c7_135 = arith.constant 7 : index
    %c0_136 = arith.constant 0 : index
    %c0_137 = arith.constant 0 : index
    %123 = vector.load %arg4[%c7_135, %c0_136, %c0_137] : memref<9x128x128xf32, #tpu.memory_space<vmem>>, vector<1x128x128xf32>
    %124 = vector.shape_cast %123 : vector<1x128x128xf32> to vector<128x128xf32>
    %cst_138 = arith.constant dense<0.000000e+00> : vector<256x128xf32>
    %125 = tpu.matmul %122, %124, %cst_138 {dimension_numbers = #tpu.dot_dimension_numbers<[1], [0], [0], [1], [0, 0, 1, 1], [], []>} : vector<256x128xf32>, vector<128x128xf32>, vector<256x128xf32> -> vector<256x128xf32>
    %126 = arith.addf %120, %125 : vector<256x128xf32>
    %c2_139 = arith.constant 2 : index
    %c2_140 = arith.constant 2 : index
    %c0_141 = arith.constant 0 : index
    %127 = vector.load %arg7[%c2_139, %c2_140, %c0_141] : memref<18x24x128xf32, #tpu.memory_space<vmem>>, vector<16x16x128xf32>
    %128 = vector.shape_cast %127 : vector<16x16x128xf32> to vector<256x128xf32>
    %c8_142 = arith.constant 8 : index
    %c0_143 = arith.constant 0 : index
    %c0_144 = arith.constant 0 : index
    %129 = vector.load %arg4[%c8_142, %c0_143, %c0_144] : memref<9x128x128xf32, #tpu.memory_space<vmem>>, vector<1x128x128xf32>
    %130 = vector.shape_cast %129 : vector<1x128x128xf32> to vector<128x128xf32>
    %cst_145 = arith.constant dense<0.000000e+00> : vector<256x128xf32>
    %131 = tpu.matmul %128, %130, %cst_145 {dimension_numbers = #tpu.dot_dimension_numbers<[1], [0], [0], [1], [0, 0, 1, 1], [], []>} : vector<256x128xf32>, vector<128x128xf32>, vector<256x128xf32> -> vector<256x128xf32>
    %132 = arith.addf %126, %131 : vector<256x128xf32>
    %133 = arith.addf %132, %33 : vector<256x128xf32>
    %cst_146 = arith.constant 0.000000e+00 : f32
    %134 = vector.broadcast %cst_146 : f32 to vector<256x128xf32>
    %135 = arith.maximumf %133, %134 : vector<256x128xf32>
    %136 = vector.shape_cast %135 : vector<256x128xf32> to vector<16x16x128xf32>
    %c0_147 = arith.constant 0 : index
    %c0_148 = arith.constant 0 : index
    %c0_149 = arith.constant 0 : index
    %c0_150 = arith.constant 0 : index
    %137 = vector.load %arg6[%c0_147, %c0_148, %c0_149, %c0_150] : memref<1x16x16x128xf32, #tpu.memory_space<vmem>>, vector<1x16x16x128xf32>
    %138 = vector.shape_cast %137 : vector<1x16x16x128xf32> to vector<16x16x128xf32>
    %139 = vector.shape_cast %136 : vector<16x16x128xf32> to vector<1x16x16x128xf32>
    tpu.vector_store %arg6[%c0_147, %c0_148, %c0_149, %c0_150], %139 {strides = array<i32>} : memref<1x16x16x128xf32, #tpu.memory_space<vmem>>, vector<1x16x16x128xf32>,
    return
  }
  func.func @transform_0(%arg0: i32) -> (i32, i32, i32, i32) {
    %c0_i32 = arith.constant 0 : i32
    %c0_i32_0 = arith.constant 0 : i32
    %c0_i32_1 = arith.constant 0 : i32
    %c0_i32_2 = arith.constant 0 : i32
    return %arg0, %c0_i32, %c0_i32_0, %c0_i32_1 : i32, i32, i32, i32
  }
  func.func @transform_1(%arg0: i32) -> (i32, i32, i32) {
    %c0_i32 = arith.constant 0 : i32
    %c0_i32_0 = arith.constant 0 : i32
    %c0_i32_1 = arith.constant 0 : i32
    %c0_i32_2 = arith.constant 0 : i32
    return %c0_i32, %c0_i32_0, %c0_i32_1 : i32, i32, i32
  }
  func.func @transform_2(%arg0: i32) -> (i32, i32) {
    %c0_i32 = arith.constant 0 : i32
    %c0_i32_0 = arith.constant 0 : i32
    %c0_i32_1 = arith.constant 0 : i32
    return %c0_i32, %c0_i32_0 : i32, i32
  }
  func.func @transform_3(%arg0: i32) -> (i32, i32, i32) {
    %c0_i32 = arith.constant 0 : i32
    %c0_i32_0 = arith.constant 0 : i32
    %c0_i32_1 = arith.constant 0 : i32
    %c0_i32_2 = arith.constant 0 : i32
    return %c0_i32, %c0_i32_0, %c0_i32_1 : i32, i32, i32
  }
  func.func @transform_4(%arg0: i32) -> (i32, i32) {
    %c0_i32 = arith.constant 0 : i32
    %c0_i32_0 = arith.constant 0 : i32
    %c0_i32_1 = arith.constant 0 : i32
    return %c0_i32, %c0_i32_0 : i32, i32
  }
  func.func @transform_5(%arg0: i32) -> (i32, i32, i32, i32) {
    %c0_i32 = arith.constant 0 : i32
    %c0_i32_0 = arith.constant 0 : i32
    %c0_i32_1 = arith.constant 0 : i32
    %c0_i32_2 = arith.constant 0 : i32
    return %arg0, %c0_i32, %c0_i32_0, %c0_i32_1 : i32, i32, i32, i32
  }
}

</mosaic_0001>

<bundles_post_ra>
// kernel: tpu_custom_call.1
= control target key start
LH: loop header
LB: loop body
LE: loop exit
PB: predicated region body
PF: predicated region fallthrough
CT: control target
= control target key end

     0   :  { %10 = vsyncpa [#allocation4], 0  ;;  %s11517_s0 = inlined_call_operand.hbm [shape: f32[2,18,24,128], index: 0, kind: input, shape index: {}]   ;;  %s11518_s1 = inlined_call_operand.hbm [shape: f32[9,128,128], index: 1, kind: input, shape index: {}]   ;;  %s11519_s2 = inlined_call_operand.vmem [shape: f32[1,128], index: 2, kind: input, shape index: {}]   ;;  %s11520_s3 = inlined_call_operand.hbm [shape: f32[9,128,128], index: 3, kind: input, shape index: {}]   ;;  %s11521_s4 = inlined_call_operand.vmem [shape: f32[1,128], index: 4, kind: input, shape index: {}]   ;;  %s11522_s5 = inlined_call_operand.hbm [shape: f32[2,16,16,128], index: 5, kind: output, shape index: {}]  }
   0x1   :  { %12 = vsyncpa [#allocation4 + $0x1], 0 }
   0x2   :  { %13 = vsyncpa [#allocation7], 0 }
   0x3   :  { %14 = vsyncpa [#allocation5], 0 }
   0x4   :  { %16 = vsyncpa [#allocation5 + $0x1], 0  ;;  %s10072_s18 = smov 0   ;;  %s10074_s19 = smov 0  }
   0x5   :  { %s10076_s20 = smov 0   ;;  %s10078_s21 = smov 0  }
   0x6 LB: > { %s10093_s22 = sadd.s32 4294967295, %s10031_s21   ;;  %s6101_s23 = sadd.s32 4294967294, %s10031_s21   ;;  %s10031_s21 = sphi %s10078_s21, %s11759_s21   ;;  %s10027_s20 = sphi %s10076_s20, %s11758_s20   ;;  %s10023_s19 = sphi %s10074_s19, %s11757_s19   ;;  %s10019_s18 = sphi %s10072_s18, %s11756_s18  }
   0x7   : > { %p42_p0 = scmp.ne.s32.totalorder %s10023_s19, %s10019_s18  ;;  %p11523_p1 = scmp.eq.s32.totalorder %s10093_s22, 0 }
   0x8   : > { %p156_p3 = scmp.eq.s32.totalorder %s6101_s23, 1  ;;  %p6102_p5 = scmp.ge.s32.totalorder %s10031_s21, 1 }
   0x9   : > { %p10102_p4 = por %p11523_p1, %p42_p0  ;;  %p163_p7 = scmp.lt.s32.totalorder %s10031_s21, 3 }
   0xa   : > { %p10107_p6 = por %p156_p3, %p42_p0  ;;  %s10033_s27 = smov [#allocation6]  }
   0xb   : > { %s11603_s24 = scalar_select %p10102_p4, 1, 0 }
   0xc   : > { %s11604_s25 = scalar_select %p10107_p6, 1, 0 }
   0xd   : > { %p10112_p8 = pnand %p6102_p5, %p163_p7  ;;  %s175_s28 = sshll.u32 %s10033_s27, 4  ;;  %s10116_s28 = int_to_ptr.vmem [resolvable:$true] %s175_s28 }
   0xe   : > { %s10034_s30 = smov [#allocation8]   ;;  %s9875_s9 = scalar_lea.hbm %s11518_s1, 18432 }
   0xf   : > { %p9782_p9 = pneg %p10112_p8  ;;  %s191_s6 = sshll.u32 %s10034_s30, 4  ;;  %s10127_s6 = int_to_ptr.vmem [resolvable:$true] %s191_s6 }
  0x10   : > { %p9876_p12 = scmp.ne.s32.totalorder %s11518_s1, %s9875_s9  ;;  %p9882_p5 = scmp.lt.u32.totalorder %s9875_s9, %s11518_s1 }
  0x11   : > { %p10123_p11 = pnand %p9782_p9, %p11523_p1 }
  0x13   : > { %p9877_p13 = pneg %p10123_p11 }
  0x15   : > { %p9878_p0 = pnand %p9877_p13, %p9876_p12 }
  0x17   : > { %p9879_p3 = pneg %p9878_p0 }
  0x19   : > { %p9884_p7 = pnand %p9882_p5, %p9879_p3 }
  0x1b   : > { %9887 = shalt.err (!%p9884_p7)
}
  0x1c   : > { %s9888_s14 = scalar_lea.vmem %s10116_s28, 18432  ;;  %p9896_p2 = scmp.lt.s32.totalorder %s10116_s28, %s10116_s28 }
  0x1d   : > { %p9889_p9 = scmp.ne.s32.totalorder %s10116_s28, %s9888_s14  ;;  %p9897_p12 = scmp.lt.s32.totalorder %s9888_s14, %s9888_s14 }
  0x1f   : > { %p9891_p10 = pnand %p9889_p9, %p9877_p13  ;;  %p9898_p0 = por %p9897_p12, %p9896_p2 }
  0x21   : > { %p9892_p1 = pneg %p9891_p10 }
  0x23   : > { %p9899_p6 = pnand %p9898_p0, %p9892_p1 }
  0x25   : > { %9902 = shalt.err (!%p9899_p6)
}
  0x26   : > { %s11524_s15 = smov 128   ;;  %s10036_s16 = smov 8  }
  0x27   : > { %9785 = dma.hbm_to_vmem [thread:$0]  (!%p10123_p11), %s11518_s1, 18432, %s10116_s28, [#allocation7], %s11524_s15, %s11524_s15, %s10036_s16  }
  0x28   : > { %s9903_s7 = scalar_lea.hbm %s11520_s3, 18432 }
  0x29   : > { %p9904_p1 = scmp.ne.s32.totalorder %s11520_s3, %s9903_s7  ;;  %p9910_p10 = scmp.lt.u32.totalorder %s9903_s7, %s11520_s3 }
  0x2b   : > { %p9906_p2 = pnand %p9904_p1, %p9877_p13 }
  0x2d   : > { %p9907_p6 = pneg %p9906_p2 }
  0x2f   : > { %p9912_p3 = pnand %p9910_p10, %p9907_p6 }
  0x31   : > { %9915 = shalt.err (!%p9912_p3)
}
  0x32   : > { %s9916_s28 = scalar_lea.vmem %s10127_s6, 18432  ;;  %p9924_p12 = scmp.lt.s32.totalorder %s10127_s6, %s10127_s6 }
  0x33   : > { %p9917_p5 = scmp.ne.s32.totalorder %s10127_s6, %s9916_s28  ;;  %p9925_p0 = scmp.lt.s32.totalorder %s9916_s28, %s9916_s28 }
  0x35   : > { %p9919_p7 = pnand %p9917_p5, %p9877_p13  ;;  %p9926_p1 = por %p9925_p0, %p9924_p12 }
  0x37   : > { %p9920_p9 = pneg %p9919_p7 }
  0x39   : > { %p9927_p2 = pnand %p9926_p1, %p9920_p9 }
  0x3b   : > { %9930 = shalt.err (!%p9927_p2)
}
  0x3c   : > { %9788 = dma.hbm_to_vmem [thread:$0]  (!%p10123_p11), %s11520_s3, 18432, %s10127_s6, [#allocation7], %s11524_s15, %s11524_s15, %s10036_s16  }
  0x3d   : > { %s10188_s29 = sadd.s32 1, %s10031_s21   ;;  %s29_s14 = sadd.s32 1, %s10027_s20 }
  0x3e   : > { %s26_s17 = ssub.s32 %s10031_s21, %s10188_s29  ;;  %p36_p13 = scmp.ne.s32.totalorder %s10027_s20, %s10023_s19 }
  0x3f   : > { %p27_p6 = scmp.eq.s32.totalorder %s26_s17, 0  ;;  %p37_p10 = scmp.eq.s32.totalorder %s10031_s21, 0 }
  0x40   : > { %p11607_p3 = scmp.eq.s32.totalorder %s10093_s22, 1  ;;  %p9799_p7 = scmp.lt.s32.totalorder %s10031_s21, 2 }
  0x41   : > { %s10204_s27 = scalar_select %p27_p6, %s10027_s20, %s29_s14  }
  0x42   : > { %p10198_p5 = por %p11607_p3, %p36_p13  ;;  %p38_p9 = por %p37_p10, %p36_p13 }
  0x43   : > { %s208_s30 = sand.u32 1, %s10027_s20   ;;  %s9768_s6 = smul.u32 6912, %s10031_s21 }
  0x44   : > { %s11608_s23 = scalar_select %p10198_p5, 1, 0 }
  0x45   : > { %s9767_s7 = smul.u32 432, %s208_s30  ;;  %p10208_p11 = pnand %p9799_p7, %p38_p9 }
  0x46   : > { %s10215_s11 = scalar_lea.hbm %s11517_s0, %s9768_s6  ;;  %s10219_s13 = scalar_lea.sflag [#allocation4], %s208_s30 }
  0x47   : > { %s212_s28 = scalar_lea.vmem [#allocation3], %s9767_s7  ;;  %s9931_s14 = scalar_lea.hbm %s10215_s11, 6912 }
  0x48   : > { %s219_s12 = sshll.u32 %s212_s28, 4  ;;  %p9932_p12 = scmp.ne.s32.totalorder %s10215_s11, %s9931_s14  ;;  %s10217_s12 = int_to_ptr.vmem [resolvable:$true] %s219_s12 }
  0x49   : > { %p9933_p0 = pneg %p10208_p11  ;;  %s9936_s9 = scalar_lea.hbm %s11517_s0, 13824 }
  0x4a   : > { %p9937_p13 = scmp.lt.u32.totalorder %s10215_s11, %s11517_s0  ;;  %p9938_p6 = scmp.lt.u32.totalorder %s9936_s9, %s9931_s14 }
  0x4b   : > { %p9934_p1 = pnand %p9933_p0, %p9932_p12  ;;  %p9940_p3 = scmp.lt.u32.totalorder %s9931_s14, %s10215_s11 }
  0x4c   : > { %p9939_p10 = por %p9938_p6, %p9937_p13 }
  0x4d   : > { %p9935_p2 = pneg %p9934_p1 }
  0x4e   : > { %p9941_p7 = por %p9940_p3, %p9939_p10 }
  0x50   : > { %p9942_p9 = pnand %p9941_p7, %p9935_p2 }
  0x52   : > { %9945 = shalt.err (!%p9942_p9)
}
  0x53   : > { %s9946_s30 = scalar_lea.vmem %s10217_s12, 6912  ;;  %s10037_s7 = smov [#allocation3]  }
  0x54   : > { %p9947_p12 = scmp.ne.s32.totalorder %s10217_s12, %s9946_s30  ;;  %s9951_s28 = sshll.u32 %s10037_s7, 4  ;;  %s9952_s28 = int_to_ptr.vmem [resolvable:$false] %s9951_s28 }
  0x55   : > { %s9953_s15 = scalar_lea.vmem %s9952_s28, 13824  ;;  %p9954_p4 = scmp.lt.s32.totalorder %s10217_s12, %s9952_s28 }
  0x56   : > { %p9949_p1 = pnand %p9947_p12, %p9933_p0  ;;  %p9955_p13 = scmp.lt.s32.totalorder %s9953_s15, %s9946_s30 }
  0x58   : > { %p9950_p5 = pneg %p9949_p1  ;;  %p9956_p6 = por %p9955_p13, %p9954_p4 }
  0x5a   : > { %p9957_p10 = pnand %p9956_p6, %p9950_p5 }
  0x5c   : > { %9960 = shalt.err (!%p9957_p10)
}
  0x5d   : > { %s11610_s14 = smov 128   ;;  %231 = sbr.rel (%p10112_p8) target bundleno = 1684 (0x694), region = 40 }
  0x5e   : > { %9792 = dma.hbm_to_vmem [thread:$0]  (!%p10208_p11), %s10215_s11, 6912, %s10217_s12, %s10219_s13, %s11610_s14, %s11610_s14, %s10036_s16  }
  0x64   : > { %s10253_s17 = sand.u32 1, %s10023_s19   ;;  %p11611_p4 = scmp.ne.s32.totalorder %s11603_s24, 0 }
  0x65   : > { %s9769_s6 = smul.u32 432, %s10253_s17  ;;  %s234_s9 = scalar_lea.sflag [#allocation4], %s10253_s17 }
  0x67   : > { %s10257_s10 = scalar_lea.vmem [#allocation3], %s9769_s6 }
  0x68   : > { %10006 = dma.done.wait (%p11611_p4), %s234_s9, 6912  }
  0x69   : > { %10008 = vsyncadd (%p11611_p4), %s234_s9, 4294960384  ;;  %p11612_p5 = scmp.eq.s32.totalorder %s10093_s22, 0 }
  0x6b   : > { %10010 = dma.done.wait (%p11612_p5), [#allocation7], 36864   ;;  %p11613_p8 = pmov %p11612_p5 }
  0x6c   : > { %v311_v0 = vld [vmem:[#allocation6] sm:$0xff]  ;;  %v312_v1 = vld [vmem:[#allocation6 + $0x8] sm:$0xff]  ;;  %v313_v2 = vld [vmem:[#allocation6 + $0x10] sm:$0xff]  ;;  %s6110_s11 = sshll.u32 %s10253_s17, 8  ;;  %s6310_s13 = sshll.u32 %s10093_s22, 12 }
  0x6d   : > { %10012 = vsyncadd (%p11613_p8), [#allocation7], 4294930432  ;;  %v8615_v3 = vpack.c.bf16 %v312_v1, %v311_v0  ;;  %v314_v4 = vld [vmem:[#allocation6 + $0x18] sm:$0xff]  ;;  %v315_v6 = vld [vmem:[#allocation6 + $0x20] sm:$0xff]  ;;  %s11374_s12 = scalar_lea.vmem [#allocation9], %s6110_s11  ;;  %s11469_s15 = scalar_lea.hbm %s11522_s5, %s6310_s13 }
  0x6e   : > { %v8619_v5 = vpack.c.bf16 %v314_v4, %v313_v2  ;;  %v316_v7 = vld [vmem:[#allocation6 + $0x28] sm:$0xff]  ;;  %v279_v9 = vld [vmem:[%s10257_s10] sm:$0xff]  ;;  %v318_v11 = vld [vmem:[#allocation6 + $0x38] sm:$0xff]  ;;  %s6009_s30 = sshll.u32 %s11374_s12, 4  ;;  %s5996_s22 = scalar_lea.sflag [#allocation5], %s10253_s17  ;;  %s11471_s30 = int_to_ptr.vmem [resolvable:$true] %s6009_s30 }
  0x6f   : > { %8616 = vmatprep.subr.bf16.mxu0 %v8615_v3  ;;  %v8623_v8 = vpack.c.bf16 %v316_v7, %v315_v6  ;;  %v317_v10 = vld [vmem:[#allocation6 + $0x30] sm:$0xff]  ;;  %7207 = vmatprep.mubr.f32.mxu0 %v279_v9  ;;  %v319_v13 = vld [vmem:[#allocation6 + $0x40] sm:$0xff]  ;;  %v320_v14 = vld [vmem:[#allocation6 + $0x48] sm:$0xff]  ;;  %s9961_s14 = scalar_lea.vmem %s11471_s30, 4096  ;;  %p11753_p0 = scmp.ne.s32.totalorder %s11608_s23, 0 }
  0x70   : > { %8618 = vmatpush3.bf16.msra.mxu0 %v8615_v3  ;;  %v8627_v12 = vpack.c.bf16 %v318_v11, %v317_v10  ;;  %v8631_v15 = vpack.c.bf16 %v320_v14, %v319_v13  ;;  %v321_v16 = vld [vmem:[#allocation6 + $0x50] sm:$0xff]  ;;  %v322_v17 = vld [vmem:[#allocation6 + $0x58] sm:$0xff]  ;;  %v323_v19 = vld [vmem:[#allocation6 + $0x60] sm:$0xff]  ;;  %p9962_p11 = scmp.ne.s32.totalorder %s11471_s30, %s9961_s14  ;;  %s10039_s6 = smov [#allocation9]  }
  0x71   : > { %8620 = vmatprep.subr.bf16.mxu0 %v8619_v5  ;;  %v8635_v18 = vpack.c.bf16 %v322_v17, %v321_v16  ;;  %v324_v20 = vld [vmem:[#allocation6 + $0x68] sm:$0xff]  ;;  %v325_v22 = vld [vmem:[#allocation6 + $0x70] sm:$0xff]  ;;  %v326_v23 = vld [vmem:[#allocation6 + $0x78] sm:$0xff]  ;;  %s9965_s9 = sshll.u32 %s10039_s6, 4  ;;  %s9966_s9 = int_to_ptr.vmem [resolvable:$false] %s9965_s9 }
  0x72   : > { %v8639_v21 = vpack.c.bf16 %v324_v20, %v323_v19  ;;  %v8643_v24 = vpack.c.bf16 %v326_v23, %v325_v22  ;;  %v617_v25 = vld [vmem:[#allocation6 + $0x80] sm:$0xff]  ;;  %v618_v26 = vld [vmem:[#allocation6 + $0x88] sm:$0xff]  ;;  %v619_v28 = vld [vmem:[#allocation6 + $0x90] sm:$0xff]  ;;  %p9963_p2 = pnand %p9962_p11, %p11753_p0  ;;  %p9968_p7 = scmp.lt.s32.totalorder %s11471_s30, %s9966_s9 }
  0x73   : > { %v8647_v27 = vpack.c.bf16 %v618_v26, %v617_v25  ;;  %v620_v29 = vld [vmem:[#allocation6 + $0x98] sm:$0xff]  ;;  %v621_v33 = vld [vmem:[#allocation6 + $0xa0] sm:$0xff]  ;;  %v622_v34 = vld [vmem:[#allocation6 + $0xa8] sm:$0xff] }
  0x74   : > { %8622 = vmatpush3.bf16.msra.mxu0 %v8619_v5  ;;  %v280_v30 = vld [vmem:[%s10257_s10 + $0x8] sm:$0xff]  ;;  %v10270_v31 = vld [vmem:[%s10257_s10 + $0x18] sm:$0xff]  ;;  %v8651_v32 = vpack.c.bf16 %v620_v29, %v619_v28  ;;  %v10274_v35 = vld [vmem:[%s10257_s10 + $0x20] sm:$0xff]  ;;  %v8655_v37 = vpack.c.bf16 %v622_v34, %v621_v33  ;;  %p9964_p3 = pneg %p9963_p2 }
  0x75   : > { %8624 = vmatprep.subr.bf16.mxu0 %v8623_v8  ;;  %v10277_v36 = vld [vmem:[%s10257_s10 + $0x30] sm:$0xff]  ;;  %v624_v39 = vld [vmem:[#allocation6 + $0xb8] sm:$0xff]  ;;  %v626_v44 = vld [vmem:[#allocation6 + $0xc8] sm:$0xff] }
  0x76   : > { %v623_v38 = vld [vmem:[#allocation6 + $0xb0] sm:$0xff]  ;;  %v10282_v40 = vld [vmem:[%s10257_s10 + $0x38] sm:$0xff]  ;;  %v10285_v41 = vld [vmem:[%s10257_s10 + $0x48] sm:$0xff] }
  0x77   : > { %v8659_v42 = vpack.c.bf16 %v624_v39, %v623_v38  ;;  %v625_v43 = vld [vmem:[#allocation6 + $0xc0] sm:$0xff]  ;;  %v627_v48 = vld [vmem:[#allocation6 + $0xd0] sm:$0xff]  ;;  %v628_v49 = vld [vmem:[#allocation6 + $0xd8] sm:$0xff] }
  0x78   : > { %8626 = vmatpush3.bf16.msra.mxu0 %v8623_v8  ;;  %v10290_v45 = vld [vmem:[%s10257_s10 + $0x50] sm:$0xff]  ;;  %v10293_v46 = vld [vmem:[%s10257_s10 + $0x60] sm:$0xff]  ;;  %v8663_v47 = vpack.c.bf16 %v626_v44, %v625_v43  ;;  %v10298_v50 = vld [vmem:[%s10257_s10 + $0x68] sm:$0xff]  ;;  %v8667_v52 = vpack.c.bf16 %v628_v49, %v627_v48 }
  0x79   : > { %8628 = vmatprep.subr.bf16.mxu0 %v8627_v12  ;;  %v10301_v51 = vld [vmem:[%s10257_s10 + $0x78] sm:$0xff]  ;;  %v629_v53 = vld [vmem:[#allocation6 + $0xe0] sm:$0xff]  ;;  %v631_v58 = vld [vmem:[#allocation6 + $0xf0] sm:$0xff] }
  0x7a   : > { %v630_v54 = vld [vmem:[#allocation6 + $0xe8] sm:$0xff]  ;;  %v10306_v55 = vld [vmem:[%s10257_s10 + $0x80] sm:$0xff]  ;;  %v10309_v56 = vld [vmem:[%s10257_s10 + $0x90] sm:$0xff] }
  0x7b   : > { %v8671_v57 = vpack.c.bf16 %v630_v54, %v629_v53  ;;  %v632_v59 = vld [vmem:[#allocation6 + $0xf8] sm:$0xff]  ;;  %v923_v63 = vld [vmem:[#allocation6 + $0x100] sm:$0xff]  ;;  %v924_v0 = vld [vmem:[#allocation6 + $0x108] sm:$0xff] }
  0x7c   : > { %8630 = vmatpush3.bf16.msra.mxu0 %v8627_v12  ;;  %v10314_v60 = vld [vmem:[%s10257_s10 + $0x98] sm:$0xff]  ;;  %v10317_v61 = vld [vmem:[%s10257_s10 + $0xa8] sm:$0xff]  ;;  %v8675_v62 = vpack.c.bf16 %v632_v59, %v631_v58  ;;  %v10322_v1 = vld [vmem:[%s10257_s10 + $0xb0] sm:$0xff]  ;;  %v8679_v3 = vpack.c.bf16 %v924_v0, %v923_v63 }
  0x7d   : > { %8632 = vmatprep.subr.bf16.mxu0 %v8631_v15  ;;  %v10325_v2 = vld [vmem:[%s10257_s10 + $0xc0] sm:$0xff]  ;;  %v10330_v4 = vld [vmem:[%s10257_s10 + $0xc8] sm:$0xff]  ;;  %v10333_v5 = vld [vmem:[%s10257_s10 + $0xd8] sm:$0xff] }
  0x7e   : > { %v10338_v6 = vld [vmem:[%s10257_s10 + $0xe0] sm:$0xff]  ;;  %v10341_v7 = vld [vmem:[%s10257_s10 + $0xf0] sm:$0xff]  ;;  %v10346_v8 = vld [vmem:[%s10257_s10 + $0xf8] sm:$0xff] }
  0x7f   : > { %v10349_v9 = vld [vmem:[%s10257_s10 + $0x108] sm:$0xff]  ;;  %v10354_v10 = vld [vmem:[%s10257_s10 + $0x110] sm:$0xff]  ;;  %v10357_v11 = vld [vmem:[%s10257_s10 + $0x120] sm:$0xff] }
  0x80   : > { %8634 = vmatpush3.bf16.msra.mxu0 %v8631_v15  ;;  %v10362_v12 = vld [vmem:[%s10257_s10 + $0x128] sm:$0xff]  ;;  %v10365_v13 = vld [vmem:[%s10257_s10 + $0x138] sm:$0xff]  ;;  %v10370_v14 = vld [vmem:[%s10257_s10 + $0x140] sm:$0xff] }
  0x81   : > { %8636 = vmatprep.subr.bf16.mxu0 %v8635_v18  ;;  %v10373_v15 = vld [vmem:[%s10257_s10 + $0x150] sm:$0xff]  ;;  %v10378_v16 = vld [vmem:[%s10257_s10 + $0x158] sm:$0xff]  ;;  %v10381_v17 = vld [vmem:[%s10257_s10 + $0x168] sm:$0xff] }
  0x82   : > { %v584_v19 = vld [vmem:[%s10257_s10 + $0x1] sm:$0xff]  ;;  %v585_v22 = vld [vmem:[%s10257_s10 + $0x9] sm:$0xff]  ;;  %v10392_v23 = vld [vmem:[%s10257_s10 + $0x19] sm:$0xff] }
  0x83   : > { %v925_v20 = vld [vmem:[#allocation6 + $0x110] sm:$0xff]  ;;  %v927_v25 = vld [vmem:[#allocation6 + $0x120] sm:$0xff]  ;;  %v928_v26 = vld [vmem:[#allocation6 + $0x128] sm:$0xff] }
  0x84   : > { %8638 = vmatpush3.bf16.msra.mxu0 %v8635_v18  ;;  %v10386_v18 = vld [vmem:[%s10257_s10 + $0x170] sm:$0xff]  ;;  %v8687_v29 = vpack.c.bf16 %v928_v26, %v927_v25  ;;  %v10404_v33 = vld [vmem:[%s10257_s10 + $0x39] sm:$0xff]  ;;  %v10415_v43 = vld [vmem:[%s10257_s10 + $0x61] sm:$0xff] }
  0x85   : > { %8640 = vmatprep.subr.bf16.mxu0 %v8639_v21  ;;  %v10399_v28 = vld [vmem:[%s10257_s10 + $0x31] sm:$0xff]  ;;  %v10407_v34 = vld [vmem:[%s10257_s10 + $0x49] sm:$0xff]  ;;  %v10428_v58 = vld [vmem:[%s10257_s10 + $0x81] sm:$0xff] }
  0x86   : > { %v931_v38 = vld [vmem:[#allocation6 + $0x140] sm:$0xff]  ;;  %v932_v39 = vld [vmem:[#allocation6 + $0x148] sm:$0xff]  ;;  %v934_v48 = vld [vmem:[#allocation6 + $0x158] sm:$0xff] }
  0x87   : > { %v8695_v44 = vpack.c.bf16 %v932_v39, %v931_v38  ;;  %v10420_v49 = vld [vmem:[%s10257_s10 + $0x69] sm:$0xff]  ;;  %v10431_v59 = vld [vmem:[%s10257_s10 + $0x91] sm:$0xff]  ;;  %v10447_v25 = vld [vmem:[%s10257_s10 + $0xc1] sm:$0xff] }
  0x88   : > { %8642 = vmatpush3.bf16.msra.mxu0 %v8639_v21  ;;  %v926_v21 = vld [vmem:[#allocation6 + $0x118] sm:$0xff]  ;;  %v935_v54 = vld [vmem:[#allocation6 + $0x160] sm:$0xff]  ;;  %v937_v63 = vld [vmem:[#allocation6 + $0x170] sm:$0xff] }
  0x89   : > { %8644 = vmatprep.subr.bf16.mxu0 %v8643_v24  ;;  %v938_v0 = vld [vmem:[#allocation6 + $0x178] sm:$0xff] }
  0x8a   : > { %v10468_v38 = vld [vmem:[%s10257_s10 + $0xf9] sm:$0xff]  ;;  %v10471_v39 = vld [vmem:[%s10257_s10 + $0x109] sm:$0xff] }
  0x8c   : > { %8646 = vmatpush3.bf16.msra.mxu0 %v8643_v24  ;;  %v8683_v24 = vpack.c.bf16 %v926_v21, %v925_v20  ;;  %v8707_v20 = vpack.c.bf16 %v938_v0, %v937_v63  ;;  %v1230_v21 = vld [vmem:[#allocation6 + $0x180] sm:$0xff] }
  0x8d   : > { %8648 = vmatprep.subr.bf16.mxu0 %v8647_v27  ;;  %v10503_v63 = vld [vmem:[%s10257_s10 + $0x169] sm:$0xff]  ;;  %v10508_v0 = vld [vmem:[%s10257_s10 + $0x171] sm:$0xff] }
  0x8e   : > { %11621 = vst [vmem:[#allocation20_spill] sm:$0xff] %v10503_v63  ;;  %11622 = vst [vmem:[#allocation21_spill] sm:$0xff] %v10508_v0 }
  0x8f   : > { %7208 = vmatmul.mubr.f32.vlgmr.msra.gmra.mrb[0].mxu0 %v280_v30  ;;  %v929_v30 = vld [vmem:[#allocation6 + $0x130] sm:$0xff] }
  0x90   : > { %8650 = vmatpush3.bf16.msra.mxu0 %v8647_v27  ;;  %7210 = vmatprep.mubr.f32.mxu0 %v10270_v31  ;;  %v10396_v27 = vld [vmem:[%s10257_s10 + $0x21] sm:$0xff] }
  0x91   : > { %8652 = vmatprep.subr.bf16.mxu0 %v8651_v32 }
  0x93   : > { %7211 = vmatmul.mubr.f32.gmra.mrb[2].mxu0 %v10274_v35 }
  0x94   : > { %7213 = vmatprep.mubr.f32.mxu0 %v10277_v36  ;;  %8654 = vmatpush3.bf16.msra.mxu0 %v8651_v32  ;;  %v930_v32 = vld [vmem:[#allocation6 + $0x138] sm:$0xff] }
  0x95   : > { %8656 = vmatprep.subr.bf16.mxu0 %v8655_v37 }
  0x97   : > { %7214 = vmatmul.mubr.f32.gmra.mrb[4].mxu0 %v10282_v40 }
  0x98   : > { %7216 = vmatprep.mubr.f32.mxu0 %v10285_v41  ;;  %8658 = vmatpush3.bf16.msra.mxu0 %v8655_v37  ;;  %v8691_v37 = vpack.c.bf16 %v930_v32, %v929_v30  ;;  %v10455_v30 = vld [vmem:[%s10257_s10 + $0xd9] sm:$0xff]  ;;  %v10460_v32 = vld [vmem:[%s10257_s10 + $0xe1] sm:$0xff] }
  0x99   : > { %8660 = vmatprep.subr.bf16.mxu0 %v8659_v42 }
  0x9b   : > { %7217 = vmatmul.mubr.f32.gmra.mrb[6].mxu0 %v10290_v45 }
  0x9c   : > { %7219 = vmatprep.mubr.f32.mxu0 %v10293_v46  ;;  %8662 = vmatpush3.bf16.msra.mxu0 %v8659_v42  ;;  %v10412_v42 = vld [vmem:[%s10257_s10 + $0x51] sm:$0xff] }
  0x9d   : > { %8664 = vmatprep.subr.bf16.mxu0 %v8663_v47 }
  0x9f   : > { %7220 = vmatmul.mubr.f32.gmra.mrb[8].mxu0 %v10298_v50 }
  0xa0   : > { %7222 = vmatprep.mubr.f32.mxu0 %v10301_v51  ;;  %8666 = vmatpush3.bf16.msra.mxu0 %v8663_v47  ;;  %v933_v47 = vld [vmem:[#allocation6 + $0x150] sm:$0xff] }
  0xa1   : > { %8668 = vmatprep.subr.bf16.mxu0 %v8667_v52  ;;  %v8699_v53 = vpack.c.bf16 %v934_v48, %v933_v47  ;;  %v10479_v47 = vld [vmem:[%s10257_s10 + $0x121] sm:$0xff]  ;;  %v10484_v48 = vld [vmem:[%s10257_s10 + $0x129] sm:$0xff] }
  0xa2   : > { %11615 = vst [vmem:[#allocation14_spill] sm:$0xff] %v10479_v47  ;;  %11616 = vst [vmem:[#allocation15_spill] sm:$0xff] %v10484_v48 }
  0xa3   : > { %7223 = vmatmul.mubr.f32.gmra.mrb[10].mxu0 %v10306_v55 }
  0xa4   : > { %7225 = vmatprep.mubr.f32.mxu0 %v10309_v56  ;;  %8670 = vmatpush3.bf16.msra.mxu0 %v8667_v52  ;;  %v10423_v52 = vld [vmem:[%s10257_s10 + $0x79] sm:$0xff] }
  0xa5   : > { %8672 = vmatprep.subr.bf16.mxu0 %v8671_v57 }
  0xa7   : > { %7226 = vmatmul.mubr.f32.gmra.mrb[12].mxu0 %v10314_v60 }
  0xa8   : > { %7228 = vmatprep.mubr.f32.mxu0 %v10317_v61  ;;  %8674 = vmatpush3.bf16.msra.mxu0 %v8671_v57  ;;  %v936_v57 = vld [vmem:[#allocation6 + $0x168] sm:$0xff] }
  0xa9   : > { %8676 = vmatprep.subr.bf16.mxu0 %v8675_v62 }
  0xab   : > { %7229 = vmatmul.mubr.f32.gmra.mrb[14].mxu0 %v10322_v1 }
  0xac   : > { %7231 = vmatprep.mubr.f32.mxu0 %v10325_v2  ;;  %8678 = vmatpush3.bf16.msra.mxu0 %v8675_v62  ;;  %v8703_v62 = vpack.c.bf16 %v936_v57, %v935_v54  ;;  %v10492_v54 = vld [vmem:[%s10257_s10 + $0x141] sm:$0xff]  ;;  %v10495_v57 = vld [vmem:[%s10257_s10 + $0x151] sm:$0xff] }
  0xad   : > { %8680 = vmatprep.subr.bf16.mxu0 %v8679_v3  ;;  %11618 = vst [vmem:[#allocation17_spill] sm:$0xff] %v10492_v54  ;;  %11619 = vst [vmem:[#allocation18_spill] sm:$0xff] %v10495_v57 }
  0xaf   : > { %7232 = vmatmul.mubr.f32.gmra.mrb[16].mxu0 %v10330_v4 }
  0xb0   : > { %7234 = vmatprep.mubr.f32.mxu0 %v10333_v5 }
  0xb3   : > { %7235 = vmatmul.mubr.f32.gmra.mrb[18].mxu0 %v10338_v6 }
  0xb4   : > { %7237 = vmatprep.mubr.f32.mxu0 %v10341_v7 }
  0xb7   : > { %7238 = vmatmul.mubr.f32.gmra.mrb[20].mxu0 %v10346_v8 }
  0xb8   : > { %7240 = vmatprep.mubr.f32.mxu0 %v10349_v9 }
  0xbb   : > { %7241 = vmatmul.mubr.f32.gmra.mrb[22].mxu0 %v10354_v10 }
  0xbc   : > { %7243 = vmatprep.mubr.f32.mxu0 %v10357_v11 }
  0xbf   : > { %7244 = vmatmul.mubr.f32.gmra.mrb[24].mxu0 %v10362_v12 }
  0xc0   : > { %7246 = vmatprep.mubr.f32.mxu0 %v10365_v13 }
  0xc3   : > { %7247 = vmatmul.mubr.f32.gmra.mrb[26].mxu0 %v10370_v14 }
  0xc4   : > { %7249 = vmatprep.mubr.f32.mxu0 %v10373_v15 }
  0xc7   : > { %7250 = vmatmul.mubr.f32.gmra.mrb[28].mxu0 %v10378_v16 }
  0xc8   : > { %7252 = vmatprep.mubr.f32.mxu0 %v10381_v17 }
  0xcb   : > { %7253 = vmatmul.mubr.f32.gmra.mrb[30].mxu0 %v10386_v18 }
  0xcc   : > { %7287 = vmatprep.mubr.f32.mxu0 %v584_v19  ;;  %v10439_v19 = vld [vmem:[%s10257_s10 + $0xa9] sm:$0xff] }
  0xcf   : > { %7288 = vmatmul.mubr.f32.vlgmr.msra.gmra.mrb[0].mxu0 %v585_v22  ;;  %v1231_v22 = vld [vmem:[#allocation6 + $0x188] sm:$0xff] }
  0xd0   : > { %8682 = vmatpush3.bf16.msra.mxu0 %v8679_v3  ;;  %7290 = vmatprep.mubr.f32.mxu0 %v10392_v23  ;;  %v10436_v3 = vld [vmem:[%s10257_s10 + $0x99] sm:$0xff]  ;;  %v8711_v26 = vpack.c.bf16 %v1231_v22, %v1230_v21 }
  0xd1   : > { %8684 = vmatprep.subr.bf16.mxu0 %v8683_v24  ;;  %v1232_v21 = vld [vmem:[#allocation6 + $0x190] sm:$0xff]  ;;  %v1233_v22 = vld [vmem:[#allocation6 + $0x198] sm:$0xff] }
  0xd3   : > { %7291 = vmatmul.mubr.f32.gmra.mrb[2].mxu0 %v10396_v27 }
  0xd4   : > { %7293 = vmatprep.mubr.f32.mxu0 %v10399_v28  ;;  %8686 = vmatpush3.bf16.msra.mxu0 %v8683_v24  ;;  %v10444_v24 = vld [vmem:[%s10257_s10 + $0xb1] sm:$0xff] }
  0xd5   : > { %8688 = vmatprep.subr.bf16.mxu0 %v8687_v29 }
  0xd7   : > { %7294 = vmatmul.mubr.f32.gmra.mrb[4].mxu0 %v10404_v33 }
  0xd8   : > { %7296 = vmatprep.mubr.f32.mxu0 %v10407_v34  ;;  %8690 = vmatpush3.bf16.msra.mxu0 %v8687_v29  ;;  %v10452_v29 = vld [vmem:[%s10257_s10 + $0xc9] sm:$0xff] }
  0xd9   : > { %8692 = vmatprep.subr.bf16.mxu0 %v8691_v37 }
  0xdb   : > { %7297 = vmatmul.mubr.f32.gmra.mrb[6].mxu0 %v10412_v42 }
  0xdc   : > { %7299 = vmatprep.mubr.f32.mxu0 %v10415_v43  ;;  %8694 = vmatpush3.bf16.msra.mxu0 %v8691_v37  ;;  %v10463_v37 = vld [vmem:[%s10257_s10 + $0xf1] sm:$0xff] }
  0xdd   : > { %8696 = vmatprep.subr.bf16.mxu0 %v8695_v44 }
  0xdf   : > { %7300 = vmatmul.mubr.f32.gmra.mrb[8].mxu0 %v10420_v49 }
  0xe0   : > { %7302 = vmatprep.mubr.f32.mxu0 %v10423_v52  ;;  %8698 = vmatpush3.bf16.msra.mxu0 %v8695_v44  ;;  %v10476_v44 = vld [vmem:[%s10257_s10 + $0x111] sm:$0xff] }
  0xe1   : > { %8700 = vmatprep.subr.bf16.mxu0 %v8699_v53  ;;  %11614 = vst [vmem:[#allocation13_spill] sm:$0xff] %v10476_v44 }
  0xe3   : > { %7303 = vmatmul.mubr.f32.gmra.mrb[10].mxu0 %v10428_v58 }
  0xe4   : > { %7305 = vmatprep.mubr.f32.mxu0 %v10431_v59  ;;  %8702 = vmatpush3.bf16.msra.mxu0 %v8699_v53  ;;  %v10487_v53 = vld [vmem:[%s10257_s10 + $0x139] sm:$0xff] }
  0xe5   : > { %8704 = vmatprep.subr.bf16.mxu0 %v8703_v62  ;;  %11617 = vst [vmem:[#allocation16_spill] sm:$0xff] %v10487_v53 }
  0xe7   : > { %7306 = vmatmul.mubr.f32.gmra.mrb[12].mxu0 %v10436_v3 }
  0xe8   : > { %7308 = vmatprep.mubr.f32.mxu0 %v10439_v19  ;;  %8706 = vmatpush3.bf16.msra.mxu0 %v8703_v62  ;;  %v10500_v62 = vld [vmem:[%s10257_s10 + $0x159] sm:$0xff] }
  0xe9   : > { %8708 = vmatprep.subr.bf16.mxu0 %v8707_v20  ;;  %11620 = vst [vmem:[#allocation19_spill] sm:$0xff] %v10500_v62 }
  0xeb   : > { %7309 = vmatmul.mubr.f32.gmra.mrb[14].mxu0 %v10444_v24 }
  0xec   : > { %7311 = vmatprep.mubr.f32.mxu0 %v10447_v25  ;;  %8710 = vmatpush3.bf16.msra.mxu0 %v8707_v20  ;;  %v890_v20 = vld [vmem:[%s10257_s10 + $0x2] sm:$0xff] }
  0xed   : > { %8712 = vmatprep.subr.bf16.mxu0 %v8711_v26 }
  0xef   : > { %7312 = vmatmul.mubr.f32.gmra.mrb[16].mxu0 %v10452_v29 }
  0xf0   : > { %7314 = vmatprep.mubr.f32.mxu0 %v10455_v30 }
  0xf3   : > { %7315 = vmatmul.mubr.f32.gmra.mrb[18].mxu0 %v10460_v32 }
  0xf4   : > { %7317 = vmatprep.mubr.f32.mxu0 %v10463_v37 }
  0xf7   : > { %7318 = vmatmul.mubr.f32.gmra.mrb[20].mxu0 %v10468_v38 }
  0xf8   : > { %7320 = vmatprep.mubr.f32.mxu0 %v10471_v39 }
  0xfb   : > { %7321 = vmatmul.mubr.f32.gmra.mrb[22].mxu0 %v10476_v44  ;;  %v1237_v44 = vld [vmem:[#allocation6 + $0x1b8] sm:$0xff] }
  0xfc   : > { %7323 = vmatprep.mubr.f32.mxu0 %v10479_v47  ;;  %v10521_v47 = vld [vmem:[%s10257_s10 + $0x32] sm:$0xff] }
  0xfd   : > { %11625 = vst [vmem:[#allocation24_spill] sm:$0xff] %v10521_v47 }
  0xff   : > { %7324 = vmatmul.mubr.f32.gmra.mrb[24].mxu0 %v10484_v48  ;;  %v1234_v48 = vld [vmem:[#allocation6 + $0x1a0] sm:$0xff] }
 0x100   : > { %7326 = vmatprep.mubr.f32.mxu0 %v10487_v53  ;;  %v8715_v53 = vpack.c.bf16 %v1233_v22, %v1232_v21  ;;  %v10526_v21 = vld [vmem:[%s10257_s10 + $0x3a] sm:$0xff] }
 0x101   : > { %11626 = vst [vmem:[#allocation25_spill] sm:$0xff] %v10526_v21  ;;  %v1238_v22 = vld [vmem:[#allocation6 + $0x1c0] sm:$0xff] }
 0x103   : > { %7327 = vmatmul.mubr.f32.gmra.mrb[26].mxu0 %v10492_v54  ;;  %v891_v54 = vld [vmem:[%s10257_s10 + $0xa] sm:$0xff] }
 0x104   : > { %7329 = vmatprep.mubr.f32.mxu0 %v10495_v57  ;;  %v10514_v57 = vld [vmem:[%s10257_s10 + $0x1a] sm:$0xff] }
 0x105   : > { %11623 = vst [vmem:[#allocation22_spill] sm:$0xff] %v10514_v57 }
 0x107   : > { %7330 = vmatmul.mubr.f32.gmra.mrb[28].mxu0 %v10500_v62  ;;  %v1235_v62 = vld [vmem:[#allocation6 + $0x1a8] sm:$0xff] }
 0x108   : > { %7332 = vmatprep.mubr.f32.mxu0 %v10503_v63  ;;  %v10518_v63 = vld [vmem:[%s10257_s10 + $0x22] sm:$0xff] }
 0x109   : > { %11624 = vst [vmem:[#allocation23_spill] sm:$0xff] %v10518_v63 }
 0x10b   : > { %7333 = vmatmul.mubr.f32.gmra.mrb[30].mxu0 %v10508_v0  ;;  %v8719_v0 = vpack.c.bf16 %v1235_v62, %v1234_v48  ;;  %v10534_v48 = vld [vmem:[%s10257_s10 + $0x52] sm:$0xff]  ;;  %v10537_v62 = vld [vmem:[%s10257_s10 + $0x62] sm:$0xff] }
 0x10c   : > { %7367 = vmatprep.mubr.f32.mxu0 %v890_v20  ;;  %v1236_v20 = vld [vmem:[#allocation6 + $0x1b0] sm:$0xff]  ;;  %11628 = vst [vmem:[#allocation27_spill] sm:$0xff] %v10534_v48  ;;  %11629 = vst [vmem:[#allocation28_spill] sm:$0xff] %v10537_v62 }
 0x10f   : > { %7368 = vmatmul.mubr.f32.vlgmr.msra.gmra.mrb[0].mxu0 %v891_v54  ;;  %v8723_v54 = vpack.c.bf16 %v1237_v44, %v1236_v20  ;;  %v10542_v44 = vld [vmem:[%s10257_s10 + $0x6a] sm:$0xff]  ;;  %v10545_v20 = vld [vmem:[%s10257_s10 + $0x7a] sm:$0xff] }
 0x110   : > { %8714 = vmatpush3.bf16.msra.mxu0 %v8711_v26  ;;  %7370 = vmatprep.mubr.f32.mxu0 %v10514_v57  ;;  %v10529_v26 = vld [vmem:[%s10257_s10 + $0x4a] sm:$0xff]  ;;  %11630 = vst [vmem:[#allocation29_spill] sm:$0xff] %v10542_v44  ;;  %11631 = vst [vmem:[#allocation30_spill] sm:$0xff] %v10545_v20 }
 0x111   : > { %8716 = vmatprep.subr.bf16.mxu0 %v8715_v53  ;;  %11627 = vst [vmem:[#allocation26_spill] sm:$0xff] %v10529_v26  ;;  %v1239_v57 = vld [vmem:[#allocation6 + $0x1c8] sm:$0xff] }
 0x113   : > { %7371 = vmatmul.mubr.f32.gmra.mrb[2].mxu0 %v10518_v63  ;;  %v1241_v63 = vld [vmem:[#allocation6 + $0x1d8] sm:$0xff] }
 0x114   : > { %7373 = vmatprep.mubr.f32.mxu0 %v10521_v47  ;;  %8718 = vmatpush3.bf16.msra.mxu0 %v8715_v53  ;;  %v8727_v53 = vpack.c.bf16 %v1239_v57, %v1238_v22  ;;  %v1240_v47 = vld [vmem:[#allocation6 + $0x1d0] sm:$0xff] }
 0x115   : > { %8720 = vmatprep.subr.bf16.mxu0 %v8719_v0  ;;  %v10550_v57 = vld [vmem:[%s10257_s10 + $0x82] sm:$0xff]  ;;  %v10553_v22 = vld [vmem:[%s10257_s10 + $0x92] sm:$0xff] }
 0x117   : > { %7374 = vmatmul.mubr.f32.gmra.mrb[4].mxu0 %v10526_v21  ;;  %v1243_v21 = vld [vmem:[#allocation6 + $0x1e8] sm:$0xff] }
 0x118   : > { %7376 = vmatprep.mubr.f32.mxu0 %v10529_v26  ;;  %8722 = vmatpush3.bf16.msra.mxu0 %v8719_v0  ;;  %v8731_v0 = vpack.c.bf16 %v1241_v63, %v1240_v47  ;;  %v1242_v26 = vld [vmem:[#allocation6 + $0x1e0] sm:$0xff] }
 0x119   : > { %8724 = vmatprep.subr.bf16.mxu0 %v8723_v54  ;;  %v10558_v47 = vld [vmem:[%s10257_s10 + $0x9a] sm:$0xff]  ;;  %v10561_v63 = vld [vmem:[%s10257_s10 + $0xaa] sm:$0xff] }
 0x11a   : > { %11632 = vst [vmem:[#allocation31_spill] sm:$0xff] %v10561_v63 }
 0x11b   : > { %7377 = vmatmul.mubr.f32.gmra.mrb[6].mxu0 %v10534_v48  ;;  %v1245_v48 = vld [vmem:[#allocation6 + $0x1f8] sm:$0xff] }
 0x11c   : > { %7379 = vmatprep.mubr.f32.mxu0 %v10537_v62  ;;  %8726 = vmatpush3.bf16.msra.mxu0 %v8723_v54  ;;  %v8735_v54 = vpack.c.bf16 %v1243_v21, %v1242_v26  ;;  %v1244_v62 = vld [vmem:[#allocation6 + $0x1f0] sm:$0xff] }
 0x11d   : > { %8728 = vmatprep.subr.bf16.mxu0 %v8727_v53  ;;  %v10566_v21 = vld [vmem:[%s10257_s10 + $0xb2] sm:$0xff]  ;;  %v10569_v26 = vld [vmem:[%s10257_s10 + $0xc2] sm:$0xff] }
 0x11e   : > { %11633 = vst [vmem:[#allocation32_spill] sm:$0xff] %v10566_v21  ;;  %11634 = vst [vmem:[#allocation33_spill] sm:$0xff] %v10569_v26 }
 0x11f   : > { %7380 = vmatmul.mubr.f32.gmra.mrb[8].mxu0 %v10542_v44  ;;  %v1537_v44 = vld [vmem:[#allocation6 + $0x208] sm:$0xff] }
 0x120   : > { %7382 = vmatprep.mubr.f32.mxu0 %v10545_v20  ;;  %8730 = vmatpush3.bf16.msra.mxu0 %v8727_v53  ;;  %v8739_v53 = vpack.c.bf16 %v1245_v48, %v1244_v62  ;;  %v1536_v20 = vld [vmem:[#allocation6 + $0x200] sm:$0xff] }
 0x121   : > { %8732 = vmatprep.subr.bf16.mxu0 %v8731_v0  ;;  %v10574_v48 = vld [vmem:[%s10257_s10 + $0xca] sm:$0xff]  ;;  %v10577_v62 = vld [vmem:[%s10257_s10 + $0xda] sm:$0xff] }
 0x122   : > { %11635 = vst [vmem:[#allocation34_spill] sm:$0xff] %v10574_v48  ;;  %11636 = vst [vmem:[#allocation35_spill] sm:$0xff] %v10577_v62 }
 0x123   : > { %7383 = vmatmul.mubr.f32.gmra.mrb[10].mxu0 %v10550_v57 }
 0x124   : > { %7385 = vmatprep.mubr.f32.mxu0 %v10553_v22  ;;  %8734 = vmatpush3.bf16.msra.mxu0 %v8731_v0  ;;  %v8743_v0 = vpack.c.bf16 %v1537_v44, %v1536_v20  ;;  %v10585_v44 = vld [vmem:[%s10257_s10 + $0xf2] sm:$0xff]  ;;  %v10590_v20 = vld [vmem:[%s10257_s10 + $0xfa] sm:$0xff] }
 0x125   : > { %8736 = vmatprep.subr.bf16.mxu0 %v8735_v54  ;;  %11638 = vst [vmem:[#allocation37_spill] sm:$0xff] %v10585_v44  ;;  %11639 = vst [vmem:[#allocation38_spill] sm:$0xff] %v10590_v20 }
 0x127   : > { %7386 = vmatmul.mubr.f32.gmra.mrb[12].mxu0 %v10558_v47 }
 0x128   : > { %7388 = vmatprep.mubr.f32.mxu0 %v10561_v63  ;;  %8738 = vmatpush3.bf16.msra.mxu0 %v8735_v54  ;;  %v10582_v54 = vld [vmem:[%s10257_s10 + $0xe2] sm:$0xff] }
 0x129   : > { %8740 = vmatprep.subr.bf16.mxu0 %v8739_v53  ;;  %11637 = vst [vmem:[#allocation36_spill] sm:$0xff] %v10582_v54  ;;  %v1541_v63 = vld [vmem:[#allocation6 + $0x228] sm:$0xff] }
 0x12b   : > { %7389 = vmatmul.mubr.f32.gmra.mrb[14].mxu0 %v10566_v21 }
 0x12c   : > { %7391 = vmatprep.mubr.f32.mxu0 %v10569_v26  ;;  %8742 = vmatpush3.bf16.msra.mxu0 %v8739_v53  ;;  %v10593_v53 = vld [vmem:[%s10257_s10 + $0x10a] sm:$0xff]  ;;  %v10622_v26 = vld [vmem:[%s10257_s10 + $0x15a] sm:$0xff] }
 0x12d   : > { %8744 = vmatprep.subr.bf16.mxu0 %v8743_v0  ;;  %11640 = vst [vmem:[#allocation39_spill] sm:$0xff] %v10593_v53  ;;  %11647 = vst [vmem:[#allocation46_spill] sm:$0xff] %v10622_v26 }
 0x12f   : > { %7392 = vmatmul.mubr.f32.gmra.mrb[16].mxu0 %v10574_v48  ;;  %v10601_v48 = vld [vmem:[%s10257_s10 + $0x122] sm:$0xff] }
 0x130   : > { %7394 = vmatprep.mubr.f32.mxu0 %v10577_v62  ;;  %v10598_v62 = vld [vmem:[%s10257_s10 + $0x112] sm:$0xff]  ;;  %11642 = vst [vmem:[#allocation41_spill] sm:$0xff] %v10601_v48 }
 0x131   : > { %11641 = vst [vmem:[#allocation40_spill] sm:$0xff] %v10598_v62 }
 0x133   : > { %7395 = vmatmul.mubr.f32.gmra.mrb[18].mxu0 %v10582_v54  ;;  %v10609_v54 = vld [vmem:[%s10257_s10 + $0x13a] sm:$0xff] }
 0x134   : > { %7397 = vmatprep.mubr.f32.mxu0 %v10585_v44  ;;  %v10606_v44 = vld [vmem:[%s10257_s10 + $0x12a] sm:$0xff]  ;;  %11644 = vst [vmem:[#allocation43_spill] sm:$0xff] %v10609_v54 }
 0x135   : > { %11643 = vst [vmem:[#allocation42_spill] sm:$0xff] %v10606_v44 }
 0x137   : > { %7398 = vmatmul.mubr.f32.gmra.mrb[20].mxu0 %v10590_v20  ;;  %v10614_v20 = vld [vmem:[%s10257_s10 + $0x142] sm:$0xff] }
 0x138   : > { %7400 = vmatprep.mubr.f32.mxu0 %v10593_v53  ;;  %11645 = vst [vmem:[#allocation44_spill] sm:$0xff] %v10614_v20  ;;  %v10617_v53 = vld [vmem:[%s10257_s10 + $0x152] sm:$0xff] }
 0x139   : > { %11646 = vst [vmem:[#allocation45_spill] sm:$0xff] %v10617_v53 }
 0x13b   : > { %7401 = vmatmul.mubr.f32.gmra.mrb[22].mxu0 %v10598_v62  ;;  %v10625_v62 = vld [vmem:[%s10257_s10 + $0x16a] sm:$0xff] }
 0x13c   : > { %7403 = vmatprep.mubr.f32.mxu0 %v10601_v48  ;;  %11648 = vst [vmem:[#allocation47_spill] sm:$0xff] %v10625_v62  ;;  %v10630_v48 = vld [vmem:[%s10257_s10 + $0x172] sm:$0xff] }
 0x13d   : > { %11649 = vst [vmem:[#allocation48_spill] sm:$0xff] %v10630_v48 }
 0x13f   : > { %7404 = vmatmul.mubr.f32.gmra.mrb[24].mxu0 %v10606_v44  ;;  %v1538_v44 = vld [vmem:[#allocation6 + $0x210] sm:$0xff] }
 0x140   : > { %7406 = vmatprep.mubr.f32.mxu0 %v10609_v54  ;;  %v1539_v54 = vld [vmem:[#allocation6 + $0x218] sm:$0xff] }
 0x141   : > { %v8747_v21 = vpack.c.bf16 %v1539_v54, %v1538_v44  ;;  %v1545_v54 = vld [vmem:[#allocation6 + $0x248] sm:$0xff]  ;;  %v11660_v44 = vld [vmem:[#allocation23_spill] sm:$0xff] }
 0x143   : > { %7407 = vmatmul.mubr.f32.gmra.mrb[26].mxu0 %v10614_v20  ;;  %v1540_v20 = vld [vmem:[#allocation6 + $0x220] sm:$0xff] }
 0x144   : > { %7409 = vmatprep.mubr.f32.mxu0 %v10617_v53  ;;  %v1542_v53 = vld [vmem:[#allocation6 + $0x230] sm:$0xff] }
 0x147   : > { %7410 = vmatmul.mubr.f32.gmra.mrb[28].mxu0 %v10622_v26  ;;  %v8751_v26 = vpack.c.bf16 %v1541_v63, %v1540_v20  ;;  %v1547_v63 = vld [vmem:[#allocation6 + $0x258] sm:$0xff] }
 0x148   : > { %7412 = vmatprep.mubr.f32.mxu0 %v10625_v62  ;;  %v1543_v62 = vld [vmem:[#allocation6 + $0x238] sm:$0xff] }
 0x149   : > { %v11661_v20 = vld [vmem:[#allocation24_spill] sm:$0xff] }
 0x14b   : > { %7413 = vmatmul.mubr.f32.gmra.mrb[30].mxu0 %v10630_v48  ;;  %v8755_v48 = vpack.c.bf16 %v1543_v62, %v1542_v53  ;;  %v2154_v62 = vld [vmem:[#allocation6 + $0x328] sm:$0xff] }
 0x14c   : > { %7447 = vmatprep.mubr.f32.mxu0 %v10270_v31  ;;  %v1544_v31 = vld [vmem:[#allocation6 + $0x240] sm:$0xff] }
 0x14f   : > { %7448 = vmatmul.mubr.f32.vlgmr.msra.gmra.mrb[0].mxu0 %v10274_v35  ;;  %v8759_v35 = vpack.c.bf16 %v1545_v54, %v1544_v31  ;;  %v2155_v31 = vld [vmem:[#allocation6 + $0x330] sm:$0xff]  ;;  %v2156_v54 = vld [vmem:[#allocation6 + $0x338] sm:$0xff] }
 0x150   : > { %8746 = vmatpush3.bf16.msra.mxu0 %v8743_v0  ;;  %7450 = vmatprep.mubr.f32.mxu0 %v10277_v36  ;;  %v1546_v36 = vld [vmem:[#allocation6 + $0x250] sm:$0xff]  ;;  %v1843_v0 = vld [vmem:[#allocation6 + $0x288] sm:$0xff] }
 0x151   : > { %8748 = vmatprep.subr.bf16.mxu0 %v8747_v21 }
 0x153   : > { %7451 = vmatmul.mubr.f32.gmra.mrb[2].mxu0 %v10282_v40  ;;  %v8763_v40 = vpack.c.bf16 %v1547_v63, %v1546_v36  ;;  %v11663_v36 = vld [vmem:[#allocation26_spill] sm:$0xff]  ;;  %v8819_v63 = vpack.c.bf16 %v2156_v54, %v2155_v31  ;;  %v2463_v31 = vld [vmem:[#allocation6 + $0x3c0] sm:$0xff] }
 0x154   : > { %7453 = vmatprep.mubr.f32.mxu0 %v10285_v41  ;;  %8750 = vmatpush3.bf16.msra.mxu0 %v8747_v21  ;;  %v1548_v41 = vld [vmem:[#allocation6 + $0x260] sm:$0xff]  ;;  %v1549_v21 = vld [vmem:[#allocation6 + $0x268] sm:$0xff] }
 0x155   : > { %8752 = vmatprep.subr.bf16.mxu0 %v8751_v26  ;;  %v2464_v54 = vld [vmem:[#allocation6 + $0x3c8] sm:$0xff] }
 0x157   : > { %7454 = vmatmul.mubr.f32.gmra.mrb[4].mxu0 %v10290_v45  ;;  %v8767_v45 = vpack.c.bf16 %v1549_v21, %v1548_v41  ;;  %v2158_v41 = vld [vmem:[#allocation6 + $0x348] sm:$0xff]  ;;  %v11664_v21 = vld [vmem:[#allocation27_spill] sm:$0xff] }
 0x158   : > { %7456 = vmatprep.mubr.f32.mxu0 %v10293_v46  ;;  %8754 = vmatpush3.bf16.msra.mxu0 %v8751_v26  ;;  %v1550_v46 = vld [vmem:[#allocation6 + $0x270] sm:$0xff]  ;;  %v1551_v26 = vld [vmem:[#allocation6 + $0x278] sm:$0xff] }
 0x159   : > { %8756 = vmatprep.subr.bf16.mxu0 %v8755_v48 }
 0x15b   : > { %7457 = vmatmul.mubr.f32.gmra.mrb[6].mxu0 %v10298_v50  ;;  %v8771_v50 = vpack.c.bf16 %v1551_v26, %v1550_v46  ;;  %v2159_v26 = vld [vmem:[#allocation6 + $0x350] sm:$0xff] }
 0x15c   : > { %7459 = vmatprep.mubr.f32.mxu0 %v10301_v51  ;;  %8758 = vmatpush3.bf16.msra.mxu0 %v8755_v48  ;;  %v1842_v51 = vld [vmem:[#allocation6 + $0x280] sm:$0xff] }
 0x15d   : > { %8760 = vmatprep.subr.bf16.mxu0 %v8759_v35  ;;  %v2153_v48 = vld [vmem:[#allocation6 + $0x320] sm:$0xff] }
 0x15e   : > { %v8815_v53 = vpack.c.bf16 %v2154_v62, %v2153_v48  ;;  %v2461_v48 = vld [vmem:[#allocation6 + $0x3b0] sm:$0xff]  ;;  %v2462_v62 = vld [vmem:[#allocation6 + $0x3b8] sm:$0xff] }
 0x15f   : > { %7460 = vmatmul.mubr.f32.gmra.mrb[8].mxu0 %v10306_v55  ;;  %v8775_v55 = vpack.c.bf16 %v1843_v0, %v1842_v51  ;;  %v11666_v51 = vld [vmem:[#allocation29_spill] sm:$0xff]  ;;  %v11667_v0 = vld [vmem:[#allocation30_spill] sm:$0xff] }
 0x160   : > { %7462 = vmatprep.mubr.f32.mxu0 %v10309_v56  ;;  %8762 = vmatpush3.bf16.msra.mxu0 %v8759_v35  ;;  %v10663_v56 = vld [vmem:[%s10257_s10 + $0x180] sm:$0xff] }
 0x161   : > { %8764 = vmatprep.subr.bf16.mxu0 %v8763_v40  ;;  %v11662_v35 = vld [vmem:[#allocation25_spill] sm:$0xff] }
 0x163   : > { %7463 = vmatmul.mubr.f32.gmra.mrb[10].mxu0 %v10314_v60  ;;  %v10668_v60 = vld [vmem:[%s10257_s10 + $0x188] sm:$0xff] }
 0x164   : > { %7465 = vmatprep.mubr.f32.mxu0 %v10317_v61  ;;  %8766 = vmatpush3.bf16.msra.mxu0 %v8763_v40  ;;  %v1844_v61 = vld [vmem:[#allocation6 + $0x290] sm:$0xff]  ;;  %v2157_v40 = vld [vmem:[#allocation6 + $0x340] sm:$0xff] }
 0x165   : > { %8768 = vmatprep.subr.bf16.mxu0 %v8767_v45  ;;  %v8823_v46 = vpack.c.bf16 %v2158_v41, %v2157_v40  ;;  %v2465_v40 = vld [vmem:[#allocation6 + $0x3d0] sm:$0xff]  ;;  %v2466_v41 = vld [vmem:[#allocation6 + $0x3d8] sm:$0xff] }
 0x167   : > { %7466 = vmatmul.mubr.f32.gmra.mrb[12].mxu0 %v10322_v1  ;;  %v1845_v1 = vld [vmem:[#allocation6 + $0x298] sm:$0xff] }
 0x168   : > { %7468 = vmatprep.mubr.f32.mxu0 %v10325_v2  ;;  %8770 = vmatpush3.bf16.msra.mxu0 %v8767_v45  ;;  %v8779_v2 = vpack.c.bf16 %v1845_v1, %v1844_v61  ;;  %v11665_v45 = vld [vmem:[#allocation28_spill] sm:$0xff]  ;;  %v2161_v61 = vld [vmem:[#allocation6 + $0x360] sm:$0xff]  ;;  %v2162_v1 = vld [vmem:[#allocation6 + $0x368] sm:$0xff] }
 0x169   : > { %8772 = vmatprep.subr.bf16.mxu0 %v8771_v50 }
 0x16b   : > { %7469 = vmatmul.mubr.f32.gmra.mrb[14].mxu0 %v10330_v4  ;;  %v1846_v4 = vld [vmem:[#allocation6 + $0x2a0] sm:$0xff] }
 0x16c   : > { %7471 = vmatprep.mubr.f32.mxu0 %v10333_v5  ;;  %8774 = vmatpush3.bf16.msra.mxu0 %v8771_v50  ;;  %v1847_v5 = vld [vmem:[#allocation6 + $0x2a8] sm:$0xff]  ;;  %v2160_v50 = vld [vmem:[#allocation6 + $0x358] sm:$0xff] }
 0x16d   : > { %8776 = vmatprep.subr.bf16.mxu0 %v8775_v55 }
 0x16f   : > { %7472 = vmatmul.mubr.f32.gmra.mrb[16].mxu0 %v10338_v6  ;;  %v8783_v6 = vpack.c.bf16 %v1847_v5, %v1846_v4  ;;  %v2163_v4 = vld [vmem:[#allocation6 + $0x370] sm:$0xff]  ;;  %v2164_v5 = vld [vmem:[#allocation6 + $0x378] sm:$0xff] }
 0x170   : > { %7474 = vmatprep.mubr.f32.mxu0 %v10341_v7  ;;  %v1848_v7 = vld [vmem:[#allocation6 + $0x2b0] sm:$0xff] }
 0x173   : > { %7475 = vmatmul.mubr.f32.gmra.mrb[18].mxu0 %v10346_v8  ;;  %v1849_v8 = vld [vmem:[#allocation6 + $0x2b8] sm:$0xff] }
 0x174   : > { %7477 = vmatprep.mubr.f32.mxu0 %v10349_v9  ;;  %v8787_v9 = vpack.c.bf16 %v1849_v8, %v1848_v7  ;;  %v8835_v7 = vpack.c.bf16 %v2164_v5, %v2163_v4  ;;  %v2455_v8 = vld [vmem:[#allocation6 + $0x380] sm:$0xff]  ;;  %v6222_v4 = vld [vmem:[%s10257_s10 + $0xd8] sm:$0xff] }
 0x177   : > { %7478 = vmatmul.mubr.f32.gmra.mrb[20].mxu0 %v10354_v10  ;;  %v1850_v10 = vld [vmem:[#allocation6 + $0x2c0] sm:$0xff] }
 0x178   : > { %7480 = vmatprep.mubr.f32.mxu0 %v10357_v11  ;;  %v1851_v11 = vld [vmem:[#allocation6 + $0x2c8] sm:$0xff] }
 0x17b   : > { %7481 = vmatmul.mubr.f32.gmra.mrb[22].mxu0 %v10362_v12  ;;  %v8791_v12 = vpack.c.bf16 %v1851_v11, %v1850_v10  ;;  %v11669_v10 = vld [vmem:[#allocation32_spill] sm:$0xff]  ;;  %v11670_v11 = vld [vmem:[#allocation33_spill] sm:$0xff] }
 0x17c   : > { %7483 = vmatprep.mubr.f32.mxu0 %v10365_v13  ;;  %v1852_v13 = vld [vmem:[#allocation6 + $0x2d0] sm:$0xff] }
 0x17f   : > { %7484 = vmatmul.mubr.f32.gmra.mrb[24].mxu0 %v10370_v14  ;;  %v1853_v14 = vld [vmem:[#allocation6 + $0x2d8] sm:$0xff] }
 0x180   : > { %7486 = vmatprep.mubr.f32.mxu0 %v10373_v15  ;;  %v8795_v15 = vpack.c.bf16 %v1853_v14, %v1852_v13  ;;  %v11674_v13 = vld [vmem:[#allocation37_spill] sm:$0xff]  ;;  %v11675_v14 = vld [vmem:[#allocation38_spill] sm:$0xff] }
 0x183   : > { %7487 = vmatmul.mubr.f32.gmra.mrb[26].mxu0 %v10378_v16  ;;  %v1854_v16 = vld [vmem:[#allocation6 + $0x2e0] sm:$0xff] }
 0x184   : > { %7489 = vmatprep.mubr.f32.mxu0 %v10381_v17  ;;  %v1855_v17 = vld [vmem:[#allocation6 + $0x2e8] sm:$0xff] }
 0x187   : > { %7490 = vmatmul.mubr.f32.gmra.mrb[28].mxu0 %v10386_v18  ;;  %v8799_v18 = vpack.c.bf16 %v1855_v17, %v1854_v16  ;;  %v11677_v16 = vld [vmem:[#allocation40_spill] sm:$0xff]  ;;  %v11678_v17 = vld [vmem:[#allocation41_spill] sm:$0xff] }
 0x188   : > { %7492 = vmatprep.mubr.f32.mxu0 %v10663_v56 }
 0x18b   : > { %7493 = vmatmul.mubr.f32.gmra.mrb[30].mxu0 %v10668_v60 }
 0x18c   : > { %7527 = vmatprep.mubr.f32.mxu0 %v10392_v23  ;;  %v1856_v23 = vld [vmem:[#allocation6 + $0x2f0] sm:$0xff] }
 0x18f   : > { %7528 = vmatmul.mubr.f32.vlgmr.msra.gmra.mrb[0].mxu0 %v10396_v27  ;;  %v1857_v27 = vld [vmem:[#allocation6 + $0x2f8] sm:$0xff] }
 0x190   : > { %8778 = vmatpush3.bf16.msra.mxu0 %v8775_v55  ;;  %7530 = vmatprep.mubr.f32.mxu0 %v10399_v28  ;;  %v8803_v28 = vpack.c.bf16 %v1857_v27, %v1856_v23  ;;  %v8827_v55 = vpack.c.bf16 %v2160_v50, %v2159_v26  ;;  %v11680_v23 = vld [vmem:[#allocation43_spill] sm:$0xff]  ;;  %v11681_v27 = vld [vmem:[#allocation44_spill] sm:$0xff]  ;;  %v2467_v26 = vld [vmem:[#allocation6 + $0x3e0] sm:$0xff] }
 0x191   : > { %8780 = vmatprep.subr.bf16.mxu0 %v8779_v2  ;;  %v2468_v50 = vld [vmem:[#allocation6 + $0x3e8] sm:$0xff] }
 0x193   : > { %7531 = vmatmul.mubr.f32.gmra.mrb[2].mxu0 %v10404_v33  ;;  %v2149_v33 = vld [vmem:[#allocation6 + $0x300] sm:$0xff] }
 0x194   : > { %7533 = vmatprep.mubr.f32.mxu0 %v10407_v34  ;;  %8782 = vmatpush3.bf16.msra.mxu0 %v8779_v2  ;;  %v2150_v34 = vld [vmem:[#allocation6 + $0x308] sm:$0xff]  ;;  %v8831_v2 = vpack.c.bf16 %v2162_v1, %v2161_v61  ;;  %v2469_v61 = vld [vmem:[#allocation6 + $0x3f0] sm:$0xff]  ;;  %v2470_v1 = vld [vmem:[#allocation6 + $0x3f8] sm:$0xff] }
 0x195   : > { %8784 = vmatprep.subr.bf16.mxu0 %v8783_v6  ;;  %v8867_v5 = vpack.c.bf16 %v2470_v1, %v2469_v61  ;;  %v2772_v61 = vld [vmem:[#allocation6 + $0x458] sm:$0xff]  ;;  %v3187_v1 = vld [vmem:[#allocation8 + $0x50] sm:$0xff] }
 0x197   : > { %7534 = vmatmul.mubr.f32.gmra.mrb[4].mxu0 %v10412_v42  ;;  %v8807_v42 = vpack.c.bf16 %v2150_v34, %v2149_v33  ;;  %v11683_v33 = vld [vmem:[#allocation46_spill] sm:$0xff]  ;;  %v11684_v34 = vld [vmem:[#allocation47_spill] sm:$0xff] }
 0x198   : > { %7536 = vmatprep.mubr.f32.mxu0 %v10415_v43  ;;  %8786 = vmatpush3.bf16.msra.mxu0 %v8783_v6  ;;  %v11650_v43 = vld [vmem:[#allocation13_spill] sm:$0xff]  ;;  %v11668_v6 = vld [vmem:[#allocation31_spill] sm:$0xff] }
 0x199   : > { %8788 = vmatprep.subr.bf16.mxu0 %v8787_v9 }
 0x19b   : > { %7537 = vmatmul.mubr.f32.gmra.mrb[6].mxu0 %v10420_v49  ;;  %v11651_v49 = vld [vmem:[#allocation14_spill] sm:$0xff] }
 0x19c   : > { %7539 = vmatprep.mubr.f32.mxu0 %v10423_v52  ;;  %8790 = vmatpush3.bf16.msra.mxu0 %v8787_v9  ;;  %v11652_v52 = vld [vmem:[#allocation15_spill] sm:$0xff]  ;;  %v2456_v9 = vld [vmem:[#allocation6 + $0x388] sm:$0xff] }
 0x19d   : > { %8792 = vmatprep.subr.bf16.mxu0 %v8791_v12 }
 0x19f   : > { %7540 = vmatmul.mubr.f32.gmra.mrb[8].mxu0 %v10428_v58  ;;  %v11653_v58 = vld [vmem:[#allocation16_spill] sm:$0xff] }
 0x1a0   : > { %7542 = vmatprep.mubr.f32.mxu0 %v10431_v59  ;;  %8794 = vmatpush3.bf16.msra.mxu0 %v8791_v12  ;;  %v11654_v59 = vld [vmem:[#allocation17_spill] sm:$0xff]  ;;  %v11672_v12 = vld [vmem:[#allocation35_spill] sm:$0xff] }
 0x1a1   : > { %8796 = vmatprep.subr.bf16.mxu0 %v8795_v15 }
 0x1a3   : > { %7543 = vmatmul.mubr.f32.gmra.mrb[10].mxu0 %v10436_v3  ;;  %v11655_v3 = vld [vmem:[#allocation18_spill] sm:$0xff] }
 0x1a4   : > { %7545 = vmatprep.mubr.f32.mxu0 %v10439_v19  ;;  %8798 = vmatpush3.bf16.msra.mxu0 %v8795_v15  ;;  %v11656_v19 = vld [vmem:[#allocation19_spill] sm:$0xff] }
 0x1a5   : > { %8800 = vmatprep.subr.bf16.mxu0 %v8799_v18  ;;  %v11676_v15 = vld [vmem:[#allocation39_spill] sm:$0xff] }
 0x1a7   : > { %7546 = vmatmul.mubr.f32.gmra.mrb[12].mxu0 %v10444_v24  ;;  %v11657_v24 = vld [vmem:[#allocation20_spill] sm:$0xff] }
 0x1a8   : > { %7548 = vmatprep.mubr.f32.mxu0 %v10447_v25  ;;  %8802 = vmatpush3.bf16.msra.mxu0 %v8799_v18  ;;  %v10701_v25 = vld [vmem:[%s10257_s10 + $0x181] sm:$0xff] }
 0x1a9   : > { %8804 = vmatprep.subr.bf16.mxu0 %v8803_v28  ;;  %v11679_v18 = vld [vmem:[#allocation42_spill] sm:$0xff] }
 0x1ab   : > { %7549 = vmatmul.mubr.f32.gmra.mrb[14].mxu0 %v10452_v29  ;;  %v11658_v29 = vld [vmem:[#allocation21_spill] sm:$0xff] }
 0x1ac   : > { %7551 = vmatprep.mubr.f32.mxu0 %v10455_v30  ;;  %8806 = vmatpush3.bf16.msra.mxu0 %v8803_v28  ;;  %v10706_v30 = vld [vmem:[%s10257_s10 + $0x189] sm:$0xff] }
 0x1ad   : > { %8808 = vmatprep.subr.bf16.mxu0 %v8807_v42  ;;  %v11682_v28 = vld [vmem:[#allocation45_spill] sm:$0xff] }
 0x1af   : > { %7552 = vmatmul.mubr.f32.gmra.mrb[16].mxu0 %v10460_v32  ;;  %v2151_v32 = vld [vmem:[#allocation6 + $0x310] sm:$0xff] }
 0x1b0   : > { %7554 = vmatprep.mubr.f32.mxu0 %v10463_v37  ;;  %v2152_v37 = vld [vmem:[#allocation6 + $0x318] sm:$0xff] }
 0x1b3   : > { %7555 = vmatmul.mubr.f32.gmra.mrb[18].mxu0 %v10468_v38  ;;  %v11659_v38 = vld [vmem:[#allocation22_spill] sm:$0xff] }
 0x1b4   : > { %7557 = vmatprep.mubr.f32.mxu0 %v10471_v39  ;;  %v8811_v39 = vpack.c.bf16 %v2152_v37, %v2151_v32  ;;  %v2460_v32 = vld [vmem:[#allocation6 + $0x3a8] sm:$0xff]  ;;  %v6211_v37 = vld [vmem:[%s10257_s10 + $0x50] sm:$0xff] }
 0x1b7   : > { %7558 = vmatmul.mubr.f32.gmra.mrb[20].mxu0 %v11650_v43  ;;  %v11685_v43 = vld [vmem:[#allocation48_spill] sm:$0xff] }
 0x1b8   : > { %7560 = vmatprep.mubr.f32.mxu0 %v11651_v49  ;;  %v10744_v49 = vld [vmem:[%s10257_s10 + $0x18a] sm:$0xff] }
 0x1bb   : > { %7561 = vmatmul.mubr.f32.gmra.mrb[22].mxu0 %v11652_v52  ;;  %v6208_v52 = vld [vmem:[%s10257_s10 + $0x30] sm:$0xff] }
 0x1bc   : > { %7563 = vmatprep.mubr.f32.mxu0 %v11653_v58  ;;  %v2457_v58 = vld [vmem:[#allocation6 + $0x390] sm:$0xff] }
 0x1bf   : > { %7564 = vmatmul.mubr.f32.gmra.mrb[24].mxu0 %v11654_v59  ;;  %v2458_v59 = vld [vmem:[#allocation6 + $0x398] sm:$0xff] }
 0x1c0   : > { %7566 = vmatprep.mubr.f32.mxu0 %v11655_v3  ;;  %v6209_v3 = vld [vmem:[%s10257_s10 + $0x38] sm:$0xff] }
 0x1c3   : > { %7567 = vmatmul.mubr.f32.gmra.mrb[26].mxu0 %v11656_v19  ;;  %v6210_v19 = vld [vmem:[%s10257_s10 + $0x48] sm:$0xff] }
 0x1c4   : > { %7569 = vmatprep.mubr.f32.mxu0 %v11657_v24  ;;  %v8843_v24 = vpack.c.bf16 %v2458_v59, %v2457_v58  ;;  %v3179_v58 = vld [vmem:[#allocation8 + $0x10] sm:$0xff] }
 0x1c5   : > { %v6241_v59 = vld [vmem:[%s10257_s10 + $0x39] sm:$0xff] }
 0x1c7   : > { %7570 = vmatmul.mubr.f32.gmra.mrb[28].mxu0 %v11658_v29  ;;  %v2459_v29 = vld [vmem:[#allocation6 + $0x3a0] sm:$0xff] }
 0x1c8   : > { %7572 = vmatprep.mubr.f32.mxu0 %v10701_v25 }
 0x1cb   : > { %7573 = vmatmul.mubr.f32.gmra.mrb[30].mxu0 %v10706_v30 }
 0x1cc   : > { %7607 = vmatprep.mubr.f32.mxu0 %v11659_v38  ;;  %v6212_v38 = vld [vmem:[%s10257_s10 + $0x60] sm:$0xff] }
 0x1cf   : > { %7608 = vmatmul.mubr.f32.vlgmr.msra.gmra.mrb[0].mxu0 %v11660_v44  ;;  %v6213_v44 = vld [vmem:[%s10257_s10 + $0x68] sm:$0xff] }
 0x1d0   : > { %8810 = vmatpush3.bf16.msra.mxu0 %v8807_v42  ;;  %7610 = vmatprep.mubr.f32.mxu0 %v11661_v20  ;;  %v10739_v42 = vld [vmem:[%s10257_s10 + $0x182] sm:$0xff]  ;;  %v6214_v20 = vld [vmem:[%s10257_s10 + $0x78] sm:$0xff] }
 0x1d1   : > { %8812 = vmatprep.subr.bf16.mxu0 %v8811_v39 }
 0x1d3   : > { %7611 = vmatmul.mubr.f32.gmra.mrb[2].mxu0 %v11662_v35  ;;  %v6215_v35 = vld [vmem:[%s10257_s10 + $0x80] sm:$0xff] }
 0x1d4   : > { %7613 = vmatprep.mubr.f32.mxu0 %v11663_v36  ;;  %8814 = vmatpush3.bf16.msra.mxu0 %v8811_v39  ;;  %v8847_v39 = vpack.c.bf16 %v2460_v32, %v2459_v29  ;;  %v6216_v36 = vld [vmem:[%s10257_s10 + $0x90] sm:$0xff] }
 0x1d5   : > { %8816 = vmatprep.subr.bf16.mxu0 %v8815_v53  ;;  %v2765_v29 = vld [vmem:[#allocation6 + $0x420] sm:$0xff] }
 0x1d7   : > { %7614 = vmatmul.mubr.f32.gmra.mrb[4].mxu0 %v11664_v21  ;;  %v6217_v21 = vld [vmem:[%s10257_s10 + $0x98] sm:$0xff] }
 0x1d8   : > { %7616 = vmatprep.mubr.f32.mxu0 %v11665_v45  ;;  %8818 = vmatpush3.bf16.msra.mxu0 %v8815_v53  ;;  %v8851_v53 = vpack.c.bf16 %v2462_v62, %v2461_v48  ;;  %v6218_v45 = vld [vmem:[%s10257_s10 + $0xa8] sm:$0xff] }
 0x1d9   : > { %8820 = vmatprep.subr.bf16.mxu0 %v8819_v63  ;;  %v6244_v48 = vld [vmem:[%s10257_s10 + $0x61] sm:$0xff] }
 0x1db   : > { %7617 = vmatmul.mubr.f32.gmra.mrb[6].mxu0 %v11666_v51  ;;  %v6219_v51 = vld [vmem:[%s10257_s10 + $0xb0] sm:$0xff] }
 0x1dc   : > { %7619 = vmatprep.mubr.f32.mxu0 %v11667_v0  ;;  %8822 = vmatpush3.bf16.msra.mxu0 %v8819_v63  ;;  %v8855_v63 = vpack.c.bf16 %v2464_v54, %v2463_v31  ;;  %v6220_v0 = vld [vmem:[%s10257_s10 + $0xc0] sm:$0xff]  ;;  %v3184_v54 = vld [vmem:[#allocation8 + $0x38] sm:$0xff] }
 0x1dd   : > { %8824 = vmatprep.subr.bf16.mxu0 %v8823_v46  ;;  %v3183_v31 = vld [vmem:[#allocation8 + $0x30] sm:$0xff] }
 0x1df   : > { %7620 = vmatmul.mubr.f32.gmra.mrb[8].mxu0 %v10550_v57  ;;  %v8839_v57 = vpack.c.bf16 %v2456_v9, %v2455_v8  ;;  %v6223_v8 = vld [vmem:[%s10257_s10 + $0xe0] sm:$0xff]  ;;  %v6224_v9 = vld [vmem:[%s10257_s10 + $0xf0] sm:$0xff] }
 0x1e0   : > { %7622 = vmatprep.mubr.f32.mxu0 %v10553_v22  ;;  %8826 = vmatpush3.bf16.msra.mxu0 %v8823_v46  ;;  %v11671_v22 = vld [vmem:[#allocation34_spill] sm:$0xff]  ;;  %v8859_v46 = vpack.c.bf16 %v2466_v41, %v2465_v40  ;;  %v2769_v40 = vld [vmem:[#allocation6 + $0x440] sm:$0xff]  ;;  %v8915_v41 = vpack.c.bf16 %v3184_v54, %v3183_v31 }
 0x1e1   : > { %8828 = vmatprep.subr.bf16.mxu0 %v8827_v55  ;;  %v6287_v31 = vld [vmem:[%s10257_s10 + $0xe2] sm:$0xff]  ;;  %v6288_v54 = vld [vmem:[%s10257_s10 + $0xf2] sm:$0xff] }
 0x1e3   : > { %7623 = vmatmul.mubr.f32.gmra.mrb[10].mxu0 %v10558_v47  ;;  %v11673_v47 = vld [vmem:[#allocation36_spill] sm:$0xff] }
 0x1e4   : > { %7625 = vmatprep.mubr.f32.mxu0 %v11668_v6  ;;  %8830 = vmatpush3.bf16.msra.mxu0 %v8827_v55  ;;  %v8863_v55 = vpack.c.bf16 %v2468_v50, %v2467_v26  ;;  %v2761_v6 = vld [vmem:[#allocation6 + $0x400] sm:$0xff] }
 0x1e5   : > { %8832 = vmatprep.subr.bf16.mxu0 %v8831_v2  ;;  %v6247_v26 = vld [vmem:[%s10257_s10 + $0x81] sm:$0xff]  ;;  %v6248_v50 = vld [vmem:[%s10257_s10 + $0x91] sm:$0xff] }
 0x1e7   : > { %7626 = vmatmul.mubr.f32.gmra.mrb[12].mxu0 %v11669_v10 }
 0x1e8   : > { %7628 = vmatprep.mubr.f32.mxu0 %v11670_v11  ;;  %8834 = vmatpush3.bf16.msra.mxu0 %v8831_v2  ;;  %v6221_v2 = vld [vmem:[%s10257_s10 + $0xc8] sm:$0xff]  ;;  %v6225_v11 = vld [vmem:[%s10257_s10 + $0xf8] sm:$0xff] }
 0x1e9   : > { %8836 = vmatprep.subr.bf16.mxu0 %v8835_v7 }
 0x1eb   : > { %7629 = vmatmul.mubr.f32.gmra.mrb[14].mxu0 %v11671_v22  ;;  %v6227_v22 = vld [vmem:[%s10257_s10 + $0x110] sm:$0xff] }
 0x1ec   : > { %7631 = vmatprep.mubr.f32.mxu0 %v11672_v12  ;;  %8838 = vmatpush3.bf16.msra.mxu0 %v8835_v7  ;;  %v2762_v7 = vld [vmem:[#allocation6 + $0x408] sm:$0xff]  ;;  %v6228_v12 = vld [vmem:[%s10257_s10 + $0x120] sm:$0xff] }
 0x1ed   : > { %8840 = vmatprep.subr.bf16.mxu0 %v8839_v57  ;;  %v8871_v10 = vpack.c.bf16 %v2762_v7, %v2761_v6 }
 0x1ef   : > { %7632 = vmatmul.mubr.f32.gmra.mrb[16].mxu0 %v11673_v47  ;;  %v6229_v47 = vld [vmem:[%s10257_s10 + $0x128] sm:$0xff] }
 0x1f0   : > { %7634 = vmatprep.mubr.f32.mxu0 %v11674_v13  ;;  %v6230_v13 = vld [vmem:[%s10257_s10 + $0x138] sm:$0xff] }
 0x1f3   : > { %7635 = vmatmul.mubr.f32.gmra.mrb[18].mxu0 %v11675_v14  ;;  %v6231_v14 = vld [vmem:[%s10257_s10 + $0x140] sm:$0xff] }
 0x1f4   : > { %7637 = vmatprep.mubr.f32.mxu0 %v11676_v15  ;;  %v6232_v15 = vld [vmem:[%s10257_s10 + $0x150] sm:$0xff] }
 0x1f7   : > { %7638 = vmatmul.mubr.f32.gmra.mrb[20].mxu0 %v11677_v16  ;;  %v6233_v16 = vld [vmem:[%s10257_s10 + $0x158] sm:$0xff] }
 0x1f8   : > { %7640 = vmatprep.mubr.f32.mxu0 %v11678_v17  ;;  %v6234_v17 = vld [vmem:[%s10257_s10 + $0x168] sm:$0xff] }
 0x1fb   : > { %7641 = vmatmul.mubr.f32.gmra.mrb[22].mxu0 %v11679_v18  ;;  %v6235_v18 = vld [vmem:[%s10257_s10 + $0x170] sm:$0xff] }
 0x1fc   : > { %7643 = vmatprep.mubr.f32.mxu0 %v11680_v23  ;;  %v6238_v23 = vld [vmem:[%s10257_s10 + $0x198] sm:$0xff] }
 0x1ff   : > { %7644 = vmatmul.mubr.f32.gmra.mrb[24].mxu0 %v11681_v27  ;;  %v6239_v27 = vld [vmem:[%s10257_s10 + $0x1a0] sm:$0xff] }
 0x200   : > { %7646 = vmatprep.mubr.f32.mxu0 %v11682_v28  ;;  %v6240_v28 = vld [vmem:[%s10257_s10 + $0x31] sm:$0xff] }
 0x203   : > { %7647 = vmatmul.mubr.f32.gmra.mrb[26].mxu0 %v11683_v33  ;;  %v2763_v33 = vld [vmem:[#allocation6 + $0x410] sm:$0xff] }
 0x204   : > { %7649 = vmatprep.mubr.f32.mxu0 %v11684_v34  ;;  %v2764_v34 = vld [vmem:[#allocation6 + $0x418] sm:$0xff] }
 0x207   : > { %7650 = vmatmul.mubr.f32.gmra.mrb[28].mxu0 %v11685_v43  ;;  %v3177_v43 = vld [vmem:[#allocation8] sm:$0xff] }
 0x208   : > { %7652 = vmatprep.mubr.f32.mxu0 %v10739_v42 }
 0x20b   : > { %7653 = vmatmul.mubr.f32.gmra.mrb[30].mxu0 %v10744_v49 }
 0x20c   : > { %7687 = vmatprep.mubr.f32.mxu0 %v6208_v52  ;;  %v3178_v52 = vld [vmem:[#allocation8 + $0x8] sm:$0xff] }
 0x20f   : > { %7688 = vmatmul.mubr.f32.vlgmr.msra.gmra.mrb[0].mxu0 %v6209_v3  ;;  %v8903_v3 = vpack.c.bf16 %v3178_v52, %v3177_v43  ;;  %v6264_v43 = vld [vmem:[%s10257_s10 + $0x151] sm:$0xff]  ;;  %v6265_v52 = vld [vmem:[%s10257_s10 + $0x159] sm:$0xff] }
 0x210   : > { %8842 = vmatpush3.bf16.msra.mxu0 %v8839_v57  ;;  %7690 = vmatprep.mubr.f32.mxu0 %v6210_v19  ;;  %v6226_v57 = vld [vmem:[%s10257_s10 + $0x108] sm:$0xff] }
 0x211   : > { %8844 = vmatprep.subr.bf16.mxu0 %v8843_v24  ;;  %v3180_v19 = vld [vmem:[#allocation8 + $0x18] sm:$0xff]  ;;  %8904 = vmatprep.subr.bf16.mxu1 %v8903_v3 }
 0x212   : > { %v8907_v32 = vpack.c.bf16 %v3180_v19, %v3179_v58  ;;  %8906 = vmatpush3.bf16.msra.mxu1 %v8903_v3  ;;  %v6266_v58 = vld [vmem:[%s10257_s10 + $0x169] sm:$0xff]  ;;  %v6270_v3 = vld [vmem:[%s10257_s10 + $0x199] sm:$0xff]  ;;  %v6271_v19 = vld [vmem:[%s10257_s10 + $0x1a1] sm:$0xff] }
 0x213   : > { %7691 = vmatmul.mubr.f32.gmra.mrb[2].mxu0 %v6211_v37  ;;  %v3181_v37 = vld [vmem:[#allocation8 + $0x20] sm:$0xff] }
 0x214   : > { %7693 = vmatprep.mubr.f32.mxu0 %v6212_v38  ;;  %8846 = vmatpush3.bf16.msra.mxu0 %v8843_v24  ;;  %v8875_v24 = vpack.c.bf16 %v2764_v34, %v2763_v33  ;;  %v3182_v38 = vld [vmem:[#allocation8 + $0x28] sm:$0xff] }
 0x215   : > { %8848 = vmatprep.subr.bf16.mxu0 %v8847_v39  ;;  %8908 = vmatprep.subr.bf16.mxu1 %v8907_v32  ;;  %v6262_v33 = vld [vmem:[%s10257_s10 + $0x139] sm:$0xff]  ;;  %v6263_v34 = vld [vmem:[%s10257_s10 + $0x141] sm:$0xff] }
 0x216   : > { %8910 = vmatpush3.bf16.msra.mxu1 %v8907_v32  ;;  %v6275_v32 = vld [vmem:[%s10257_s10 + $0x52] sm:$0xff] }
 0x217   : > { %7694 = vmatmul.mubr.f32.gmra.mrb[4].mxu0 %v6213_v44  ;;  %v2767_v44 = vld [vmem:[#allocation6 + $0x430] sm:$0xff] }
 0x218   : > { %7696 = vmatprep.mubr.f32.mxu0 %v6214_v20  ;;  %8850 = vmatpush3.bf16.msra.mxu0 %v8847_v39  ;;  %v6243_v39 = vld [vmem:[%s10257_s10 + $0x51] sm:$0xff]  ;;  %v8911_v20 = vpack.c.bf16 %v3182_v38, %v3181_v37  ;;  %v6279_v37 = vld [vmem:[%s10257_s10 + $0x82] sm:$0xff] }
 0x219   : > { %8852 = vmatprep.subr.bf16.mxu0 %v8851_v53  ;;  %v6280_v38 = vld [vmem:[%s10257_s10 + $0x92] sm:$0xff] }
 0x21a   : > { %8912 = vmatprep.subr.bf16.mxu1 %v8911_v20 }
 0x21b   : > { %7697 = vmatmul.mubr.f32.gmra.mrb[6].mxu0 %v6215_v35  ;;  %v6245_v35 = vld [vmem:[%s10257_s10 + $0x69] sm:$0xff]  ;;  %8914 = vmatpush3.bf16.msra.mxu1 %v8911_v20 }
 0x21c   : > { %7699 = vmatprep.mubr.f32.mxu0 %v6216_v36  ;;  %8854 = vmatpush3.bf16.msra.mxu0 %v8851_v53  ;;  %v2768_v53 = vld [vmem:[#allocation6 + $0x438] sm:$0xff] }
 0x21d   : > { %8856 = vmatprep.subr.bf16.mxu0 %v8855_v63  ;;  %v6246_v36 = vld [vmem:[%s10257_s10 + $0x79] sm:$0xff]  ;;  %8916 = vmatprep.subr.bf16.mxu1 %v8915_v41  ;;  %v6285_v20 = vld [vmem:[%s10257_s10 + $0xca] sm:$0xff] }
 0x21f   : > { %7700 = vmatmul.mubr.f32.gmra.mrb[8].mxu0 %v6217_v21  ;;  %v2770_v21 = vld [vmem:[#allocation6 + $0x448] sm:$0xff]  ;;  %8918 = vmatpush3.bf16.msra.mxu1 %v8915_v41 }
 0x220   : > { %7702 = vmatprep.mubr.f32.mxu0 %v6218_v45  ;;  %8858 = vmatpush3.bf16.msra.mxu0 %v8855_v63  ;;  %v8883_v63 = vpack.c.bf16 %v2768_v53, %v2767_v44  ;;  %v3185_v45 = vld [vmem:[#allocation8 + $0x40] sm:$0xff] }
 0x221   : > { %8860 = vmatprep.subr.bf16.mxu0 %v8859_v46  ;;  %v6284_v44 = vld [vmem:[%s10257_s10 + $0xc2] sm:$0xff]  ;;  %v6286_v53 = vld [vmem:[%s10257_s10 + $0xda] sm:$0xff]  ;;  %v6293_v41 = vld [vmem:[%s10257_s10 + $0x12a] sm:$0xff] }
 0x223   : > { %7703 = vmatmul.mubr.f32.gmra.mrb[10].mxu0 %v6219_v51  ;;  %v8887_v51 = vpack.c.bf16 %v2770_v21, %v2769_v40  ;;  %v6292_v40 = vld [vmem:[%s10257_s10 + $0x122] sm:$0xff]  ;;  %v6294_v21 = vld [vmem:[%s10257_s10 + $0x13a] sm:$0xff] }
 0x224   : > { %7705 = vmatprep.mubr.f32.mxu0 %v6220_v0  ;;  %8862 = vmatpush3.bf16.msra.mxu0 %v8859_v46  ;;  %v3186_v46 = vld [vmem:[#allocation8 + $0x48] sm:$0xff]  ;;  %v2771_v0 = vld [vmem:[#allocation6 + $0x450] sm:$0xff] }
 0x225   : > { %8864 = vmatprep.subr.bf16.mxu0 %v8863_v55  ;;  %v8891_v6 = vpack.c.bf16 %v2772_v61, %v2771_v0  ;;  %v6302_v0 = vld [vmem:[%s10257_s10 + $0x19a] sm:$0xff] }
 0x226   : > { %v3189_v61 = vld [vmem:[#allocation8 + $0x60] sm:$0xff] }
 0x227   : > { %7706 = vmatmul.mubr.f32.gmra.mrb[12].mxu0 %v6221_v2  ;;  %v3188_v2 = vld [vmem:[#allocation8 + $0x58] sm:$0xff] }
 0x228   : > { %7708 = vmatprep.mubr.f32.mxu0 %v6222_v4  ;;  %8866 = vmatpush3.bf16.msra.mxu0 %v8863_v55  ;;  %v8919_v55 = vpack.c.bf16 %v3186_v46, %v3185_v45  ;;  %v6249_v4 = vld [vmem:[%s10257_s10 + $0x99] sm:$0xff]  ;;  %v8923_v7 = vpack.c.bf16 %v3188_v2, %v3187_v1  ;;  %v6295_v45 = vld [vmem:[%s10257_s10 + $0x142] sm:$0xff] }
 0x229   : > { %8868 = vmatprep.subr.bf16.mxu0 %v8867_v5  ;;  %v6296_v46 = vld [vmem:[%s10257_s10 + $0x152] sm:$0xff] }
 0x22a   : > { %8920 = vmatprep.subr.bf16.mxu1 %v8919_v55  ;;  %v3190_v1 = vld [vmem:[#allocation8 + $0x68] sm:$0xff] }
 0x22b   : > { %7709 = vmatmul.mubr.f32.gmra.mrb[14].mxu0 %v6223_v8  ;;  %v2773_v8 = vld [vmem:[#allocation6 + $0x460] sm:$0xff]  ;;  %8922 = vmatpush3.bf16.msra.mxu1 %v8919_v55  ;;  %v8927_v2 = vpack.c.bf16 %v3190_v1, %v3189_v61 }
 0x22c   : > { %7711 = vmatprep.mubr.f32.mxu0 %v6224_v9  ;;  %8870 = vmatpush3.bf16.msra.mxu0 %v8867_v5  ;;  %v6250_v5 = vld [vmem:[%s10257_s10 + $0xa9] sm:$0xff] }
 0x22d   : > { %8872 = vmatprep.subr.bf16.mxu0 %v8871_v10  ;;  %v2774_v9 = vld [vmem:[#allocation6 + $0x468] sm:$0xff]  ;;  %8924 = vmatprep.subr.bf16.mxu1 %v8923_v7 }
 0x22e   : > { %v6303_v55 = vld [vmem:[%s10257_s10 + $0x1a2] sm:$0xff] }
 0x22f   : > { %7712 = vmatmul.mubr.f32.gmra.mrb[16].mxu0 %v6225_v11  ;;  %v6252_v11 = vld [vmem:[%s10257_s10 + $0xc1] sm:$0xff]  ;;  %8926 = vmatpush3.bf16.msra.mxu1 %v8923_v7  ;;  %v10038_v7 = vmov 0.0  }
 0x230   : > { %7714 = vmatprep.mubr.f32.mxu0 %v6226_v57  ;;  %v8895_v57 = vpack.c.bf16 %v2774_v9, %v2773_v8  ;;  %8928 = vmatprep.subr.bf16.mxu1 %v8927_v2  ;;  %3066 = vst [vmem:[#allocation2] sm:$0xff] %v10038_v7  ;;  %3067 = vst [vmem:[#allocation2 + $0x8] sm:$0xff] %v10038_v7  ;;  %v3485_v9 = vld [vmem:[#allocation8 + $0x90] sm:$0xff] }
 0x231   : > { %7927 = vmatprep.mubr.f32.mxu1 %v10038_v7  ;;  %3068 = vst [vmem:[#allocation2 + $0x10] sm:$0xff] %v10038_v7  ;;  %3070 = vst [vmem:[#allocation2 + $0x198] sm:$0xff] %v10038_v7 }
 0x232   : > { %3071 = vst [vmem:[#allocation2 + $0x1a0] sm:$0xff] %v10038_v7  ;;  %3072 = vst [vmem:[#allocation2 + $0x1a8] sm:$0xff] %v10038_v7 }
 0x233   : > { %7715 = vmatmul.mubr.f32.gmra.mrb[18].mxu0 %v6227_v22  ;;  %v2775_v22 = vld [vmem:[#allocation6 + $0x470] sm:$0xff]  ;;  %8930 = vmatpush3.bf16.msra.mxu1 %v8927_v2  ;;  %3074 = vst [vmem:[#allocation2 + $0x18] sm:$0x1] %v10038_v7  ;;  %3075 = vst [vmem:[#allocation2 + $0x30] sm:$0x1] %v10038_v7 }
 0x234   : > { %7717 = vmatprep.mubr.f32.mxu0 %v6228_v12  ;;  %v2776_v12 = vld [vmem:[#allocation6 + $0x478] sm:$0xff]  ;;  %3076 = vst [vmem:[#allocation2 + $0x48] sm:$0x1] %v10038_v7  ;;  %3077 = vst [vmem:[#allocation2 + $0x60] sm:$0x1] %v10038_v7 }
 0x235   : > { %3078 = vst [vmem:[#allocation2 + $0x78] sm:$0x1] %v10038_v7  ;;  %3079 = vst [vmem:[#allocation2 + $0x90] sm:$0x1] %v10038_v7 }
 0x236   : > { %3080 = vst [vmem:[#allocation2 + $0xa8] sm:$0x1] %v10038_v7  ;;  %3081 = vst [vmem:[#allocation2 + $0xc0] sm:$0x1] %v10038_v7 }
 0x237   : > { %7718 = vmatmul.mubr.f32.gmra.mrb[20].mxu0 %v6229_v47  ;;  %v6253_v47 = vld [vmem:[%s10257_s10 + $0xc9] sm:$0xff]  ;;  %3082 = vst [vmem:[#allocation2 + $0xd8] sm:$0x1] %v10038_v7  ;;  %3083 = vst [vmem:[#allocation2 + $0xf0] sm:$0x1] %v10038_v7 }
 0x238   : > { %7720 = vmatprep.mubr.f32.mxu0 %v6230_v13  ;;  %v6254_v13 = vld [vmem:[%s10257_s10 + $0xd9] sm:$0xff]  ;;  %3084 = vst [vmem:[#allocation2 + $0x108] sm:$0x1] %v10038_v7  ;;  %3085 = vst [vmem:[#allocation2 + $0x120] sm:$0x1] %v10038_v7 }
 0x239   : > { %3086 = vst [vmem:[#allocation2 + $0x138] sm:$0x1] %v10038_v7  ;;  %3087 = vst [vmem:[#allocation2 + $0x150] sm:$0x1] %v10038_v7 }
 0x23a   : > { %3088 = vst [vmem:[#allocation2 + $0x168] sm:$0x1] %v10038_v7  ;;  %3089 = vst [vmem:[#allocation2 + $0x180] sm:$0x1] %v10038_v7 }
 0x23b   : > { %7721 = vmatmul.mubr.f32.gmra.mrb[22].mxu0 %v6231_v14  ;;  %v8899_v14 = vpack.c.bf16 %v2776_v12, %v2775_v22  ;;  %3090 = vst [vmem:[#allocation2 + $0x29] sm:$0x1] %v10038_v7  ;;  %3091 = vst [vmem:[#allocation2 + $0x41] sm:$0x1] %v10038_v7  ;;  %v3488_v22 = vld [vmem:[#allocation8 + $0xa8] sm:$0xff] }
 0x23c   : > { %7723 = vmatprep.mubr.f32.mxu0 %v6232_v15  ;;  %v6255_v15 = vld [vmem:[%s10257_s10 + $0xe1] sm:$0xff]  ;;  %3092 = vst [vmem:[#allocation2 + $0x59] sm:$0x1] %v10038_v7  ;;  %3093 = vst [vmem:[#allocation2 + $0x71] sm:$0x1] %v10038_v7 }
 0x23d   : > { %3094 = vst [vmem:[#allocation2 + $0x89] sm:$0x1] %v10038_v7  ;;  %3095 = vst [vmem:[#allocation2 + $0xa1] sm:$0x1] %v10038_v7 }
 0x23e   : > { %3096 = vst [vmem:[#allocation2 + $0xb9] sm:$0x1] %v10038_v7  ;;  %3097 = vst [vmem:[#allocation2 + $0xd1] sm:$0x1] %v10038_v7 }
 0x23f   : > { %7724 = vmatmul.mubr.f32.gmra.mrb[24].mxu0 %v6233_v16  ;;  %v6256_v16 = vld [vmem:[%s10257_s10 + $0xf1] sm:$0xff]  ;;  %3098 = vst [vmem:[#allocation2 + $0xe9] sm:$0x1] %v10038_v7  ;;  %3099 = vst [vmem:[#allocation2 + $0x101] sm:$0x1] %v10038_v7 }
 0x240   : > { %7726 = vmatprep.mubr.f32.mxu0 %v6234_v17  ;;  %v6257_v17 = vld [vmem:[%s10257_s10 + $0xf9] sm:$0xff]  ;;  %3100 = vst [vmem:[#allocation2 + $0x119] sm:$0x1] %v10038_v7  ;;  %3101 = vst [vmem:[#allocation2 + $0x131] sm:$0x1] %v10038_v7 }
 0x241   : > { %3102 = vst [vmem:[#allocation2 + $0x149] sm:$0x1] %v10038_v7  ;;  %3103 = vst [vmem:[#allocation2 + $0x161] sm:$0x1] %v10038_v7 }
 0x242   : > { %3104 = vst [vmem:[#allocation2 + $0x179] sm:$0x1] %v10038_v7  ;;  %3105 = vst [vmem:[#allocation2 + $0x191] sm:$0x1] %v10038_v7 }
 0x243   : > { %7727 = vmatmul.mubr.f32.gmra.mrb[26].mxu0 %v6235_v18  ;;  %v6258_v18 = vld [vmem:[%s10257_s10 + $0x109] sm:$0xff] }
 0x244   : > { %7729 = vmatprep.mubr.f32.mxu0 %v10663_v56  ;;  %v6242_v56 = vld [vmem:[%s10257_s10 + $0x49] sm:$0xff] }
 0x247   : > { %7730 = vmatmul.mubr.f32.gmra.mrb[28].mxu0 %v10668_v60  ;;  %v2766_v60 = vld [vmem:[#allocation6 + $0x428] sm:$0xff] }
 0x248   : > { %7732 = vmatprep.mubr.f32.mxu0 %v6238_v23  ;;  %v8879_v62 = vpack.c.bf16 %v2766_v60, %v2765_v29  ;;  %v6259_v23 = vld [vmem:[%s10257_s10 + $0x111] sm:$0xff]  ;;  %v6278_v60 = vld [vmem:[%s10257_s10 + $0x7a] sm:$0xff] }
 0x249   : > { %v6274_v29 = vld [vmem:[%s10257_s10 + $0x4a] sm:$0xff] }
 0x24b   : > { %7733 = vmatmul.mubr.f32.gmra.mrb[30].mxu0 %v6239_v27  ;;  %v6260_v27 = vld [vmem:[%s10257_s10 + $0x121] sm:$0xff] }
 0x24c   : > { %7767 = vmatprep.mubr.f32.mxu0 %v6240_v28  ;;  %v6261_v28 = vld [vmem:[%s10257_s10 + $0x129] sm:$0xff] }
 0x24f   : > { %7768 = vmatmul.mubr.f32.vlgmr.msra.gmra.mrb[0].mxu0 %v6241_v59  ;;  %v6267_v59 = vld [vmem:[%s10257_s10 + $0x171] sm:$0xff] }
 0x250   : > { %8874 = vmatpush3.bf16.msra.mxu0 %v8871_v10  ;;  %7770 = vmatprep.mubr.f32.mxu0 %v6242_v56  ;;  %v6251_v10 = vld [vmem:[%s10257_s10 + $0xb1] sm:$0xff] }
 0x251   : > { %8876 = vmatprep.subr.bf16.mxu0 %v8875_v24  ;;  %v6272_v56 = vld [vmem:[%s10257_s10 + $0x32] sm:$0xff] }
 0x253   : > { %7771 = vmatmul.mubr.f32.gmra.mrb[2].mxu0 %v6243_v39  ;;  %v6281_v39 = vld [vmem:[%s10257_s10 + $0x9a] sm:$0xff] }
 0x254   : > { %7773 = vmatprep.mubr.f32.mxu0 %v6244_v48  ;;  %8878 = vmatpush3.bf16.msra.mxu0 %v8875_v24  ;;  %v6273_v24 = vld [vmem:[%s10257_s10 + $0x3a] sm:$0xff]  ;;  %v6282_v48 = vld [vmem:[%s10257_s10 + $0xaa] sm:$0xff] }
 0x255   : > { %8880 = vmatprep.subr.bf16.mxu0 %v8879_v62 }
 0x257   : > { %7774 = vmatmul.mubr.f32.gmra.mrb[4].mxu0 %v6245_v35  ;;  %v6289_v35 = vld [vmem:[%s10257_s10 + $0xfa] sm:$0xff] }
 0x258   : > { %7776 = vmatprep.mubr.f32.mxu0 %v6246_v36  ;;  %8882 = vmatpush3.bf16.msra.mxu0 %v8879_v62  ;;  %v6283_v62 = vld [vmem:[%s10257_s10 + $0xb2] sm:$0xff]  ;;  %v6290_v36 = vld [vmem:[%s10257_s10 + $0x10a] sm:$0xff] }
 0x259   : > { %8884 = vmatprep.subr.bf16.mxu0 %v8883_v63 }
 0x25b   : > { %7777 = vmatmul.mubr.f32.gmra.mrb[6].mxu0 %v6247_v26  ;;  %v6297_v26 = vld [vmem:[%s10257_s10 + $0x15a] sm:$0xff] }
 0x25c   : > { %7779 = vmatprep.mubr.f32.mxu0 %v6248_v50  ;;  %8886 = vmatpush3.bf16.msra.mxu0 %v8883_v63  ;;  %v6291_v63 = vld [vmem:[%s10257_s10 + $0x112] sm:$0xff]  ;;  %v6298_v50 = vld [vmem:[%s10257_s10 + $0x16a] sm:$0xff] }
 0x25d   : > { %8888 = vmatprep.subr.bf16.mxu0 %v8887_v51 }
 0x25f   : > { %7780 = vmatmul.mubr.f32.gmra.mrb[8].mxu0 %v6249_v4  ;;  %v3191_v4 = vld [vmem:[#allocation8 + $0x70] sm:$0xff] }
 0x260   : > { %7782 = vmatprep.mubr.f32.mxu0 %v6250_v5  ;;  %8890 = vmatpush3.bf16.msra.mxu0 %v8887_v51  ;;  %v6299_v51 = vld [vmem:[%s10257_s10 + $0x172] sm:$0xff] }
 0x261   : > { %8892 = vmatprep.subr.bf16.mxu0 %v8891_v6  ;;  %v3192_v5 = vld [vmem:[#allocation8 + $0x78] sm:$0xff] }
 0x263   : > { %7783 = vmatmul.mubr.f32.gmra.mrb[10].mxu0 %v6251_v10  ;;  %v3486_v10 = vld [vmem:[#allocation8 + $0x98] sm:$0xff] }
 0x264   : > { %7785 = vmatprep.mubr.f32.mxu0 %v6252_v11  ;;  %8894 = vmatpush3.bf16.msra.mxu0 %v8891_v6  ;;  %v8931_v6 = vpack.c.bf16 %v3192_v5, %v3191_v4  ;;  %v8939_v11 = vpack.c.bf16 %v3486_v10, %v3485_v9 }
 0x265   : > { %8896 = vmatprep.subr.bf16.mxu0 %v8895_v57 }
 0x266   : > { %8932 = vmatprep.subr.bf16.mxu1 %v8931_v6 }
 0x267   : > { %7786 = vmatmul.mubr.f32.gmra.mrb[12].mxu0 %v6253_v47  ;;  %8934 = vmatpush3.bf16.msra.mxu1 %v8931_v6  ;;  %v3489_v47 = vld [vmem:[#allocation8 + $0xb0] sm:$0xff] }
 0x268   : > { %7788 = vmatprep.mubr.f32.mxu0 %v6254_v13  ;;  %8898 = vmatpush3.bf16.msra.mxu0 %v8895_v57  ;;  %v3487_v57 = vld [vmem:[#allocation8 + $0xa0] sm:$0xff]  ;;  %v3490_v13 = vld [vmem:[#allocation8 + $0xb8] sm:$0xff] }
 0x269   : > { %8900 = vmatprep.subr.bf16.mxu0 %v8899_v14  ;;  %v8943_v12 = vpack.c.bf16 %v3488_v22, %v3487_v57 }
 0x26a   : > { %7928 = vmatmul.mubr.f32.vlgmr.msra.gmra.mrb[0].mxu1 %v10038_v7 }
 0x26b   : > { %7789 = vmatmul.mubr.f32.gmra.mrb[14].mxu0 %v6255_v15  ;;  %v3491_v15 = vld [vmem:[#allocation8 + $0xc0] sm:$0xff] }
 0x26c   : > { %7791 = vmatprep.mubr.f32.mxu0 %v6256_v16  ;;  %8902 = vmatpush3.bf16.msra.mxu0 %v8899_v14  ;;  %v8947_v14 = vpack.c.bf16 %v3490_v13, %v3489_v47  ;;  %v3492_v16 = vld [vmem:[#allocation8 + $0xc8] sm:$0xff] }
 0x26f   : > { %7792 = vmatmul.mubr.f32.gmra.mrb[16].mxu0 %v6257_v17  ;;  %v8951_v17 = vpack.c.bf16 %v3492_v16, %v3491_v15 }
 0x270   : > { %7794 = vmatprep.mubr.f32.mxu0 %v6258_v18  ;;  %v3493_v18 = vld [vmem:[#allocation8 + $0xd0] sm:$0xff] }
 0x273   : > { %7795 = vmatmul.mubr.f32.gmra.mrb[18].mxu0 %v6259_v23  ;;  %v3494_v23 = vld [vmem:[#allocation8 + $0xd8] sm:$0xff] }
 0x274   : > { %7797 = vmatprep.mubr.f32.mxu0 %v6260_v27  ;;  %v8955_v27 = vpack.c.bf16 %v3494_v23, %v3493_v18 }
 0x277   : > { %7798 = vmatmul.mubr.f32.gmra.mrb[20].mxu0 %v6261_v28  ;;  %v3495_v28 = vld [vmem:[#allocation8 + $0xe0] sm:$0xff] }
 0x278   : > { %7800 = vmatprep.mubr.f32.mxu0 %v6262_v33  ;;  %v3496_v33 = vld [vmem:[#allocation8 + $0xe8] sm:$0xff] }
 0x27b   : > { %7801 = vmatmul.mubr.f32.gmra.mrb[22].mxu0 %v6263_v34  ;;  %v8959_v34 = vpack.c.bf16 %v3496_v33, %v3495_v28 }
 0x27c   : > { %7803 = vmatprep.mubr.f32.mxu0 %v6264_v43  ;;  %v3497_v43 = vld [vmem:[#allocation8 + $0xf0] sm:$0xff] }
 0x27f   : > { %7804 = vmatmul.mubr.f32.gmra.mrb[24].mxu0 %v6265_v52  ;;  %v3498_v52 = vld [vmem:[#allocation8 + $0xf8] sm:$0xff] }
 0x280   : > { %7806 = vmatprep.mubr.f32.mxu0 %v6266_v58  ;;  %v8963_v58 = vpack.c.bf16 %v3498_v52, %v3497_v43 }
 0x283   : > { %7807 = vmatmul.mubr.f32.gmra.mrb[26].mxu0 %v6267_v59  ;;  %v3789_v59 = vld [vmem:[#allocation8 + $0x100] sm:$0xff] }
 0x284   : > { %7809 = vmatprep.mubr.f32.mxu0 %v10701_v25  ;;  %v6276_v25 = vld [vmem:[%s10257_s10 + $0x62] sm:$0xff] }
 0x287   : > { %7810 = vmatmul.mubr.f32.gmra.mrb[28].mxu0 %v10706_v30  ;;  %v6277_v30 = vld [vmem:[%s10257_s10 + $0x6a] sm:$0xff] }
 0x288   : > { %7812 = vmatprep.mubr.f32.mxu0 %v6270_v3  ;;  %v3790_v3 = vld [vmem:[#allocation8 + $0x108] sm:$0xff] }
 0x28b   : > { %7813 = vmatmul.mubr.f32.gmra.mrb[30].mxu0 %v6271_v19  ;;  %v10843_v19 = vpack.c.bf16 %v3790_v3, %v3789_v59 }
 0x28c   : > { %7847 = vmatprep.mubr.f32.mxu0 %v6272_v56  ;;  %v10849_v56 = vld [vmem:[%s11519_s2] ss:$0 sm:$0xff] }
 0x28f   : > { %7848 = vmatmul.mubr.f32.vlgmr.msra.gmra.mrb[0].mxu0 %v6273_v24 }
 0x290   : > { %7850 = vmatprep.mubr.f32.mxu0 %v6274_v29 }
 0x293   : > { %7851 = vmatmul.mubr.f32.gmra.mrb[2].mxu0 %v6275_v32 }
 0x294   : > { %7853 = vmatprep.mubr.f32.mxu0 %v6276_v25 }
 0x297   : > { %7854 = vmatmul.mubr.f32.gmra.mrb[4].mxu0 %v6277_v30 }
 0x298   : > { %7856 = vmatprep.mubr.f32.mxu0 %v6278_v60 }
 0x29b   : > { %7857 = vmatmul.mubr.f32.gmra.mrb[6].mxu0 %v6279_v37 }
 0x29c   : > { %7859 = vmatprep.mubr.f32.mxu0 %v6280_v38 }
 0x29f   : > { %7860 = vmatmul.mubr.f32.gmra.mrb[8].mxu0 %v6281_v39 }
 0x2a0   : > { %7862 = vmatprep.mubr.f32.mxu0 %v6282_v48 }
 0x2a3   : > { %7863 = vmatmul.mubr.f32.gmra.mrb[10].mxu0 %v6283_v62 }
 0x2a4   : > { %7865 = vmatprep.mubr.f32.mxu0 %v6284_v44 }
 0x2a7   : > { %7866 = vmatmul.mubr.f32.gmra.mrb[12].mxu0 %v6285_v20 }
 0x2a8   : > { %7868 = vmatprep.mubr.f32.mxu0 %v6286_v53 }
 0x2ab   : > { %7869 = vmatmul.mubr.f32.gmra.mrb[14].mxu0 %v6287_v31 }
 0x2ac   : > { %7871 = vmatprep.mubr.f32.mxu0 %v6288_v54 }
 0x2af   : > { %7872 = vmatmul.mubr.f32.gmra.mrb[16].mxu0 %v6289_v35 }
 0x2b0   : > { %7874 = vmatprep.mubr.f32.mxu0 %v6290_v36 }
 0x2b3   : > { %7875 = vmatmul.mubr.f32.gmra.mrb[18].mxu0 %v6291_v63 }
 0x2b4   : > { %7877 = vmatprep.mubr.f32.mxu0 %v6292_v40 }
 0x2b7   : > { %7878 = vmatmul.mubr.f32.gmra.mrb[20].mxu0 %v6293_v41 }
 0x2b8   : > { %7880 = vmatprep.mubr.f32.mxu0 %v6294_v21 }
 0x2bb   : > { %7881 = vmatmul.mubr.f32.gmra.mrb[22].mxu0 %v6295_v45 }
 0x2bc   : > { %7883 = vmatprep.mubr.f32.mxu0 %v6296_v46 }
 0x2bf   : > { %7884 = vmatmul.mubr.f32.gmra.mrb[24].mxu0 %v6297_v26 }
 0x2c0   : > { %7886 = vmatprep.mubr.f32.mxu0 %v6298_v50 }
 0x2c3   : > { %7887 = vmatmul.mubr.f32.gmra.mrb[26].mxu0 %v6299_v51 }
 0x2c4   : > { %7889 = vmatprep.mubr.f32.mxu0 %v10739_v42  ;;  %v3483_v42 = vld [vmem:[#allocation8 + $0x80] sm:$0xff] }
 0x2c7   : > { %7890 = vmatmul.mubr.f32.gmra.mrb[28].mxu0 %v10744_v49  ;;  %v3484_v49 = vld [vmem:[#allocation8 + $0x88] sm:$0xff] }
 0x2c8   : > { %7892 = vmatprep.mubr.f32.mxu0 %v6302_v0  ;;  %v8935_v8 = vpack.c.bf16 %v3484_v49, %v3483_v42 }
 0x2ca   : > { %8936 = vmatprep.subr.bf16.mxu1 %v8935_v8 }
 0x2cb   : > { %7893 = vmatmul.mubr.f32.gmra.mrb[30].mxu0 %v6303_v55  ;;  %8938 = vmatpush3.bf16.msra.mxu1 %v8935_v8 }
 0x2cc   : > { %8940 = vmatprep.subr.bf16.mxu1 %v8939_v11 }
 0x2cf   : > { %8942 = vmatpush3.bf16.msra.mxu1 %v8939_v11 }
 0x2d0   : > { %8944 = vmatprep.subr.bf16.mxu1 %v8943_v12 }
 0x2d3   : > { %8946 = vmatpush3.bf16.msra.mxu1 %v8943_v12 }
 0x2d4   : > { %8948 = vmatprep.subr.bf16.mxu1 %v8947_v14 }
 0x2d7   : > { %8950 = vmatpush3.bf16.msra.mxu1 %v8947_v14 }
 0x2d8   : > { %8952 = vmatprep.subr.bf16.mxu1 %v8951_v17 }
 0x2db   : > { %8954 = vmatpush3.bf16.msra.mxu1 %v8951_v17 }
 0x2dc   : > { %8956 = vmatprep.subr.bf16.mxu1 %v8955_v27 }
 0x2df   : > { %8958 = vmatpush3.bf16.msra.mxu1 %v8955_v27 }
 0x2e0   : > { %8960 = vmatprep.subr.bf16.mxu1 %v8959_v34 }
 0x2e3   : > { %8962 = vmatpush3.bf16.msra.mxu1 %v8959_v34 }
 0x2e4   : > { %8964 = vmatprep.subr.bf16.mxu1 %v8963_v58 }
 0x2e7   : > { %8966 = vmatpush3.bf16.msra.mxu1 %v8963_v58 }
 0x2e8   : > { %8968 = vmatprep.subr.bf16.mxu1 %v10843_v19 }
 0x362   : > { %v7849_v24 = vpop.f32.mrb[0].mxu0 }
 0x363   : > { %v10852_v29 = vadd.f32 %v7849_v24, %v10849_v56  ;;  %v2843_v32 = vpop.f32.mrb[1].mxu0 }
 0x364   : > { %v10855_v25 = vadd.f32 %v10849_v56, %v2843_v32 }
 0x365   : > { %v11572_v30 = vmax.f32 %v10852_v29, 0.0 }
 0x366   : > { %v11573_v60 = vmax.f32 %v10855_v25, 0.0  ;;  %v7852_v37 = vpop.f32.mrb[2].mxu0 }
 0x367   : > { %3107 = vst [vmem:[#allocation2 + $0x21] sm:$0xff] %v11572_v30  ;;  %v10862_v38 = vadd.f32 %v7852_v37, %v10849_v56  ;;  %v2853_v39 = vpop.f32.mrb[3].mxu0 }
 0x368   : > { %3106 = vst [vmem:[#allocation2 + $0x19] sm:$0xff] %v11573_v60  ;;  %v10867_v48 = vadd.f32 %v10849_v56, %v2853_v39 }
 0x369   : > { %v11570_v62 = vmax.f32 %v10862_v38, 0.0 }
 0x36a   : > { %v11571_v44 = vmax.f32 %v10867_v48, 0.0  ;;  %v7855_v20 = vpop.f32.mrb[4].mxu0 }
 0x36b   : > { %3109 = vst [vmem:[#allocation2 + $0x39] sm:$0xff] %v11570_v62  ;;  %v10874_v53 = vadd.f32 %v7855_v20, %v10849_v56  ;;  %v2863_v31 = vpop.f32.mrb[5].mxu0 }
 0x36c   : > { %3108 = vst [vmem:[#allocation2 + $0x31] sm:$0xff] %v11571_v44  ;;  %v10879_v54 = vadd.f32 %v10849_v56, %v2863_v31 }
 0x36d   : > { %v11568_v35 = vmax.f32 %v10874_v53, 0.0 }
 0x36e   : > { %v11569_v36 = vmax.f32 %v10879_v54, 0.0  ;;  %v7858_v63 = vpop.f32.mrb[6].mxu0 }
 0x36f   : > { %3111 = vst [vmem:[#allocation2 + $0x51] sm:$0xff] %v11568_v35  ;;  %v10886_v40 = vadd.f32 %v7858_v63, %v10849_v56  ;;  %v2873_v41 = vpop.f32.mrb[7].mxu0  ;;  %v10888_v21 = vld [vmem:[#allocation2 + $0x18] sm:$0xff]  ;;  %v10890_v45 = vld [vmem:[#allocation2 + $0x20] sm:$0xff] }
 0x370   : > { %3110 = vst [vmem:[#allocation2 + $0x49] sm:$0xff] %v11569_v36  ;;  %v10895_v46 = vadd.f32 %v10849_v56, %v2873_v41  ;;  %7930 = vmatprep.mubr.f32.mxu1 %v10888_v21 }
 0x371   : > { %v11566_v26 = vmax.f32 %v10886_v40, 0.0  ;;  %7931 = vmatmul.mubr.f32.gmra.mrb[2].mxu1 %v10890_v45 }
 0x372   : > { %v11567_v50 = vmax.f32 %v10895_v46, 0.0  ;;  %v7861_v51 = vpop.f32.mrb[8].mxu0 }
 0x373   : > { %3113 = vst [vmem:[#allocation2 + $0x69] sm:$0xff] %v11566_v26  ;;  %v10904_v0 = vadd.f32 %v7861_v51, %v10849_v56  ;;  %v2883_v55 = vpop.f32.mrb[9].mxu0  ;;  %v10906_v61 = vld [vmem:[#allocation2 + $0x30] sm:$0xff]  ;;  %v10908_v1 = vld [vmem:[#allocation2 + $0x38] sm:$0xff] }
 0x374   : > { %3112 = vst [vmem:[#allocation2 + $0x61] sm:$0xff] %v11567_v50  ;;  %v10913_v2 = vadd.f32 %v10849_v56, %v2883_v55  ;;  %7933 = vmatprep.mubr.f32.mxu1 %v10906_v61 }
 0x375   : > { %v11564_v4 = vmax.f32 %v10904_v0, 0.0  ;;  %7934 = vmatmul.mubr.f32.gmra.mrb[4].mxu1 %v10908_v1 }
 0x376   : > { %v11565_v5 = vmax.f32 %v10913_v2, 0.0  ;;  %v7864_v6 = vpop.f32.mrb[10].mxu0 }
 0x377   : > { %3115 = vst [vmem:[#allocation2 + $0x81] sm:$0xff] %v11564_v4  ;;  %v10922_v7 = vadd.f32 %v7864_v6, %v10849_v56  ;;  %v2893_v42 = vpop.f32.mrb[11].mxu0  ;;  %v10924_v49 = vld [vmem:[#allocation2 + $0x48] sm:$0xff]  ;;  %v10926_v8 = vld [vmem:[#allocation2 + $0x50] sm:$0xff] }
 0x378   : > { %3114 = vst [vmem:[#allocation2 + $0x79] sm:$0xff] %v11565_v5  ;;  %v9202_v9 = vadd.f32 %v10849_v56, %v2893_v42  ;;  %7936 = vmatprep.mubr.f32.mxu1 %v10924_v49 }
 0x379   : > { %v11563_v10 = vmax.f32 %v10922_v7, 0.0  ;;  %7937 = vmatmul.mubr.f32.gmra.mrb[6].mxu1 %v10926_v8 }
 0x37a   : > { %v10934_v11 = vmax.f32 %v9202_v9, 0.0  ;;  %v7867_v57 = vpop.f32.mrb[12].mxu0 }
 0x37b   : > { %3117 = vst [vmem:[#allocation2 + $0x99] sm:$0xff] %v11563_v10  ;;  %v9203_v22 = vadd.f32 %v7867_v57, %v10849_v56  ;;  %v2903_v12 = vpop.f32.mrb[13].mxu0  ;;  %v10939_v47 = vld [vmem:[#allocation2 + $0x60] sm:$0xff]  ;;  %v10941_v13 = vld [vmem:[#allocation2 + $0x68] sm:$0xff] }
 0x37c   : > { %3116 = vst [vmem:[#allocation2 + $0x91] sm:$0xff] %v10934_v11  ;;  %v9204_v14 = vadd.f32 %v10849_v56, %v2903_v12  ;;  %7939 = vmatprep.mubr.f32.mxu1 %v10939_v47 }
 0x37d   : > { %v10946_v15 = vmax.f32 %v9203_v22, 0.0  ;;  %7940 = vmatmul.mubr.f32.gmra.mrb[8].mxu1 %v10941_v13 }
 0x37e   : > { %v10949_v16 = vmax.f32 %v9204_v14, 0.0  ;;  %v7870_v17 = vpop.f32.mrb[14].mxu0 }
 0x37f   : > { %3119 = vst [vmem:[#allocation2 + $0xb1] sm:$0xff] %v10946_v15  ;;  %v9205_v18 = vadd.f32 %v7870_v17, %v10849_v56  ;;  %v2913_v23 = vpop.f32.mrb[15].mxu0  ;;  %v10953_v27 = vld [vmem:[#allocation2 + $0x78] sm:$0xff]  ;;  %v10955_v28 = vld [vmem:[#allocation2 + $0x80] sm:$0xff] }
 0x380   : > { %3118 = vst [vmem:[#allocation2 + $0xa9] sm:$0xff] %v10949_v16  ;;  %v9206_v33 = vadd.f32 %v10849_v56, %v2913_v23  ;;  %7942 = vmatprep.mubr.f32.mxu1 %v10953_v27 }
 0x381   : > { %v10960_v34 = vmax.f32 %v9205_v18, 0.0  ;;  %7943 = vmatmul.mubr.f32.gmra.mrb[10].mxu1 %v10955_v28 }
 0x382   : > { %v10963_v43 = vmax.f32 %v9206_v33, 0.0  ;;  %v7873_v52 = vpop.f32.mrb[16].mxu0 }
 0x383   : > { %3121 = vst [vmem:[#allocation2 + $0xc9] sm:$0xff] %v10960_v34  ;;  %v9207_v58 = vadd.f32 %v7873_v52, %v10849_v56  ;;  %v2923_v59 = vpop.f32.mrb[17].mxu0  ;;  %v10967_v3 = vld [vmem:[#allocation2 + $0x90] sm:$0xff]  ;;  %v10969_v24 = vld [vmem:[#allocation2 + $0x98] sm:$0xff] }
 0x384   : > { %3120 = vst [vmem:[#allocation2 + $0xc1] sm:$0xff] %v10963_v43  ;;  %v9208_v32 = vadd.f32 %v10849_v56, %v2923_v59  ;;  %7945 = vmatprep.mubr.f32.mxu1 %v10967_v3 }
 0x385   : > { %v10974_v37 = vmax.f32 %v9207_v58, 0.0  ;;  %7946 = vmatmul.mubr.f32.gmra.mrb[12].mxu1 %v10969_v24 }
 0x386   : > { %v10977_v39 = vmax.f32 %v9208_v32, 0.0  ;;  %v7876_v20 = vpop.f32.mrb[18].mxu0 }
 0x387   : > { %3123 = vst [vmem:[#allocation2 + $0xe1] sm:$0xff] %v10974_v37  ;;  %v9209_v31 = vadd.f32 %v7876_v20, %v10849_v56  ;;  %v2933_v63 = vpop.f32.mrb[19].mxu0  ;;  %v10981_v41 = vld [vmem:[#allocation2 + $0xa8] sm:$0xff]  ;;  %v10983_v51 = vld [vmem:[#allocation2 + $0xb0] sm:$0xff] }
 0x388   : > { %3122 = vst [vmem:[#allocation2 + $0xd9] sm:$0xff] %v10977_v39  ;;  %v9210_v55 = vadd.f32 %v10849_v56, %v2933_v63  ;;  %7948 = vmatprep.mubr.f32.mxu1 %v10981_v41 }
 0x389   : > { %v10988_v6 = vmax.f32 %v9209_v31, 0.0  ;;  %7949 = vmatmul.mubr.f32.gmra.mrb[14].mxu1 %v10983_v51 }
 0x38a   : > { %v10991_v42 = vmax.f32 %v9210_v55, 0.0  ;;  %v7879_v9 = vpop.f32.mrb[20].mxu0 }
 0x38b   : > { %3125 = vst [vmem:[#allocation2 + $0xf9] sm:$0xff] %v10988_v6  ;;  %v9211_v57 = vadd.f32 %v7879_v9, %v10849_v56  ;;  %v2943_v22 = vpop.f32.mrb[21].mxu0  ;;  %v10995_v12 = vld [vmem:[#allocation2 + $0xc0] sm:$0xff]  ;;  %v10997_v14 = vld [vmem:[#allocation2 + $0xc8] sm:$0xff] }
 0x38c   : > { %3124 = vst [vmem:[#allocation2 + $0xf1] sm:$0xff] %v10991_v42  ;;  %v9212_v17 = vadd.f32 %v10849_v56, %v2943_v22  ;;  %7951 = vmatprep.mubr.f32.mxu1 %v10995_v12 }
 0x38d   : > { %v11002_v18 = vmax.f32 %v9211_v57, 0.0  ;;  %7952 = vmatmul.mubr.f32.gmra.mrb[16].mxu1 %v10997_v14 }
 0x38e   : > { %v11005_v23 = vmax.f32 %v9212_v17, 0.0  ;;  %v7882_v33 = vpop.f32.mrb[22].mxu0 }
 0x38f   : > { %3127 = vst [vmem:[#allocation2 + $0x111] sm:$0xff] %v11002_v18  ;;  %v9213_v52 = vadd.f32 %v7882_v33, %v10849_v56  ;;  %v2953_v58 = vpop.f32.mrb[23].mxu0  ;;  %v11009_v59 = vld [vmem:[#allocation2 + $0xd8] sm:$0xff]  ;;  %v11011_v32 = vld [vmem:[#allocation2 + $0xe0] sm:$0xff] }
 0x390   : > { %3126 = vst [vmem:[#allocation2 + $0x109] sm:$0xff] %v11005_v23  ;;  %v9214_v20 = vadd.f32 %v10849_v56, %v2953_v58  ;;  %7954 = vmatprep.mubr.f32.mxu1 %v11009_v59 }
 0x391   : > { %v11016_v31 = vmax.f32 %v9213_v52, 0.0  ;;  %7955 = vmatmul.mubr.f32.gmra.mrb[18].mxu1 %v11011_v32 }
 0x392   : > { %v11019_v63 = vmax.f32 %v9214_v20, 0.0  ;;  %v7885_v55 = vpop.f32.mrb[24].mxu0 }
 0x393   : > { %3129 = vst [vmem:[#allocation2 + $0x129] sm:$0xff] %v11016_v31  ;;  %v9215_v9 = vadd.f32 %v7885_v55, %v10849_v56  ;;  %v2963_v57 = vpop.f32.mrb[25].mxu0  ;;  %v11023_v22 = vld [vmem:[#allocation2 + $0xf0] sm:$0xff]  ;;  %v11025_v17 = vld [vmem:[#allocation2 + $0xf8] sm:$0xff] }
 0x394   : > { %3128 = vst [vmem:[#allocation2 + $0x121] sm:$0xff] %v11019_v63  ;;  %v9216_v33 = vadd.f32 %v10849_v56, %v2963_v57  ;;  %7957 = vmatprep.mubr.f32.mxu1 %v11023_v22 }
 0x395   : > { %v11030_v52 = vmax.f32 %v9215_v9, 0.0  ;;  %7958 = vmatmul.mubr.f32.gmra.mrb[20].mxu1 %v11025_v17 }
 0x396   : > { %v11033_v58 = vmax.f32 %v9216_v33, 0.0  ;;  %v7888_v20 = vpop.f32.mrb[26].mxu0 }
 0x397   : > { %3131 = vst [vmem:[#allocation2 + $0x141] sm:$0xff] %v11030_v52  ;;  %v9217_v55 = vadd.f32 %v7888_v20, %v10849_v56  ;;  %v2973_v10 = vpop.f32.mrb[27].mxu0  ;;  %v11037_v4 = vld [vmem:[#allocation2 + $0x108] sm:$0xff]  ;;  %v11039_v5 = vld [vmem:[#allocation2 + $0x110] sm:$0xff] }
 0x398   : > { %11686 = vst [vmem:[#allocation13_spill] sm:$0xff] %v11037_v4  ;;  %11687 = vst [vmem:[#allocation14_spill] sm:$0xff] %v11039_v5  ;;  %v9218_v57 = vadd.f32 %v10849_v56, %v2973_v10  ;;  %7960 = vmatprep.mubr.f32.mxu1 %v11037_v4  ;;  %v3796_v4 = vld [vmem:[#allocation8 + $0x138] sm:$0xff] }
 0x399   : > { %3130 = vst [vmem:[#allocation2 + $0x139] sm:$0xff] %v11033_v58  ;;  %v11044_v9 = vmax.f32 %v9217_v55, 0.0  ;;  %7961 = vmatmul.mubr.f32.gmra.mrb[22].mxu1 %v11039_v5  ;;  %v3795_v5 = vld [vmem:[#allocation8 + $0x130] sm:$0xff] }
 0x39a   : > { %v11047_v33 = vmax.f32 %v9218_v57, 0.0  ;;  %v7891_v26 = vpop.f32.mrb[28].mxu0 }
 0x39b   : > { %3133 = vst [vmem:[#allocation2 + $0x159] sm:$0xff] %v11044_v9  ;;  %v9219_v20 = vadd.f32 %v7891_v26, %v10849_v56  ;;  %v2983_v50 = vpop.f32.mrb[29].mxu0  ;;  %v11051_v35 = vld [vmem:[#allocation2 + $0x120] sm:$0xff]  ;;  %v11053_v36 = vld [vmem:[#allocation2 + $0x128] sm:$0xff] }
 0x39c   : > { %11688 = vst [vmem:[#allocation15_spill] sm:$0xff] %v11051_v35  ;;  %11689 = vst [vmem:[#allocation16_spill] sm:$0xff] %v11053_v36  ;;  %v9220_v10 = vadd.f32 %v10849_v56, %v2983_v50  ;;  %7963 = vmatprep.mubr.f32.mxu1 %v11051_v35 }
 0x39d   : > { %3132 = vst [vmem:[#allocation2 + $0x151] sm:$0xff] %v11047_v33  ;;  %v11058_v55 = vmax.f32 %v9219_v20, 0.0  ;;  %7964 = vmatmul.mubr.f32.gmra.mrb[24].mxu1 %v11053_v36 }
 0x39e   : > { %v11061_v57 = vmax.f32 %v9220_v10, 0.0  ;;  %v7894_v62 = vpop.f32.mrb[30].mxu0 }
 0x39f   : > { %3135 = vst [vmem:[#allocation2 + $0x171] sm:$0xff] %v11058_v55  ;;  %v11065_v26 = vadd.f32 %v7894_v62, %v10849_v56  ;;  %v2993_v44 = vpop.f32.mrb[31].mxu0 }
 0x3a0   : > { %v11067_v30 = vld [vmem:[#allocation2 + $0x138] sm:$0xff]  ;;  %v11069_v60 = vld [vmem:[#allocation2 + $0x140] sm:$0xff]  ;;  %3134 = vst [vmem:[#allocation2 + $0x169] sm:$0xff] %v11061_v57  ;;  %v11073_v50 = vadd.f32 %v10849_v56, %v2993_v44 }
 0x3a1   : > { %11690 = vst [vmem:[#allocation17_spill] sm:$0xff] %v11065_v26  ;;  %11691 = vst [vmem:[#allocation18_spill] sm:$0xff] %v11067_v30  ;;  %7966 = vmatprep.mubr.f32.mxu1 %v11067_v30  ;;  %v11577_v20 = vmax.f32 %v11065_v26, 0.0  ;;  %v3791_v26 = vld [vmem:[#allocation8 + $0x110] sm:$0xff]  ;;  %v3451_v30 = vld [vmem:[#allocation2 + $0x9] sm:$0xff] }
 0x3a2   : > { %11692 = vst [vmem:[#allocation19_spill] sm:$0xff] %v11069_v60  ;;  %11693 = vst [vmem:[#allocation20_spill] sm:$0xff] %v11073_v50  ;;  %7967 = vmatmul.mubr.f32.gmra.mrb[26].mxu1 %v11069_v60  ;;  %v11581_v10 = vmax.f32 %v11073_v50, 0.0  ;;  %v3450_v60 = vld [vmem:[#allocation2 + $0x1] sm:$0xff]  ;;  %v3793_v50 = vld [vmem:[#allocation8 + $0x120] sm:$0xff] }
 0x3a3   : > { %3137 = vst [vmem:[#allocation2 + $0x189] sm:$0xff] %v11577_v20  ;;  %v3792_v20 = vld [vmem:[#allocation8 + $0x118] sm:$0xff] }
 0x3a4   : > { %v11081_v62 = vld [vmem:[#allocation2 + $0x150] sm:$0xff]  ;;  %v11083_v36 = vld [vmem:[#allocation2 + $0x158] sm:$0xff]  ;;  %3136 = vst [vmem:[#allocation2 + $0x181] sm:$0xff] %v11581_v10  ;;  %v8971_v35 = vpack.c.bf16 %v3792_v20, %v3791_v26  ;;  %v3799_v20 = vld [vmem:[#allocation8 + $0x150] sm:$0xff] }
 0x3a5   : > { %11694 = vst [vmem:[#allocation21_spill] sm:$0xff] %v11081_v62  ;;  %11695 = vst [vmem:[#allocation22_spill] sm:$0xff] %v11083_v36  ;;  %7969 = vmatprep.mubr.f32.mxu1 %v11081_v62  ;;  %v3794_v10 = vld [vmem:[#allocation8 + $0x128] sm:$0xff]  ;;  %v11698_v62 = vmax.f32 %v10855_v25, 0.0  ;;  %v3797_v26 = vld [vmem:[#allocation8 + $0x140] sm:$0xff]  ;;  %v11701_v25 = vmax.f32 %v10862_v38, 0.0 }
 0x3a6   : > { %7970 = vmatmul.mubr.f32.gmra.mrb[28].mxu1 %v11083_v36  ;;  %v8975_v36 = vpack.c.bf16 %v3794_v10, %v3793_v50  ;;  %v11703_v10 = vmax.f32 %v10874_v53, 0.0  ;;  %v3802_v38 = vld [vmem:[#allocation8 + $0x168] sm:$0xff]  ;;  %v3804_v53 = vld [vmem:[#allocation8 + $0x178] sm:$0xff] }
 0x3a7   : > { %v11089_v56 = vld [vmem:[#allocation2 + $0x168] sm:$0xff]  ;;  %v11091_v44 = vld [vmem:[#allocation2 + $0x170] sm:$0xff] }
 0x3a8   : > { %11696 = vst [vmem:[#allocation23_spill] sm:$0xff] %v11089_v56  ;;  %11697 = vst [vmem:[#allocation24_spill] sm:$0xff] %v11091_v44  ;;  %7972 = vmatprep.mubr.f32.mxu1 %v11089_v56  ;;  %v11699_v56 = vmax.f32 %v10852_v29, 0.0  ;;  %v3800_v29 = vld [vmem:[#allocation8 + $0x158] sm:$0xff] }
 0x3aa   : > { %7973 = vmatmul.mubr.f32.gmra.mrb[30].mxu1 %v11091_v44  ;;  %v11700_v44 = vmax.f32 %v10867_v48, 0.0  ;;  %v11704_v48 = vmax.f32 %v10895_v46, 0.0 }
 0x3ab   : > { %8007 = vmatprep.mubr.f32.mxu1 %v3450_v60  ;;  %v8979_v60 = vpack.c.bf16 %v3796_v4, %v3795_v5  ;;  %v3801_v4 = vld [vmem:[#allocation8 + $0x160] sm:$0xff]  ;;  %v11705_v5 = vmax.f32 %v10886_v40, 0.0  ;;  %v11708_v40 = vmax.f32 %v10922_v7, 0.0  ;;  %v4097_v7 = vld [vmem:[#allocation8 + $0x190] sm:$0xff] }
 0x3ae   : > { %8008 = vmatmul.mubr.f32.vlgmr.msra.gmra.mrb[0].mxu1 %v3451_v30  ;;  %v3798_v30 = vld [vmem:[#allocation8 + $0x148] sm:$0xff] }
 0x3af   : > { %8010 = vmatprep.mubr.f32.mxu1 %v11698_v62  ;;  %8970 = vmatpush3.bf16.msra.mxu1 %v10843_v19  ;;  %v11702_v19 = vmax.f32 %v10879_v54, 0.0  ;;  %v8983_v50 = vpack.c.bf16 %v3798_v30, %v3797_v26  ;;  %v11706_v54 = vmax.f32 %v10913_v2, 0.0  ;;  %v3803_v62 = vld [vmem:[#allocation8 + $0x170] sm:$0xff]  ;;  %v4098_v26 = vld [vmem:[#allocation8 + $0x198] sm:$0xff] }
 0x3b0   : > { %8972 = vmatprep.subr.bf16.mxu1 %v8971_v35  ;;  %v8995_v46 = vpack.c.bf16 %v3804_v53, %v3803_v62  ;;  %v3757_v30 = vld [vmem:[#allocation2 + $0xa] sm:$0xff] }
 0x3b1   : > { %v11149_v62 = vld [vmem:[#allocation2 + $0x4a] sm:$0xff] }
 0x3b2   : > { %8011 = vmatmul.mubr.f32.gmra.mrb[2].mxu1 %v11699_v56  ;;  %v11707_v56 = vmax.f32 %v10904_v0, 0.0  ;;  %v3756_v0 = vld [vmem:[#allocation2 + $0x2] sm:$0xff] }
 0x3b3   : > { %8013 = vmatprep.mubr.f32.mxu1 %v11700_v44  ;;  %8974 = vmatpush3.bf16.msra.mxu1 %v8971_v35  ;;  %v8987_v35 = vpack.c.bf16 %v3800_v29, %v3799_v20  ;;  %v4095_v44 = vld [vmem:[#allocation8 + $0x180] sm:$0xff]  ;;  %v11137_v20 = vld [vmem:[#allocation2 + $0x1a] sm:$0xff] }
 0x3b4   : > { %8976 = vmatprep.subr.bf16.mxu1 %v8975_v36 }
 0x3b6   : > { %8014 = vmatmul.mubr.f32.gmra.mrb[4].mxu1 %v11701_v25  ;;  %v9003_v25 = vpack.c.bf16 %v4098_v26, %v4097_v7  ;;  %v4108_v7 = vld [vmem:[#allocation8 + $0x1e8] sm:$0xff] }
 0x3b7   : > { %8016 = vmatprep.mubr.f32.mxu1 %v11702_v19  ;;  %8978 = vmatpush3.bf16.msra.mxu1 %v8975_v36  ;;  %v8991_v36 = vpack.c.bf16 %v3802_v38, %v3801_v4  ;;  %v4099_v19 = vld [vmem:[#allocation8 + $0x1a0] sm:$0xff]  ;;  %v11161_v26 = vld [vmem:[#allocation2 + $0x7a] sm:$0xff] }
 0x3b8   : > { %8980 = vmatprep.subr.bf16.mxu1 %v8979_v60  ;;  %v11143_v4 = vld [vmem:[#allocation2 + $0x32] sm:$0xff] }
 0x3ba   : > { %8017 = vmatmul.mubr.f32.gmra.mrb[6].mxu1 %v11703_v10  ;;  %v11140_v10 = vld [vmem:[#allocation2 + $0x22] sm:$0xff] }
 0x3bb   : > { %8019 = vmatprep.mubr.f32.mxu1 %v11704_v48  ;;  %8982 = vmatpush3.bf16.msra.mxu1 %v8979_v60  ;;  %v4096_v60 = vld [vmem:[#allocation8 + $0x188] sm:$0xff]  ;;  %v4101_v48 = vld [vmem:[#allocation8 + $0x1b0] sm:$0xff] }
 0x3bc   : > { %8984 = vmatprep.subr.bf16.mxu1 %v8983_v50  ;;  %v8999_v2 = vpack.c.bf16 %v4096_v60, %v4095_v44  ;;  %v4106_v44 = vld [vmem:[#allocation8 + $0x1d8] sm:$0xff] }
 0x3bd   : > { %v11155_v60 = vld [vmem:[#allocation2 + $0x62] sm:$0xff] }
 0x3be   : > { %8020 = vmatmul.mubr.f32.gmra.mrb[8].mxu1 %v11705_v5  ;;  %v11146_v5 = vld [vmem:[#allocation2 + $0x3a] sm:$0xff] }
 0x3bf   : > { %8022 = vmatprep.mubr.f32.mxu1 %v11706_v54  ;;  %8986 = vmatpush3.bf16.msra.mxu1 %v8983_v50  ;;  %v4100_v50 = vld [vmem:[#allocation8 + $0x1a8] sm:$0xff]  ;;  %v4103_v54 = vld [vmem:[#allocation8 + $0x1c0] sm:$0xff] }
 0x3c0   : > { %8988 = vmatprep.subr.bf16.mxu1 %v8987_v35  ;;  %v9007_v29 = vpack.c.bf16 %v4100_v50, %v4099_v19  ;;  %v4109_v19 = vld [vmem:[#allocation8 + $0x1f0] sm:$0xff]  ;;  %v4110_v50 = vld [vmem:[#allocation8 + $0x1f8] sm:$0xff] }
 0x3c2   : > { %8023 = vmatmul.mubr.f32.gmra.mrb[10].mxu1 %v11707_v56  ;;  %v11152_v56 = vld [vmem:[#allocation2 + $0x52] sm:$0xff] }
 0x3c3   : > { %8025 = vmatprep.mubr.f32.mxu1 %v10934_v11  ;;  %8990 = vmatpush3.bf16.msra.mxu1 %v8987_v35  ;;  %v4102_v35 = vld [vmem:[#allocation8 + $0x1b8] sm:$0xff] }
 0x3c4   : > { %8992 = vmatprep.subr.bf16.mxu1 %v8991_v36  ;;  %v9011_v38 = vpack.c.bf16 %v4102_v35, %v4101_v48  ;;  %v9027_v48 = vpack.c.bf16 %v4110_v50, %v4109_v19  ;;  %v11170_v35 = vld [vmem:[#allocation2 + $0x9a] sm:$0xff]  ;;  %v11197_v50 = vld [vmem:[#allocation2 + $0x10a] sm:$0xff] }
 0x3c5   : > { %v11194_v19 = vld [vmem:[#allocation2 + $0xfa] sm:$0xff]  ;;  %11714 = vst [vmem:[#allocation30_spill] sm:$0xff] %v11197_v50 }
 0x3c6   : > { %8026 = vmatmul.mubr.f32.gmra.mrb[12].mxu1 %v11708_v40  ;;  %11713 = vst [vmem:[#allocation29_spill] sm:$0xff] %v11194_v19 }
 0x3c7   : > { %8028 = vmatprep.mubr.f32.mxu1 %v10949_v16  ;;  %8994 = vmatpush3.bf16.msra.mxu1 %v8991_v36  ;;  %v4104_v36 = vld [vmem:[#allocation8 + $0x1c8] sm:$0xff] }
 0x3c8   : > { %8996 = vmatprep.subr.bf16.mxu1 %v8995_v46  ;;  %v9015_v53 = vpack.c.bf16 %v4104_v36, %v4103_v54  ;;  %v4402_v54 = vld [vmem:[#allocation8 + $0x208] sm:$0xff]  ;;  %v11173_v36 = vld [vmem:[#allocation2 + $0xaa] sm:$0xff] }
 0x3ca   : > { %8029 = vmatmul.mubr.f32.gmra.mrb[14].mxu1 %v10946_v15 }
 0x3cb   : > { %8031 = vmatprep.mubr.f32.mxu1 %v10963_v43  ;;  %8998 = vmatpush3.bf16.msra.mxu1 %v8995_v46  ;;  %v4105_v46 = vld [vmem:[#allocation8 + $0x1d0] sm:$0xff] }
 0x3cc   : > { %9000 = vmatprep.subr.bf16.mxu1 %v8999_v2  ;;  %v9019_v40 = vpack.c.bf16 %v4106_v44, %v4105_v46  ;;  %v11176_v46 = vld [vmem:[#allocation2 + $0xb2] sm:$0xff]  ;;  %v11179_v44 = vld [vmem:[#allocation2 + $0xc2] sm:$0xff] }
 0x3ce   : > { %8032 = vmatmul.mubr.f32.gmra.mrb[16].mxu1 %v10960_v34 }
 0x3cf   : > { %8034 = vmatprep.mubr.f32.mxu1 %v10977_v39 }
 0x3d2   : > { %8035 = vmatmul.mubr.f32.gmra.mrb[18].mxu1 %v10974_v37 }
 0x3d3   : > { %8037 = vmatprep.mubr.f32.mxu1 %v10991_v42 }
 0x3d6   : > { %8038 = vmatmul.mubr.f32.gmra.mrb[20].mxu1 %v10988_v6 }
 0x3d7   : > { %8040 = vmatprep.mubr.f32.mxu1 %v11005_v23 }
 0x3da   : > { %8041 = vmatmul.mubr.f32.gmra.mrb[22].mxu1 %v11002_v18 }
 0x3db   : > { %8043 = vmatprep.mubr.f32.mxu1 %v11019_v63 }
 0x3de   : > { %8044 = vmatmul.mubr.f32.gmra.mrb[24].mxu1 %v11016_v31 }
 0x3df   : > { %8046 = vmatprep.mubr.f32.mxu1 %v11033_v58 }
 0x3e2   : > { %8047 = vmatmul.mubr.f32.gmra.mrb[26].mxu1 %v11030_v52 }
 0x3e3   : > { %8049 = vmatprep.mubr.f32.mxu1 %v11047_v33 }
 0x3e6   : > { %8050 = vmatmul.mubr.f32.gmra.mrb[28].mxu1 %v11044_v9 }
 0x3e7   : > { %8052 = vmatprep.mubr.f32.mxu1 %v11061_v57 }
 0x3ea   : > { %8053 = vmatmul.mubr.f32.gmra.mrb[30].mxu1 %v11058_v55 }
 0x3eb   : > { %8087 = vmatprep.mubr.f32.mxu1 %v3756_v0  ;;  %v4107_v0 = vld [vmem:[#allocation8 + $0x1e0] sm:$0xff] }
 0x3ee   : > { %8088 = vmatmul.mubr.f32.vlgmr.msra.gmra.mrb[0].mxu1 %v3757_v30  ;;  %v9023_v30 = vpack.c.bf16 %v4108_v7, %v4107_v0  ;;  %v11185_v0 = vld [vmem:[#allocation2 + $0xda] sm:$0xff]  ;;  %v11188_v7 = vld [vmem:[#allocation2 + $0xe2] sm:$0xff] }
 0x3ef   : > { %8090 = vmatprep.mubr.f32.mxu1 %v11137_v20  ;;  %9002 = vmatpush3.bf16.msra.mxu1 %v8999_v2  ;;  %v11158_v2 = vld [vmem:[#allocation2 + $0x6a] sm:$0xff]  ;;  %11710 = vst [vmem:[#allocation26_spill] sm:$0xff] %v11185_v0  ;;  %11711 = vst [vmem:[#allocation27_spill] sm:$0xff] %v11188_v7 }
 0x3f0   : > { %9004 = vmatprep.subr.bf16.mxu1 %v9003_v25 }
 0x3f2   : > { %8091 = vmatmul.mubr.f32.gmra.mrb[2].mxu1 %v11140_v10 }
 0x3f3   : > { %8093 = vmatprep.mubr.f32.mxu1 %v11143_v4  ;;  %9006 = vmatpush3.bf16.msra.mxu1 %v9003_v25  ;;  %v11164_v25 = vld [vmem:[#allocation2 + $0x82] sm:$0xff] }
 0x3f4   : > { %9008 = vmatprep.subr.bf16.mxu1 %v9007_v29 }
 0x3f6   : > { %8094 = vmatmul.mubr.f32.gmra.mrb[4].mxu1 %v11146_v5 }
 0x3f7   : > { %8096 = vmatprep.mubr.f32.mxu1 %v11149_v62  ;;  %9010 = vmatpush3.bf16.msra.mxu1 %v9007_v29  ;;  %v11167_v29 = vld [vmem:[#allocation2 + $0x92] sm:$0xff] }
 0x3f8   : > { %9012 = vmatprep.subr.bf16.mxu1 %v9011_v38 }
 0x3fa   : > { %8097 = vmatmul.mubr.f32.gmra.mrb[6].mxu1 %v11152_v56 }
 0x3fb   : > { %8099 = vmatprep.mubr.f32.mxu1 %v11155_v60  ;;  %9014 = vmatpush3.bf16.msra.mxu1 %v9011_v38  ;;  %v4401_v38 = vld [vmem:[#allocation8 + $0x200] sm:$0xff] }
 0x3fc   : > { %9016 = vmatprep.subr.bf16.mxu1 %v9015_v53 }
 0x3fe   : > { %8100 = vmatmul.mubr.f32.gmra.mrb[8].mxu1 %v11158_v2 }
 0x3ff   : > { %8102 = vmatprep.mubr.f32.mxu1 %v11161_v26  ;;  %9018 = vmatpush3.bf16.msra.mxu1 %v9015_v53  ;;  %v9031_v53 = vpack.c.bf16 %v4402_v54, %v4401_v38  ;;  %v11203_v38 = vld [vmem:[#allocation2 + $0x122] sm:$0xff]  ;;  %v11206_v54 = vld [vmem:[#allocation2 + $0x12a] sm:$0xff] }
 0x400   : > { %9020 = vmatprep.subr.bf16.mxu1 %v9019_v40  ;;  %11716 = vst [vmem:[#allocation32_spill] sm:$0xff] %v11203_v38  ;;  %11717 = vst [vmem:[#allocation33_spill] sm:$0xff] %v11206_v54 }
 0x402   : > { %8103 = vmatmul.mubr.f32.gmra.mrb[10].mxu1 %v11164_v25 }
 0x403   : > { %8105 = vmatprep.mubr.f32.mxu1 %v11167_v29  ;;  %9022 = vmatpush3.bf16.msra.mxu1 %v9019_v40  ;;  %v11182_v40 = vld [vmem:[#allocation2 + $0xca] sm:$0xff] }
 0x404   : > { %9024 = vmatprep.subr.bf16.mxu1 %v9023_v30  ;;  %11709 = vst [vmem:[#allocation25_spill] sm:$0xff] %v11182_v40 }
 0x406   : > { %8106 = vmatmul.mubr.f32.gmra.mrb[12].mxu1 %v11170_v35 }
 0x407   : > { %8108 = vmatprep.mubr.f32.mxu1 %v11173_v36  ;;  %9026 = vmatpush3.bf16.msra.mxu1 %v9023_v30  ;;  %v11191_v30 = vld [vmem:[#allocation2 + $0xf2] sm:$0xff] }
 0x408   : > { %9028 = vmatprep.subr.bf16.mxu1 %v9027_v48  ;;  %11712 = vst [vmem:[#allocation28_spill] sm:$0xff] %v11191_v30 }
 0x40a   : > { %8109 = vmatmul.mubr.f32.gmra.mrb[14].mxu1 %v11176_v46 }
 0x40b   : > { %8111 = vmatprep.mubr.f32.mxu1 %v11179_v44  ;;  %9030 = vmatpush3.bf16.msra.mxu1 %v9027_v48  ;;  %v11200_v48 = vld [vmem:[#allocation2 + $0x112] sm:$0xff] }
 0x40c   : > { %9032 = vmatprep.subr.bf16.mxu1 %v9031_v53  ;;  %11715 = vst [vmem:[#allocation31_spill] sm:$0xff] %v11200_v48 }
 0x40e   : > { %8112 = vmatmul.mubr.f32.gmra.mrb[16].mxu1 %v11182_v40  ;;  %v4406_v40 = vld [vmem:[#allocation8 + $0x228] sm:$0xff] }
 0x40f   : > { %8114 = vmatprep.mubr.f32.mxu1 %v11185_v0  ;;  %v4405_v0 = vld [vmem:[#allocation8 + $0x220] sm:$0xff] }
 0x412   : > { %8115 = vmatmul.mubr.f32.gmra.mrb[18].mxu1 %v11188_v7  ;;  %v4403_v7 = vld [vmem:[#allocation8 + $0x210] sm:$0xff] }
 0x413   : > { %8117 = vmatprep.mubr.f32.mxu1 %v11191_v30  ;;  %v11209_v30 = vld [vmem:[#allocation2 + $0x13a] sm:$0xff] }
 0x414   : > { %11718 = vst [vmem:[#allocation34_spill] sm:$0xff] %v11209_v30 }
 0x416   : > { %8118 = vmatmul.mubr.f32.gmra.mrb[20].mxu1 %v11194_v19  ;;  %v11212_v19 = vld [vmem:[#allocation2 + $0x142] sm:$0xff] }
 0x417   : > { %8120 = vmatprep.mubr.f32.mxu1 %v11197_v50  ;;  %11719 = vst [vmem:[#allocation35_spill] sm:$0xff] %v11212_v19  ;;  %v11215_v50 = vld [vmem:[#allocation2 + $0x152] sm:$0xff] }
 0x418   : > { %11720 = vst [vmem:[#allocation36_spill] sm:$0xff] %v11215_v50 }
 0x41a   : > { %8121 = vmatmul.mubr.f32.gmra.mrb[22].mxu1 %v11200_v48  ;;  %v11218_v48 = vld [vmem:[#allocation2 + $0x15a] sm:$0xff] }
 0x41b   : > { %8123 = vmatprep.mubr.f32.mxu1 %v11203_v38  ;;  %11721 = vst [vmem:[#allocation37_spill] sm:$0xff] %v11218_v48  ;;  %v11221_v38 = vld [vmem:[#allocation2 + $0x16a] sm:$0xff] }
 0x41c   : > { %11722 = vst [vmem:[#allocation38_spill] sm:$0xff] %v11221_v38 }
 0x41e   : > { %8124 = vmatmul.mubr.f32.gmra.mrb[24].mxu1 %v11206_v54  ;;  %v11224_v54 = vld [vmem:[#allocation2 + $0x172] sm:$0xff] }
 0x41f   : > { %8126 = vmatprep.mubr.f32.mxu1 %v11209_v30  ;;  %11723 = vst [vmem:[#allocation39_spill] sm:$0xff] %v11224_v54  ;;  %v4404_v30 = vld [vmem:[#allocation8 + $0x218] sm:$0xff] }
 0x422   : > { %8127 = vmatmul.mubr.f32.gmra.mrb[26].mxu1 %v11212_v19  ;;  %v9035_v19 = vpack.c.bf16 %v4404_v30, %v4403_v7  ;;  %v4410_v7 = vld [vmem:[#allocation8 + $0x248] sm:$0xff] }
 0x423   : > { %8129 = vmatprep.mubr.f32.mxu1 %v11215_v50  ;;  %v4407_v50 = vld [vmem:[#allocation8 + $0x230] sm:$0xff]  ;;  %v4708_v30 = vld [vmem:[#allocation8 + $0x288] sm:$0xff] }
 0x426   : > { %8130 = vmatmul.mubr.f32.gmra.mrb[28].mxu1 %v11218_v48  ;;  %v9039_v48 = vpack.c.bf16 %v4406_v40, %v4405_v0  ;;  %v4414_v40 = vld [vmem:[#allocation8 + $0x268] sm:$0xff]  ;;  %v4416_v0 = vld [vmem:[#allocation8 + $0x278] sm:$0xff] }
 0x427   : > { %8132 = vmatprep.mubr.f32.mxu1 %v11221_v38  ;;  %v4408_v38 = vld [vmem:[#allocation8 + $0x238] sm:$0xff] }
 0x42a   : > { %8133 = vmatmul.mubr.f32.gmra.mrb[30].mxu1 %v11224_v54  ;;  %v9043_v54 = vpack.c.bf16 %v4408_v38, %v4407_v50  ;;  %v11260_v50 = vld [vmem:[#allocation2 + $0x188] sm:$0xff] }
 0x42b   : > { %8167 = vmatprep.mubr.f32.mxu1 %v10888_v21  ;;  %v4409_v21 = vld [vmem:[#allocation8 + $0x240] sm:$0xff]  ;;  %v4710_v38 = vld [vmem:[#allocation8 + $0x298] sm:$0xff] }
 0x42e   : > { %8168 = vmatmul.mubr.f32.vlgmr.msra.gmra.mrb[0].mxu1 %v10890_v45  ;;  %v9047_v45 = vpack.c.bf16 %v4410_v7, %v4409_v21  ;;  %v4369_v7 = vld [vmem:[#allocation2 + $0x21] sm:$0xff] }
 0x42f   : > { %8170 = vmatprep.mubr.f32.mxu1 %v10906_v61  ;;  %9034 = vmatpush3.bf16.msra.mxu1 %v9031_v53  ;;  %v4411_v61 = vld [vmem:[#allocation8 + $0x250] sm:$0xff]  ;;  %v4412_v53 = vld [vmem:[#allocation8 + $0x258] sm:$0xff] }
 0x430   : > { %9036 = vmatprep.subr.bf16.mxu1 %v9035_v19 }
 0x432   : > { %8171 = vmatmul.mubr.f32.gmra.mrb[2].mxu1 %v10908_v1  ;;  %v9051_v1 = vpack.c.bf16 %v4412_v53, %v4411_v61  ;;  %v4712_v61 = vld [vmem:[#allocation8 + $0x2a8] sm:$0xff] }
 0x433   : > { %8173 = vmatprep.mubr.f32.mxu1 %v10924_v49  ;;  %9038 = vmatpush3.bf16.msra.mxu1 %v9035_v19  ;;  %v4413_v49 = vld [vmem:[#allocation8 + $0x260] sm:$0xff]  ;;  %v11731_v19 = vld [vmem:[#allocation22_spill] sm:$0xff] }
 0x434   : > { %9040 = vmatprep.subr.bf16.mxu1 %v9039_v48  ;;  %v11263_v53 = vld [vmem:[#allocation2 + $0x31] sm:$0xff] }
 0x436   : > { %8174 = vmatmul.mubr.f32.gmra.mrb[4].mxu1 %v10926_v8  ;;  %v9055_v8 = vpack.c.bf16 %v4414_v40, %v4413_v49  ;;  %v11266_v49 = vld [vmem:[#allocation2 + $0x39] sm:$0xff] }
 0x437   : > { %8176 = vmatprep.mubr.f32.mxu1 %v10939_v47  ;;  %9042 = vmatpush3.bf16.msra.mxu1 %v9039_v48  ;;  %v4415_v47 = vld [vmem:[#allocation8 + $0x270] sm:$0xff] }
 0x438   : > { %9044 = vmatprep.subr.bf16.mxu1 %v9043_v54  ;;  %v4709_v48 = vld [vmem:[#allocation8 + $0x290] sm:$0xff] }
 0x439   : > { %v9067_v21 = vpack.c.bf16 %v4710_v38, %v4709_v48  ;;  %v4713_v40 = vld [vmem:[#allocation8 + $0x2b0] sm:$0xff] }
 0x43a   : > { %8177 = vmatmul.mubr.f32.gmra.mrb[6].mxu1 %v10941_v13  ;;  %v9059_v13 = vpack.c.bf16 %v4416_v0, %v4415_v47  ;;  %v11269_v47 = vld [vmem:[#allocation2 + $0x49] sm:$0xff]  ;;  %v11288_v48 = vld [vmem:[#allocation2 + $0x99] sm:$0xff] }
 0x43b   : > { %8179 = vmatprep.mubr.f32.mxu1 %v10953_v27  ;;  %9046 = vmatpush3.bf16.msra.mxu1 %v9043_v54  ;;  %v4707_v27 = vld [vmem:[#allocation8 + $0x280] sm:$0xff]  ;;  %v4368_v54 = vld [vmem:[#allocation2 + $0x19] sm:$0xff] }
 0x43c   : > { %9048 = vmatprep.subr.bf16.mxu1 %v9047_v45  ;;  %v4721_v38 = vld [vmem:[#allocation8 + $0x2f0] sm:$0xff] }
 0x43e   : > { %8180 = vmatmul.mubr.f32.gmra.mrb[8].mxu1 %v10955_v28  ;;  %v9063_v28 = vpack.c.bf16 %v4708_v30, %v4707_v27  ;;  %v4715_v27 = vld [vmem:[#allocation8 + $0x2c0] sm:$0xff]  ;;  %v4716_v30 = vld [vmem:[#allocation8 + $0x2c8] sm:$0xff] }
 0x43f   : > { %8182 = vmatprep.mubr.f32.mxu1 %v10967_v3  ;;  %9050 = vmatpush3.bf16.msra.mxu1 %v9047_v45  ;;  %v11724_v3 = vld [vmem:[#allocation13_spill] sm:$0xff] }
 0x440   : > { %9052 = vmatprep.subr.bf16.mxu1 %v9051_v1  ;;  %v4711_v45 = vld [vmem:[#allocation8 + $0x2a0] sm:$0xff] }
 0x442   : > { %8183 = vmatmul.mubr.f32.gmra.mrb[10].mxu1 %v10969_v24  ;;  %v11725_v24 = vld [vmem:[#allocation14_spill] sm:$0xff] }
 0x443   : > { %8185 = vmatprep.mubr.f32.mxu1 %v10981_v41  ;;  %9054 = vmatpush3.bf16.msra.mxu1 %v9051_v1  ;;  %v11726_v41 = vld [vmem:[#allocation15_spill] sm:$0xff]  ;;  %v9071_v1 = vpack.c.bf16 %v4712_v61, %v4711_v45  ;;  %v5015_v45 = vld [vmem:[#allocation8 + $0x308] sm:$0xff] }
 0x444   : > { %9056 = vmatprep.subr.bf16.mxu1 %v9055_v8  ;;  %v11739_v61 = vld [vmem:[#allocation26_spill] sm:$0xff] }
 0x446   : > { %8186 = vmatmul.mubr.f32.gmra.mrb[12].mxu1 %v10983_v51  ;;  %v11727_v51 = vld [vmem:[#allocation16_spill] sm:$0xff] }
 0x447   : > { %8188 = vmatprep.mubr.f32.mxu1 %v10995_v12  ;;  %9058 = vmatpush3.bf16.msra.mxu1 %v9055_v8  ;;  %v11728_v12 = vld [vmem:[#allocation18_spill] sm:$0xff]  ;;  %v4714_v8 = vld [vmem:[#allocation8 + $0x2b8] sm:$0xff] }
 0x448   : > { %9060 = vmatprep.subr.bf16.mxu1 %v9059_v13  ;;  %v9075_v0 = vpack.c.bf16 %v4714_v8, %v4713_v40  ;;  %v11743_v40 = vld [vmem:[#allocation30_spill] sm:$0xff]  ;;  %v11746_v8 = vld [vmem:[#allocation33_spill] sm:$0xff] }
 0x44a   : > { %8189 = vmatmul.mubr.f32.gmra.mrb[14].mxu1 %v10997_v14  ;;  %v11729_v14 = vld [vmem:[#allocation19_spill] sm:$0xff] }
 0x44b   : > { %8191 = vmatprep.mubr.f32.mxu1 %v11009_v59  ;;  %9062 = vmatpush3.bf16.msra.mxu1 %v9059_v13  ;;  %v11730_v59 = vld [vmem:[#allocation21_spill] sm:$0xff] }
 0x44c   : > { %9064 = vmatprep.subr.bf16.mxu1 %v9063_v28  ;;  %v11272_v13 = vld [vmem:[#allocation2 + $0x51] sm:$0xff] }
 0x44e   : > { %8192 = vmatmul.mubr.f32.gmra.mrb[16].mxu1 %v11011_v32  ;;  %v11732_v32 = vld [vmem:[#allocation23_spill] sm:$0xff] }
 0x44f   : > { %8194 = vmatprep.mubr.f32.mxu1 %v11023_v22  ;;  %v11733_v22 = vld [vmem:[#allocation24_spill] sm:$0xff] }
 0x452   : > { %8195 = vmatmul.mubr.f32.gmra.mrb[18].mxu1 %v11025_v17  ;;  %v11257_v17 = vld [vmem:[#allocation2 + $0x180] sm:$0xff] }
 0x453   : > { %8197 = vmatprep.mubr.f32.mxu1 %v11724_v3  ;;  %v9079_v3 = vpack.c.bf16 %v4716_v30, %v4715_v27  ;;  %v11748_v27 = vld [vmem:[#allocation35_spill] sm:$0xff]  ;;  %v11749_v30 = vld [vmem:[#allocation36_spill] sm:$0xff] }
 0x456   : > { %8198 = vmatmul.mubr.f32.gmra.mrb[20].mxu1 %v11725_v24  ;;  %v11278_v24 = vld [vmem:[#allocation2 + $0x69] sm:$0xff] }
 0x457   : > { %8200 = vmatprep.mubr.f32.mxu1 %v11726_v41  ;;  %v4717_v41 = vld [vmem:[#allocation8 + $0x2d0] sm:$0xff] }
 0x45a   : > { %8201 = vmatmul.mubr.f32.gmra.mrb[22].mxu1 %v11727_v51  ;;  %v4718_v51 = vld [vmem:[#allocation8 + $0x2d8] sm:$0xff] }
 0x45b   : > { %8203 = vmatprep.mubr.f32.mxu1 %v11728_v12  ;;  %v11281_v12 = vld [vmem:[#allocation2 + $0x79] sm:$0xff] }
 0x45e   : > { %8204 = vmatmul.mubr.f32.gmra.mrb[24].mxu1 %v11729_v14  ;;  %v9083_v14 = vpack.c.bf16 %v4718_v51, %v4717_v41  ;;  %v11751_v41 = vld [vmem:[#allocation38_spill] sm:$0xff]  ;;  %v11752_v51 = vld [vmem:[#allocation39_spill] sm:$0xff] }
 0x45f   : > { %8206 = vmatprep.mubr.f32.mxu1 %v11730_v59  ;;  %v11284_v59 = vld [vmem:[#allocation2 + $0x81] sm:$0xff] }
 0x462   : > { %8207 = vmatmul.mubr.f32.gmra.mrb[26].mxu1 %v11731_v19  ;;  %v4719_v19 = vld [vmem:[#allocation8 + $0x2e0] sm:$0xff] }
 0x463   : > { %8209 = vmatprep.mubr.f32.mxu1 %v11732_v32  ;;  %v4720_v32 = vld [vmem:[#allocation8 + $0x2e8] sm:$0xff] }
 0x466   : > { %8210 = vmatmul.mubr.f32.gmra.mrb[28].mxu1 %v11733_v22  ;;  %v9087_v22 = vpack.c.bf16 %v4720_v32, %v4719_v19  ;;  %v11346_v19 = vld [vmem:[#allocation2 + $0x18a] sm:$0xff]  ;;  %v5322_v32 = vld [vmem:[#allocation8 + $0x390] sm:$0xff] }
 0x467   : > { %8212 = vmatprep.mubr.f32.mxu1 %v11257_v17 }
 0x46a   : > { %8213 = vmatmul.mubr.f32.gmra.mrb[30].mxu1 %v11260_v50 }
 0x46b   : > { %8247 = vmatprep.mubr.f32.mxu1 %v4368_v54  ;;  %v4722_v54 = vld [vmem:[#allocation8 + $0x2f8] sm:$0xff] }
 0x46e   : > { %8248 = vmatmul.mubr.f32.vlgmr.msra.gmra.mrb[0].mxu1 %v4369_v7  ;;  %v5014_v7 = vld [vmem:[#allocation8 + $0x300] sm:$0xff] }
 0x46f   : > { %8250 = vmatprep.mubr.f32.mxu1 %v11263_v53  ;;  %9066 = vmatpush3.bf16.msra.mxu1 %v9063_v28  ;;  %v11275_v28 = vld [vmem:[#allocation2 + $0x61] sm:$0xff] }
 0x470   : > { %9068 = vmatprep.subr.bf16.mxu1 %v9067_v21 }
 0x472   : > { %8251 = vmatmul.mubr.f32.gmra.mrb[2].mxu1 %v11266_v49 }
 0x473   : > { %8253 = vmatprep.mubr.f32.mxu1 %v11269_v47  ;;  %9070 = vmatpush3.bf16.msra.mxu1 %v9067_v21  ;;  %v9091_v21 = vpack.c.bf16 %v4722_v54, %v4721_v38  ;;  %v4981_v38 = vld [vmem:[#allocation2 + $0x30] sm:$0xff] }
 0x474   : > { %9072 = vmatprep.subr.bf16.mxu1 %v9071_v1 }
 0x476   : > { %8254 = vmatmul.mubr.f32.gmra.mrb[4].mxu1 %v11272_v13 }
 0x477   : > { %8256 = vmatprep.mubr.f32.mxu1 %v11275_v28  ;;  %9074 = vmatpush3.bf16.msra.mxu1 %v9071_v1  ;;  %v11742_v1 = vld [vmem:[#allocation29_spill] sm:$0xff] }
 0x478   : > { %9076 = vmatprep.subr.bf16.mxu1 %v9075_v0 }
 0x47a   : > { %8257 = vmatmul.mubr.f32.gmra.mrb[6].mxu1 %v11278_v24 }
 0x47b   : > { %8259 = vmatprep.mubr.f32.mxu1 %v11281_v12  ;;  %9078 = vmatpush3.bf16.msra.mxu1 %v9075_v0  ;;  %v11747_v0 = vld [vmem:[#allocation34_spill] sm:$0xff] }
 0x47c   : > { %9080 = vmatprep.subr.bf16.mxu1 %v9079_v3 }
 0x47e   : > { %8260 = vmatmul.mubr.f32.gmra.mrb[8].mxu1 %v11284_v59 }
 0x47f   : > { %8262 = vmatprep.mubr.f32.mxu1 %v10934_v11  ;;  %9082 = vmatpush3.bf16.msra.mxu1 %v9079_v3  ;;  %v9095_v11 = vpack.c.bf16 %v5015_v45, %v5014_v7  ;;  %v11750_v3 = vld [vmem:[#allocation37_spill] sm:$0xff]  ;;  %v5325_v45 = vld [vmem:[#allocation8 + $0x3a8] sm:$0xff] }
 0x480   : > { %9084 = vmatprep.subr.bf16.mxu1 %v9083_v14  ;;  %v5324_v7 = vld [vmem:[#allocation8 + $0x3a0] sm:$0xff] }
 0x482   : > { %8263 = vmatmul.mubr.f32.gmra.mrb[10].mxu1 %v11288_v48 }
 0x483   : > { %8265 = vmatprep.mubr.f32.mxu1 %v10949_v16  ;;  %9086 = vmatpush3.bf16.msra.mxu1 %v9083_v14  ;;  %v11343_v14 = vld [vmem:[#allocation2 + $0x182] sm:$0xff] }
 0x484   : > { %9088 = vmatprep.subr.bf16.mxu1 %v9087_v22 }
 0x486   : > { %8266 = vmatmul.mubr.f32.gmra.mrb[12].mxu1 %v10946_v15  ;;  %v11734_v15 = vld [vmem:[#allocation20_spill] sm:$0xff] }
 0x487   : > { %8268 = vmatprep.mubr.f32.mxu1 %v10963_v43  ;;  %9090 = vmatpush3.bf16.msra.mxu1 %v9087_v22  ;;  %v11735_v16 = vmax.f32 %v11734_v15, 0.0  ;;  %v5017_v43 = vld [vmem:[#allocation8 + $0x318] sm:$0xff]  ;;  %v9135_v15 = vpack.c.bf16 %v5325_v45, %v5324_v7  ;;  %v5630_v7 = vld [vmem:[#allocation8 + $0x420] sm:$0xff]  ;;  %v5631_v45 = vld [vmem:[#allocation8 + $0x428] sm:$0xff] }
 0x488   : > { %9092 = vmatprep.subr.bf16.mxu1 %v9091_v21  ;;  %v5323_v22 = vld [vmem:[#allocation8 + $0x398] sm:$0xff] }
 0x489   : > { %v9131_v54 = vpack.c.bf16 %v5323_v22, %v5322_v32  ;;  %v5008_v32 = vld [vmem:[#allocation2 + $0x170] sm:$0xff]  ;;  %v9842_v22 = vld [vmem:[#allocation2] sm:$0xff] }
 0x48a   : > { %8269 = vmatmul.mubr.f32.gmra.mrb[14].mxu1 %v10960_v34  ;;  %v5016_v34 = vld [vmem:[#allocation8 + $0x310] sm:$0xff] }
 0x48b   : > { %8271 = vmatprep.mubr.f32.mxu1 %v10977_v39  ;;  %9094 = vmatpush3.bf16.msra.mxu1 %v9091_v21  ;;  %v4982_v21 = vld [vmem:[#allocation2 + $0x38] sm:$0xff] }
 0x48c   : > { %9096 = vmatprep.subr.bf16.mxu1 %v9095_v11 }
 0x48e   : > { %8272 = vmatmul.mubr.f32.gmra.mrb[16].mxu1 %v10974_v37  ;;  %v11736_v37 = vld [vmem:[#allocation17_spill] sm:$0xff] }
 0x48f   : > { %8274 = vmatprep.mubr.f32.mxu1 %v10991_v42  ;;  %v11737_v39 = vmax.f32 %v11736_v37, 0.0  ;;  %v5018_v42 = vld [vmem:[#allocation8 + $0x320] sm:$0xff]  ;;  %v4985_v37 = vld [vmem:[#allocation2 + $0x60] sm:$0xff] }
 0x492   : > { %8275 = vmatmul.mubr.f32.gmra.mrb[18].mxu1 %v10988_v6  ;;  %v9099_v6 = vpack.c.bf16 %v5017_v43, %v5016_v34  ;;  %v5326_v34 = vld [vmem:[#allocation8 + $0x3b0] sm:$0xff]  ;;  %v5327_v43 = vld [vmem:[#allocation8 + $0x3b8] sm:$0xff] }
 0x493   : > { %8277 = vmatprep.mubr.f32.mxu1 %v11005_v23 }
 0x496   : > { %8278 = vmatmul.mubr.f32.gmra.mrb[20].mxu1 %v11002_v18  ;;  %v5019_v18 = vld [vmem:[#allocation8 + $0x328] sm:$0xff] }
 0x497   : > { %8280 = vmatprep.mubr.f32.mxu1 %v11019_v63  ;;  %v9103_v23 = vpack.c.bf16 %v5019_v18, %v5018_v42  ;;  %v5021_v63 = vld [vmem:[#allocation8 + $0x338] sm:$0xff]  ;;  %v5328_v42 = vld [vmem:[#allocation8 + $0x3c0] sm:$0xff]  ;;  %v5329_v18 = vld [vmem:[#allocation8 + $0x3c8] sm:$0xff] }
 0x49a   : > { %8281 = vmatmul.mubr.f32.gmra.mrb[22].mxu1 %v11016_v31  ;;  %v5020_v31 = vld [vmem:[#allocation8 + $0x330] sm:$0xff] }
 0x49b   : > { %8283 = vmatprep.mubr.f32.mxu1 %v11033_v58  ;;  %v5022_v58 = vld [vmem:[#allocation8 + $0x340] sm:$0xff] }
 0x49e   : > { %8284 = vmatmul.mubr.f32.gmra.mrb[24].mxu1 %v11030_v52  ;;  %v9107_v52 = vpack.c.bf16 %v5021_v63, %v5020_v31  ;;  %v9143_v31 = vpack.c.bf16 %v5329_v18, %v5328_v42  ;;  %v4988_v63 = vld [vmem:[#allocation2 + $0x80] sm:$0xff]  ;;  %v5641_v42 = vld [vmem:[#allocation8 + $0x478] sm:$0xff] }
 0x49f   : > { %8286 = vmatprep.mubr.f32.mxu1 %v11047_v33  ;;  %v5299_v18 = vld [vmem:[#allocation2 + $0xc1] sm:$0xff] }
 0x4a2   : > { %8287 = vmatmul.mubr.f32.gmra.mrb[26].mxu1 %v11044_v9  ;;  %v5023_v9 = vld [vmem:[#allocation8 + $0x348] sm:$0xff] }
 0x4a3   : > { %8289 = vmatprep.mubr.f32.mxu1 %v11061_v57  ;;  %v9111_v33 = vpack.c.bf16 %v5023_v9, %v5022_v58  ;;  %v5025_v57 = vld [vmem:[#allocation8 + $0x358] sm:$0xff]  ;;  %v4989_v9 = vld [vmem:[#allocation2 + $0x90] sm:$0xff] }
 0x4a4   : > { %v5331_v58 = vld [vmem:[#allocation8 + $0x3d8] sm:$0xff] }
 0x4a6   : > { %8290 = vmatmul.mubr.f32.gmra.mrb[28].mxu1 %v11058_v55  ;;  %v5024_v55 = vld [vmem:[#allocation8 + $0x350] sm:$0xff] }
 0x4a7   : > { %8292 = vmatprep.mubr.f32.mxu1 %v11735_v16  ;;  %v4984_v16 = vld [vmem:[#allocation2 + $0x50] sm:$0xff] }
 0x4aa   : > { %8293 = vmatmul.mubr.f32.gmra.mrb[30].mxu1 %v11737_v39  ;;  %v9139_v39 = vpack.c.bf16 %v5327_v43, %v5326_v34  ;;  %v5637_v34 = vld [vmem:[#allocation8 + $0x458] sm:$0xff]  ;;  %v5295_v43 = vld [vmem:[#allocation2 + $0x91] sm:$0xff] }
 0x4ab   : > { %8327 = vmatprep.mubr.f32.mxu1 %v11137_v20  ;;  %v9115_v20 = vpack.c.bf16 %v5025_v57, %v5024_v55  ;;  %v4990_v55 = vld [vmem:[#allocation2 + $0x98] sm:$0xff]  ;;  %v5332_v57 = vld [vmem:[#allocation8 + $0x3e0] sm:$0xff] }
 0x4ae   : > { %8328 = vmatmul.mubr.f32.vlgmr.msra.gmra.mrb[0].mxu1 %v11140_v10  ;;  %v5026_v10 = vld [vmem:[#allocation8 + $0x360] sm:$0xff] }
 0x4af   : > { %8330 = vmatprep.mubr.f32.mxu1 %v11143_v4  ;;  %9098 = vmatpush3.bf16.msra.mxu1 %v9095_v11  ;;  %v5027_v4 = vld [vmem:[#allocation8 + $0x368] sm:$0xff]  ;;  %v4983_v11 = vld [vmem:[#allocation2 + $0x48] sm:$0xff] }
 0x4b0   : > { %9100 = vmatprep.subr.bf16.mxu1 %v9099_v6 }
 0x4b2   : > { %8331 = vmatmul.mubr.f32.gmra.mrb[2].mxu1 %v11146_v5  ;;  %v9119_v5 = vpack.c.bf16 %v5027_v4, %v5026_v10  ;;  %v4991_v10 = vld [vmem:[#allocation2 + $0xa8] sm:$0xff] }
 0x4b3   : > { %8333 = vmatprep.mubr.f32.mxu1 %v11149_v62  ;;  %9102 = vmatpush3.bf16.msra.mxu1 %v9099_v6  ;;  %v5028_v62 = vld [vmem:[#allocation8 + $0x370] sm:$0xff]  ;;  %v4986_v6 = vld [vmem:[#allocation2 + $0x68] sm:$0xff] }
 0x4b4   : > { %9104 = vmatprep.subr.bf16.mxu1 %v9103_v23 }
 0x4b6   : > { %8334 = vmatmul.mubr.f32.gmra.mrb[4].mxu1 %v11152_v56  ;;  %v5029_v56 = vld [vmem:[#allocation8 + $0x378] sm:$0xff] }
 0x4b7   : > { %8336 = vmatprep.mubr.f32.mxu1 %v11155_v60  ;;  %9106 = vmatpush3.bf16.msra.mxu1 %v9103_v23  ;;  %v9123_v60 = vpack.c.bf16 %v5029_v56, %v5028_v62  ;;  %v4987_v23 = vld [vmem:[#allocation2 + $0x78] sm:$0xff]  ;;  %v5334_v62 = vld [vmem:[#allocation8 + $0x3f0] sm:$0xff]  ;;  %v5335_v56 = vld [vmem:[#allocation8 + $0x3f8] sm:$0xff] }
 0x4b8   : > { %9108 = vmatprep.subr.bf16.mxu1 %v9107_v52 }
 0x4ba   : > { %8337 = vmatmul.mubr.f32.gmra.mrb[6].mxu1 %v11158_v2  ;;  %v5320_v2 = vld [vmem:[#allocation8 + $0x380] sm:$0xff] }
 0x4bb   : > { %8339 = vmatprep.mubr.f32.mxu1 %v11161_v26  ;;  %9110 = vmatpush3.bf16.msra.mxu1 %v9107_v52  ;;  %v5321_v26 = vld [vmem:[#allocation8 + $0x388] sm:$0xff]  ;;  %v5330_v52 = vld [vmem:[#allocation8 + $0x3d0] sm:$0xff] }
 0x4bc   : > { %9112 = vmatprep.subr.bf16.mxu1 %v9111_v33 }
 0x4be   : > { %8340 = vmatmul.mubr.f32.gmra.mrb[8].mxu1 %v11164_v25  ;;  %v9127_v25 = vpack.c.bf16 %v5321_v26, %v5320_v2  ;;  %v9155_v2 = vpack.c.bf16 %v5335_v56, %v5334_v62  ;;  %v4994_v26 = vld [vmem:[#allocation2 + $0xc8] sm:$0xff]  ;;  %v5314_v62 = vld [vmem:[#allocation2 + $0x171] sm:$0xff] }
 0x4bf   : > { %8342 = vmatprep.mubr.f32.mxu1 %v11167_v29  ;;  %9114 = vmatpush3.bf16.msra.mxu1 %v9111_v33  ;;  %v11738_v29 = vld [vmem:[#allocation25_spill] sm:$0xff]  ;;  %v9147_v33 = vpack.c.bf16 %v5331_v58, %v5330_v52  ;;  %v5304_v52 = vld [vmem:[#allocation2 + $0xf9] sm:$0xff]  ;;  %v5315_v56 = vld [vmem:[#allocation2 + $0x181] sm:$0xff] }
 0x4c0   : > { %9116 = vmatprep.subr.bf16.mxu1 %v9115_v20  ;;  %v5305_v58 = vld [vmem:[#allocation2 + $0x109] sm:$0xff] }
 0x4c2   : > { %8343 = vmatmul.mubr.f32.gmra.mrb[10].mxu1 %v11170_v35  ;;  %v11740_v35 = vld [vmem:[#allocation27_spill] sm:$0xff] }
 0x4c3   : > { %8345 = vmatprep.mubr.f32.mxu1 %v11173_v36  ;;  %9118 = vmatpush3.bf16.msra.mxu1 %v9115_v20  ;;  %v11741_v36 = vld [vmem:[#allocation28_spill] sm:$0xff]  ;;  %v5333_v20 = vld [vmem:[#allocation8 + $0x3e8] sm:$0xff] }
 0x4c4   : > { %9120 = vmatprep.subr.bf16.mxu1 %v9119_v5  ;;  %v9151_v4 = vpack.c.bf16 %v5333_v20, %v5332_v57  ;;  %v5309_v57 = vld [vmem:[#allocation2 + $0x139] sm:$0xff]  ;;  %v5310_v20 = vld [vmem:[#allocation2 + $0x141] sm:$0xff] }
 0x4c6   : > { %8346 = vmatmul.mubr.f32.gmra.mrb[12].mxu1 %v11176_v46  ;;  %v11744_v46 = vld [vmem:[#allocation31_spill] sm:$0xff] }
 0x4c7   : > { %8348 = vmatprep.mubr.f32.mxu1 %v11179_v44  ;;  %9122 = vmatpush3.bf16.msra.mxu1 %v9119_v5  ;;  %v11745_v44 = vld [vmem:[#allocation32_spill] sm:$0xff]  ;;  %v4992_v5 = vld [vmem:[#allocation2 + $0xb0] sm:$0xff] }
 0x4c8   : > { %9124 = vmatprep.subr.bf16.mxu1 %v9123_v60 }
 0x4ca   : > { %8349 = vmatmul.mubr.f32.gmra.mrb[14].mxu1 %v11738_v29  ;;  %v5627_v29 = vld [vmem:[#allocation8 + $0x408] sm:$0xff] }
 0x4cb   : > { %8351 = vmatprep.mubr.f32.mxu1 %v11739_v61  ;;  %9126 = vmatpush3.bf16.msra.mxu1 %v9123_v60  ;;  %v4993_v60 = vld [vmem:[#allocation2 + $0xc0] sm:$0xff]  ;;  %v4995_v61 = vld [vmem:[#allocation2 + $0xd8] sm:$0xff] }
 0x4cc   : > { %9128 = vmatprep.subr.bf16.mxu1 %v9127_v25 }
 0x4ce   : > { %8352 = vmatmul.mubr.f32.gmra.mrb[16].mxu1 %v11740_v35 }
 0x4cf   : > { %8354 = vmatprep.mubr.f32.mxu1 %v11741_v36  ;;  %v4996_v36 = vld [vmem:[#allocation2 + $0xe0] sm:$0xff] }
 0x4d2   : > { %8355 = vmatmul.mubr.f32.gmra.mrb[18].mxu1 %v11742_v1  ;;  %v4997_v1 = vld [vmem:[#allocation2 + $0xf0] sm:$0xff] }
 0x4d3   : > { %8357 = vmatprep.mubr.f32.mxu1 %v11743_v40  ;;  %v4998_v40 = vld [vmem:[#allocation2 + $0xf8] sm:$0xff] }
 0x4d6   : > { %8358 = vmatmul.mubr.f32.gmra.mrb[20].mxu1 %v11744_v46  ;;  %v4999_v46 = vld [vmem:[#allocation2 + $0x108] sm:$0xff] }
 0x4d7   : > { %8360 = vmatprep.mubr.f32.mxu1 %v11745_v44  ;;  %v5000_v44 = vld [vmem:[#allocation2 + $0x110] sm:$0xff] }
 0x4da   : > { %8361 = vmatmul.mubr.f32.gmra.mrb[22].mxu1 %v11746_v8  ;;  %v5001_v8 = vld [vmem:[#allocation2 + $0x120] sm:$0xff] }
 0x4db   : > { %8363 = vmatprep.mubr.f32.mxu1 %v11747_v0  ;;  %v5002_v0 = vld [vmem:[#allocation2 + $0x128] sm:$0xff] }
 0x4de   : > { %8364 = vmatmul.mubr.f32.gmra.mrb[24].mxu1 %v11748_v27  ;;  %v5003_v27 = vld [vmem:[#allocation2 + $0x138] sm:$0xff] }
 0x4df   : > { %8366 = vmatprep.mubr.f32.mxu1 %v11749_v30  ;;  %v5004_v30 = vld [vmem:[#allocation2 + $0x140] sm:$0xff] }
 0x4e2   : > { %8367 = vmatmul.mubr.f32.gmra.mrb[26].mxu1 %v11750_v3  ;;  %v5005_v3 = vld [vmem:[#allocation2 + $0x150] sm:$0xff] }
 0x4e3   : > { %8369 = vmatprep.mubr.f32.mxu1 %v11751_v41  ;;  %v5006_v41 = vld [vmem:[#allocation2 + $0x158] sm:$0xff] }
 0x4e6   : > { %8370 = vmatmul.mubr.f32.gmra.mrb[28].mxu1 %v11752_v51  ;;  %v5007_v51 = vld [vmem:[#allocation2 + $0x168] sm:$0xff] }
 0x4e7   : > { %8372 = vmatprep.mubr.f32.mxu1 %v11343_v14 }
 0x4ea   : > { %8373 = vmatmul.mubr.f32.gmra.mrb[30].mxu1 %v11346_v19 }
 0x4eb   : > { %8407 = vmatprep.mubr.f32.mxu1 %v4981_v38  ;;  %v5628_v38 = vld [vmem:[#allocation8 + $0x410] sm:$0xff] }
 0x4ee   : > { %8408 = vmatmul.mubr.f32.vlgmr.msra.gmra.mrb[0].mxu1 %v4982_v21 }
 0x4ef   : > { %8410 = vmatprep.mubr.f32.mxu1 %v4983_v11  ;;  %9130 = vmatpush3.bf16.msra.mxu1 %v9127_v25  ;;  %v5626_v25 = vld [vmem:[#allocation8 + $0x400] sm:$0xff]  ;;  %v9167_v11 = vpack.c.bf16 %v5631_v45, %v5630_v7  ;;  %v5615_v45 = vld [vmem:[#allocation2 + $0x13a] sm:$0xff] }
 0x4f0   : > { %9132 = vmatprep.subr.bf16.mxu1 %v9131_v54  ;;  %v9159_v35 = vpack.c.bf16 %v5627_v29, %v5626_v25  ;;  %v5593_v25 = vld [vmem:[#allocation2 + $0x32] sm:$0xff]  ;;  %v5594_v29 = vld [vmem:[#allocation2 + $0x3a] sm:$0xff]  ;;  %v5614_v7 = vld [vmem:[#allocation2 + $0x12a] sm:$0xff] }
 0x4f2   : > { %8411 = vmatmul.mubr.f32.gmra.mrb[2].mxu1 %v4984_v16  ;;  %v5635_v16 = vld [vmem:[#allocation8 + $0x448] sm:$0xff] }
 0x4f3   : > { %8413 = vmatprep.mubr.f32.mxu1 %v4985_v37  ;;  %9134 = vmatpush3.bf16.msra.mxu1 %v9131_v54  ;;  %v5629_v54 = vld [vmem:[#allocation8 + $0x418] sm:$0xff]  ;;  %v5639_v37 = vld [vmem:[#allocation8 + $0x468] sm:$0xff] }
 0x4f4   : > { %9136 = vmatprep.subr.bf16.mxu1 %v9135_v15  ;;  %v9163_v21 = vpack.c.bf16 %v5629_v54, %v5628_v38  ;;  %v5611_v38 = vld [vmem:[#allocation2 + $0x10a] sm:$0xff]  ;;  %v5612_v54 = vld [vmem:[#allocation2 + $0x112] sm:$0xff] }
 0x4f6   : > { %8414 = vmatmul.mubr.f32.gmra.mrb[4].mxu1 %v4986_v6  ;;  %v5640_v6 = vld [vmem:[#allocation8 + $0x470] sm:$0xff] }
 0x4f7   : > { %8416 = vmatprep.mubr.f32.mxu1 %v4987_v23  ;;  %9138 = vmatpush3.bf16.msra.mxu1 %v9135_v15  ;;  %v5633_v15 = vld [vmem:[#allocation8 + $0x438] sm:$0xff] }
 0x4f8   : > { %9140 = vmatprep.subr.bf16.mxu1 %v9139_v39  ;;  %v5300_v23 = vld [vmem:[#allocation2 + $0xc9] sm:$0xff] }
 0x4fa   : > { %8417 = vmatmul.mubr.f32.gmra.mrb[6].mxu1 %v4988_v63  ;;  %v5303_v63 = vld [vmem:[#allocation2 + $0xf1] sm:$0xff] }
 0x4fb   : > { %8419 = vmatprep.mubr.f32.mxu1 %v4989_v9  ;;  %9142 = vmatpush3.bf16.msra.mxu1 %v9139_v39  ;;  %v5297_v39 = vld [vmem:[#allocation2 + $0xa9] sm:$0xff]  ;;  %v5306_v9 = vld [vmem:[#allocation2 + $0x111] sm:$0xff] }
 0x4fc   : > { %9144 = vmatprep.subr.bf16.mxu1 %v9143_v31 }
 0x4fe   : > { %8420 = vmatmul.mubr.f32.gmra.mrb[8].mxu1 %v4990_v55  ;;  %v5308_v55 = vld [vmem:[#allocation2 + $0x129] sm:$0xff] }
 0x4ff   : > { %8422 = vmatprep.mubr.f32.mxu1 %v4991_v10  ;;  %9146 = vmatpush3.bf16.msra.mxu1 %v9143_v31  ;;  %v5301_v31 = vld [vmem:[#allocation2 + $0xd9] sm:$0xff]  ;;  %v5311_v10 = vld [vmem:[#allocation2 + $0x151] sm:$0xff] }
 0x500   : > { %9148 = vmatprep.subr.bf16.mxu1 %v9147_v33 }
 0x502   : > { %8423 = vmatmul.mubr.f32.gmra.mrb[10].mxu1 %v4992_v5  ;;  %v5313_v5 = vld [vmem:[#allocation2 + $0x169] sm:$0xff] }
 0x503   : > { %8425 = vmatprep.mubr.f32.mxu1 %v4993_v60  ;;  %9150 = vmatpush3.bf16.msra.mxu1 %v9147_v33  ;;  %v5307_v33 = vld [vmem:[#allocation2 + $0x121] sm:$0xff]  ;;  %v5317_v60 = vld [vmem:[#allocation2 + $0x199] sm:$0xff] }
 0x504   : > { %9152 = vmatprep.subr.bf16.mxu1 %v9151_v4 }
 0x506   : > { %8426 = vmatmul.mubr.f32.gmra.mrb[12].mxu1 %v4994_v26  ;;  %v5318_v26 = vld [vmem:[#allocation2 + $0x1a1] sm:$0xff] }
 0x507   : > { %8428 = vmatprep.mubr.f32.mxu1 %v4995_v61  ;;  %9154 = vmatpush3.bf16.msra.mxu1 %v9151_v4  ;;  %v5312_v4 = vld [vmem:[#allocation2 + $0x159] sm:$0xff]  ;;  %v5595_v61 = vld [vmem:[#allocation2 + $0x4a] sm:$0xff] }
 0x508   : > { %9156 = vmatprep.subr.bf16.mxu1 %v9155_v2 }
 0x50a   : > { %8429 = vmatmul.mubr.f32.gmra.mrb[14].mxu1 %v4996_v36  ;;  %v5597_v36 = vld [vmem:[#allocation2 + $0x62] sm:$0xff] }
 0x50b   : > { %8431 = vmatprep.mubr.f32.mxu1 %v4997_v1  ;;  %9158 = vmatpush3.bf16.msra.mxu1 %v9155_v2  ;;  %v5316_v2 = vld [vmem:[#allocation2 + $0x189] sm:$0xff] }
 0x50c   : > { %9160 = vmatprep.subr.bf16.mxu1 %v9159_v35  ;;  %v5598_v1 = vld [vmem:[#allocation2 + $0x6a] sm:$0xff] }
 0x50e   : > { %8432 = vmatmul.mubr.f32.gmra.mrb[16].mxu1 %v4998_v40  ;;  %v5599_v40 = vld [vmem:[#allocation2 + $0x7a] sm:$0xff] }
 0x50f   : > { %8434 = vmatprep.mubr.f32.mxu1 %v4999_v46  ;;  %v5600_v46 = vld [vmem:[#allocation2 + $0x82] sm:$0xff] }
 0x512   : > { %8435 = vmatmul.mubr.f32.gmra.mrb[18].mxu1 %v5000_v44  ;;  %v5601_v44 = vld [vmem:[#allocation2 + $0x92] sm:$0xff] }
 0x513   : > { %8437 = vmatprep.mubr.f32.mxu1 %v5001_v8  ;;  %v5602_v8 = vld [vmem:[#allocation2 + $0x9a] sm:$0xff] }
 0x516   : > { %8438 = vmatmul.mubr.f32.gmra.mrb[20].mxu1 %v5002_v0  ;;  %v5603_v0 = vld [vmem:[#allocation2 + $0xaa] sm:$0xff] }
 0x517   : > { %8440 = vmatprep.mubr.f32.mxu1 %v5003_v27  ;;  %v5604_v27 = vld [vmem:[#allocation2 + $0xb2] sm:$0xff] }
 0x51a   : > { %8441 = vmatmul.mubr.f32.gmra.mrb[22].mxu1 %v5004_v30  ;;  %v5605_v30 = vld [vmem:[#allocation2 + $0xc2] sm:$0xff] }
 0x51b   : > { %8443 = vmatprep.mubr.f32.mxu1 %v5005_v3  ;;  %v5606_v3 = vld [vmem:[#allocation2 + $0xca] sm:$0xff] }
 0x51e   : > { %8444 = vmatmul.mubr.f32.gmra.mrb[24].mxu1 %v5006_v41  ;;  %v5607_v41 = vld [vmem:[#allocation2 + $0xda] sm:$0xff] }
 0x51f   : > { %8446 = vmatprep.mubr.f32.mxu1 %v5007_v51  ;;  %v5608_v51 = vld [vmem:[#allocation2 + $0xe2] sm:$0xff] }
 0x522   : > { %8447 = vmatmul.mubr.f32.gmra.mrb[26].mxu1 %v5008_v32  ;;  %v5609_v32 = vld [vmem:[#allocation2 + $0xf2] sm:$0xff] }
 0x523   : > { %8449 = vmatprep.mubr.f32.mxu1 %v11257_v17  ;;  %v5632_v17 = vld [vmem:[#allocation8 + $0x430] sm:$0xff] }
 0x526   : > { %8450 = vmatmul.mubr.f32.gmra.mrb[28].mxu1 %v11260_v50  ;;  %v9171_v50 = vpack.c.bf16 %v5633_v15, %v5632_v17  ;;  %v5617_v17 = vld [vmem:[#allocation2 + $0x152] sm:$0xff]  ;;  %v5618_v15 = vld [vmem:[#allocation2 + $0x15a] sm:$0xff] }
 0x527   : > { %8452 = vmatprep.mubr.f32.mxu1 %v9842_v22 }
 0x52a   : > { %8453 = vmatmul.mubr.f32.gmra.mrb[30].mxu1 %v9842_v22  ;;  %v5610_v22 = vld [vmem:[#allocation2 + $0xfa] sm:$0xff] }
 0x52b   : > { %8487 = vmatprep.mubr.f32.mxu1 %v11263_v53  ;;  %v5634_v53 = vld [vmem:[#allocation8 + $0x440] sm:$0xff] }
 0x52e   : > { %8488 = vmatmul.mubr.f32.vlgmr.msra.gmra.mrb[0].mxu1 %v11266_v49  ;;  %v9175_v49 = vpack.c.bf16 %v5635_v16, %v5634_v53  ;;  %v5620_v53 = vld [vmem:[#allocation2 + $0x172] sm:$0xff]  ;;  %v5623_v16 = vld [vmem:[#allocation2 + $0x19a] sm:$0xff] }
 0x52f   : > { %8490 = vmatprep.mubr.f32.mxu1 %v11269_v47  ;;  %9162 = vmatpush3.bf16.msra.mxu1 %v9159_v35  ;;  %v5636_v47 = vld [vmem:[#allocation8 + $0x450] sm:$0xff]  ;;  %v5596_v35 = vld [vmem:[#allocation2 + $0x52] sm:$0xff] }
 0x530   : > { %9164 = vmatprep.subr.bf16.mxu1 %v9163_v21 }
 0x532   : > { %8491 = vmatmul.mubr.f32.gmra.mrb[2].mxu1 %v11272_v13  ;;  %v9179_v13 = vpack.c.bf16 %v5637_v34, %v5636_v47  ;;  %v11365_v47 = vld [vmem:[%s11521_s4] ss:$0 sm:$0xff] }
 0x533   : > { %8493 = vmatprep.mubr.f32.mxu1 %v11275_v28  ;;  %9166 = vmatpush3.bf16.msra.mxu1 %v9163_v21  ;;  %v5638_v28 = vld [vmem:[#allocation8 + $0x460] sm:$0xff]  ;;  %v5613_v21 = vld [vmem:[#allocation2 + $0x122] sm:$0xff] }
 0x534   : > { %9168 = vmatprep.subr.bf16.mxu1 %v9167_v11 }
 0x536   : > { %8494 = vmatmul.mubr.f32.gmra.mrb[4].mxu1 %v11278_v24  ;;  %v9183_v24 = vpack.c.bf16 %v5639_v37, %v5638_v28 }
 0x537   : > { %8496 = vmatprep.mubr.f32.mxu1 %v11281_v12  ;;  %9170 = vmatpush3.bf16.msra.mxu1 %v9167_v11  ;;  %v5298_v12 = vld [vmem:[#allocation2 + $0xb1] sm:$0xff]  ;;  %v5616_v11 = vld [vmem:[#allocation2 + $0x142] sm:$0xff] }
 0x538   : > { %9172 = vmatprep.subr.bf16.mxu1 %v9171_v50 }
 0x53a   : > { %8497 = vmatmul.mubr.f32.gmra.mrb[6].mxu1 %v11284_v59  ;;  %v9187_v59 = vpack.c.bf16 %v5641_v42, %v5640_v6 }
 0x53b   : > { %8499 = vmatprep.mubr.f32.mxu1 %v5295_v43  ;;  %9174 = vmatpush3.bf16.msra.mxu1 %v9171_v50  ;;  %v5619_v50 = vld [vmem:[#allocation2 + $0x16a] sm:$0xff] }
 0x53c   : > { %9176 = vmatprep.subr.bf16.mxu1 %v9175_v49 }
 0x53e   : > { %8500 = vmatmul.mubr.f32.gmra.mrb[8].mxu1 %v11288_v48  ;;  %v5302_v48 = vld [vmem:[#allocation2 + $0xe1] sm:$0xff] }
 0x53f   : > { %8502 = vmatprep.mubr.f32.mxu1 %v5297_v39  ;;  %9178 = vmatpush3.bf16.msra.mxu1 %v9175_v49  ;;  %v5624_v49 = vld [vmem:[#allocation2 + $0x1a2] sm:$0xff] }
 0x540   : > { %9180 = vmatprep.subr.bf16.mxu1 %v9179_v13 }
 0x542   : > { %8503 = vmatmul.mubr.f32.gmra.mrb[10].mxu1 %v5298_v12 }
 0x543   : > { %8505 = vmatprep.mubr.f32.mxu1 %v5299_v18  ;;  %9182 = vmatpush3.bf16.msra.mxu1 %v9179_v13 }
 0x544   : > { %9184 = vmatprep.subr.bf16.mxu1 %v9183_v24 }
 0x546   : > { %8506 = vmatmul.mubr.f32.gmra.mrb[12].mxu1 %v5300_v23  ;;  %v9845_v23 = vld [vmem:[%s10257_s10 + $0x39] sm:$0xff] }
 0x547   : > { %8508 = vmatprep.mubr.f32.mxu1 %v5301_v31  ;;  %9186 = vmatpush3.bf16.msra.mxu1 %v9183_v24 }
 0x548   : > { %9188 = vmatprep.subr.bf16.mxu1 %v9187_v59 }
 0x54a   : > { %8509 = vmatmul.mubr.f32.gmra.mrb[14].mxu1 %v5302_v48  ;;  %v9846_v48 = vld [vmem:[%s10257_s10 + $0x31] sm:$0xff] }
 0x54b   : > { %8511 = vmatprep.mubr.f32.mxu1 %v5303_v63  ;;  %9190 = vmatpush3.bf16.msra.mxu1 %v9187_v59 }
 0x54e   : > { %8512 = vmatmul.mubr.f32.gmra.mrb[16].mxu1 %v5304_v52 }
 0x54f   : > { %8514 = vmatprep.mubr.f32.mxu1 %v5305_v58 }
 0x552   : > { %8515 = vmatmul.mubr.f32.gmra.mrb[18].mxu1 %v5306_v9 }
 0x553   : > { %8517 = vmatprep.mubr.f32.mxu1 %v5307_v33 }
 0x556   : > { %8518 = vmatmul.mubr.f32.gmra.mrb[20].mxu1 %v5308_v55 }
 0x557   : > { %8520 = vmatprep.mubr.f32.mxu1 %v5309_v57 }
 0x55a   : > { %8521 = vmatmul.mubr.f32.gmra.mrb[22].mxu1 %v5310_v20  ;;  %v9847_v20 = vld [vmem:[%s10257_s10 + $0x51] sm:$0xff] }
 0x55b   : > { %8523 = vmatprep.mubr.f32.mxu1 %v5311_v10 }
 0x55e   : > { %8524 = vmatmul.mubr.f32.gmra.mrb[24].mxu1 %v5312_v4  ;;  %v9848_v4 = vld [vmem:[%s10257_s10 + $0x49] sm:$0xff] }
 0x55f   : > { %8526 = vmatprep.mubr.f32.mxu1 %v5313_v5 }
 0x562   : > { %8527 = vmatmul.mubr.f32.gmra.mrb[26].mxu1 %v5314_v62 }
 0x563   : > { %8529 = vmatprep.mubr.f32.mxu1 %v5315_v56 }
 0x566   : > { %8530 = vmatmul.mubr.f32.gmra.mrb[28].mxu1 %v5316_v2 }
 0x567   : > { %8532 = vmatprep.mubr.f32.mxu1 %v5317_v60 }
 0x56a   : > { %8533 = vmatmul.mubr.f32.gmra.mrb[30].mxu1 %v5318_v26 }
 0x56b   : > { %8567 = vmatprep.mubr.f32.mxu1 %v5593_v25 }
 0x56e   : > { %8568 = vmatmul.mubr.f32.vlgmr.msra.gmra.mrb[0].mxu1 %v5594_v29  ;;  %v9849_v29 = vld [vmem:[%s10257_s10 + $0x69] sm:$0xff] }
 0x56f   : > { %8570 = vmatprep.mubr.f32.mxu1 %v5595_v61 }
 0x572   : > { %8571 = vmatmul.mubr.f32.gmra.mrb[2].mxu1 %v5596_v35  ;;  %v9850_v35 = vld [vmem:[%s10257_s10 + $0x61] sm:$0xff] }
 0x573   : > { %8573 = vmatprep.mubr.f32.mxu1 %v5597_v36 }
 0x576   : > { %8574 = vmatmul.mubr.f32.gmra.mrb[4].mxu1 %v5598_v1 }
 0x577   : > { %8576 = vmatprep.mubr.f32.mxu1 %v5599_v40 }
 0x57a   : > { %8577 = vmatmul.mubr.f32.gmra.mrb[6].mxu1 %v5600_v46 }
 0x57b   : > { %8579 = vmatprep.mubr.f32.mxu1 %v5601_v44 }
 0x57e   : > { %8580 = vmatmul.mubr.f32.gmra.mrb[8].mxu1 %v5602_v8 }
 0x57f   : > { %8582 = vmatprep.mubr.f32.mxu1 %v5603_v0 }
 0x582   : > { %8583 = vmatmul.mubr.f32.gmra.mrb[10].mxu1 %v5604_v27  ;;  %v9851_v27 = vld [vmem:[%s10257_s10 + $0x81] sm:$0xff] }
 0x583   : > { %8585 = vmatprep.mubr.f32.mxu1 %v5605_v30 }
 0x586   : > { %8586 = vmatmul.mubr.f32.gmra.mrb[12].mxu1 %v5606_v3  ;;  %v9852_v3 = vld [vmem:[%s10257_s10 + $0x79] sm:$0xff] }
 0x587   : > { %8588 = vmatprep.mubr.f32.mxu1 %v5607_v41 }
 0x58a   : > { %8589 = vmatmul.mubr.f32.gmra.mrb[14].mxu1 %v5608_v51 }
 0x58b   : > { %8591 = vmatprep.mubr.f32.mxu1 %v5609_v32 }
 0x58e   : > { %8592 = vmatmul.mubr.f32.gmra.mrb[16].mxu1 %v5610_v22 }
 0x58f   : > { %8594 = vmatprep.mubr.f32.mxu1 %v5611_v38 }
 0x592   : > { %8595 = vmatmul.mubr.f32.gmra.mrb[18].mxu1 %v5612_v54 }
 0x593   : > { %8597 = vmatprep.mubr.f32.mxu1 %v5613_v21 }
 0x596   : > { %8598 = vmatmul.mubr.f32.gmra.mrb[20].mxu1 %v5614_v7  ;;  %v9853_v7 = vld [vmem:[%s10257_s10 + $0x99] sm:$0xff] }
 0x597   : > { %8600 = vmatprep.mubr.f32.mxu1 %v5615_v45 }
 0x59a   : > { %8601 = vmatmul.mubr.f32.gmra.mrb[22].mxu1 %v5616_v11  ;;  %v9854_v11 = vld [vmem:[%s10257_s10 + $0x91] sm:$0xff] }
 0x59b   : > { %8603 = vmatprep.mubr.f32.mxu1 %v5617_v17 }
 0x59e   : > { %8604 = vmatmul.mubr.f32.gmra.mrb[24].mxu1 %v5618_v15 }
 0x59f   : > { %8606 = vmatprep.mubr.f32.mxu1 %v5619_v50 }
 0x5a2   : > { %8607 = vmatmul.mubr.f32.gmra.mrb[26].mxu1 %v5620_v53 }
 0x5a3   : > { %8609 = vmatprep.mubr.f32.mxu1 %v11343_v14  ;;  %v9843_v14 = vld [vmem:[%s10257_s10 + $0x21] sm:$0xff] }
 0x5a6   : > { %8610 = vmatmul.mubr.f32.gmra.mrb[28].mxu1 %v11346_v19  ;;  %v9844_v19 = vld [vmem:[%s10257_s10 + $0x19] sm:$0xff] }
 0x5a7   : > { %8612 = vmatprep.mubr.f32.mxu1 %v5623_v16 }
 0x5aa   : > { %8613 = vmatmul.mubr.f32.gmra.mrb[30].mxu1 %v5624_v49 }
 0x641   : > { %v8569_v34 = vpop.f32.mrb[0].mxu1 }
 0x642   : > { %v9223_v43 = vadd.f32 %v8569_v34, %v11365_v47  ;;  %v5708_v13 = vpop.f32.mrb[1].mxu1 }
 0x643   : > { %v9224_v28 = vadd.f32 %v11365_v47, %v5708_v13 }
 0x644   : > { %v5900_v37 = vadd.f32 %v9843_v14, %v9223_v43  ;;  %v9855_v43 = vld [vmem:[%s10257_s10 + $0xb1] sm:$0xff] }
 0x645   : > { %v5899_v39 = vadd.f32 %v9844_v19, %v9224_v28  ;;  %v8572_v24 = vpop.f32.mrb[2].mxu1  ;;  %v9856_v28 = vld [vmem:[%s10257_s10 + $0xa9] sm:$0xff] }
 0x646   : > { %v5932_v12 = vmax.f32 %v5900_v37, 0.0  ;;  %v9225_v6 = vadd.f32 %v8572_v24, %v11365_v47  ;;  %v5718_v42 = vpop.f32.mrb[3].mxu1 }
 0x647   : > { %v5931_v18 = vmax.f32 %v5899_v39, 0.0  ;;  %v9226_v59 = vadd.f32 %v11365_v47, %v5718_v42  ;;  %v9857_v42 = vld [vmem:[%s10257_s10 + $0xc9] sm:$0xff] }
 0x648   : > { %5964 = vst [vmem:[%s11374_s12 + $0x8] sm:$0xff] %v5932_v12  ;;  %v5902_v31 = vadd.f32 %v9845_v23, %v9225_v6 }
 0x649   : > { %5963 = vst [vmem:[%s11374_s12] sm:$0xff] %v5931_v18  ;;  %v5901_v63 = vadd.f32 %v9846_v48, %v9226_v59  ;;  %v8575_v52 = vpop.f32.mrb[4].mxu1  ;;  %v9858_v59 = vld [vmem:[%s10257_s10 + $0xc1] sm:$0xff] }
 0x64a   : > { %v5934_v58 = vmax.f32 %v5902_v31, 0.0  ;;  %v9227_v9 = vadd.f32 %v8575_v52, %v11365_v47  ;;  %v5728_v33 = vpop.f32.mrb[5].mxu1 }
 0x64b   : > { %v5933_v55 = vmax.f32 %v5901_v63, 0.0  ;;  %v9228_v57 = vadd.f32 %v11365_v47, %v5728_v33  ;;  %v9859_v33 = vld [vmem:[%s10257_s10 + $0xe1] sm:$0xff] }
 0x64c   : > { %5966 = vst [vmem:[%s11374_s12 + $0x18] sm:$0xff] %v5934_v58  ;;  %v5904_v10 = vadd.f32 %v9847_v20, %v9227_v9 }
 0x64d   : > { %5965 = vst [vmem:[%s11374_s12 + $0x10] sm:$0xff] %v5933_v55  ;;  %v5903_v5 = vadd.f32 %v9848_v4, %v9228_v57  ;;  %v8578_v62 = vpop.f32.mrb[6].mxu1  ;;  %v9860_v57 = vld [vmem:[%s10257_s10 + $0xd9] sm:$0xff] }
 0x64e   : > { %v5936_v56 = vmax.f32 %v5904_v10, 0.0  ;;  %v9229_v60 = vadd.f32 %v8578_v62, %v11365_v47  ;;  %v5738_v2 = vpop.f32.mrb[7].mxu1 }
 0x64f   : > { %v5935_v26 = vmax.f32 %v5903_v5, 0.0  ;;  %v9230_v25 = vadd.f32 %v11365_v47, %v5738_v2  ;;  %v9861_v2 = vld [vmem:[%s10257_s10 + $0xf9] sm:$0xff] }
 0x650   : > { %5968 = vst [vmem:[%s11374_s12 + $0x28] sm:$0xff] %v5936_v56  ;;  %v5906_v61 = vadd.f32 %v9849_v29, %v9229_v60 }
 0x651   : > { %5967 = vst [vmem:[%s11374_s12 + $0x20] sm:$0xff] %v5935_v26  ;;  %v5905_v36 = vadd.f32 %v9850_v35, %v9230_v25  ;;  %v8581_v1 = vpop.f32.mrb[8].mxu1  ;;  %v9862_v25 = vld [vmem:[%s10257_s10 + $0xf1] sm:$0xff] }
 0x652   : > { %v5938_v40 = vmax.f32 %v5906_v61, 0.0  ;;  %v9231_v46 = vadd.f32 %v8581_v1, %v11365_v47  ;;  %v5748_v44 = vpop.f32.mrb[9].mxu1 }
 0x653   : > { %v5937_v8 = vmax.f32 %v5905_v36, 0.0  ;;  %v9232_v0 = vadd.f32 %v11365_v47, %v5748_v44  ;;  %v9863_v44 = vld [vmem:[%s10257_s10 + $0x111] sm:$0xff] }
 0x654   : > { %5970 = vst [vmem:[%s11374_s12 + $0x38] sm:$0xff] %v5938_v40  ;;  %v5908_v30 = vadd.f32 %v9851_v27, %v9231_v46 }
 0x655   : > { %5969 = vst [vmem:[%s11374_s12 + $0x30] sm:$0xff] %v5937_v8  ;;  %v5907_v41 = vadd.f32 %v9852_v3, %v9232_v0  ;;  %v8584_v51 = vpop.f32.mrb[10].mxu1  ;;  %v9864_v0 = vld [vmem:[%s10257_s10 + $0x109] sm:$0xff] }
 0x656   : > { %v5940_v32 = vmax.f32 %v5908_v30, 0.0  ;;  %v9233_v22 = vadd.f32 %v8584_v51, %v11365_v47  ;;  %v5758_v38 = vpop.f32.mrb[11].mxu1 }
 0x657   : > { %v5939_v54 = vmax.f32 %v5907_v41, 0.0  ;;  %v9234_v21 = vadd.f32 %v11365_v47, %v5758_v38  ;;  %v9865_v38 = vld [vmem:[%s10257_s10 + $0x129] sm:$0xff] }
 0x658   : > { %5972 = vst [vmem:[%s11374_s12 + $0x48] sm:$0xff] %v5940_v32  ;;  %v5910_v45 = vadd.f32 %v9853_v7, %v9233_v22 }
 0x659   : > { %5971 = vst [vmem:[%s11374_s12 + $0x40] sm:$0xff] %v5939_v54  ;;  %v5909_v17 = vadd.f32 %v9854_v11, %v9234_v21  ;;  %v8587_v15 = vpop.f32.mrb[12].mxu1  ;;  %v9866_v21 = vld [vmem:[%s10257_s10 + $0x121] sm:$0xff] }
 0x65a   : > { %v5942_v50 = vmax.f32 %v5910_v45, 0.0  ;;  %v9235_v53 = vadd.f32 %v8587_v15, %v11365_v47  ;;  %v5768_v16 = vpop.f32.mrb[13].mxu1 }
 0x65b   : > { %v5941_v49 = vmax.f32 %v5909_v17, 0.0  ;;  %v9236_v34 = vadd.f32 %v11365_v47, %v5768_v16  ;;  %v9867_v16 = vld [vmem:[%s10257_s10 + $0x141] sm:$0xff] }
 0x65c   : > { %5974 = vst [vmem:[%s11374_s12 + $0x58] sm:$0xff] %v5942_v50  ;;  %v5912_v13 = vadd.f32 %v9855_v43, %v9235_v53 }
 0x65d   : > { %5973 = vst [vmem:[%s11374_s12 + $0x50] sm:$0xff] %v5941_v49  ;;  %v5911_v14 = vadd.f32 %v9856_v28, %v9236_v34  ;;  %v8590_v37 = vpop.f32.mrb[14].mxu1  ;;  %v9868_v34 = vld [vmem:[%s10257_s10 + $0x139] sm:$0xff] }
 0x65e   : > { %v5944_v19 = vmax.f32 %v5912_v13, 0.0  ;;  %v9237_v39 = vadd.f32 %v8590_v37, %v11365_v47  ;;  %v5778_v24 = vpop.f32.mrb[15].mxu1 }
 0x65f   : > { %v5943_v12 = vmax.f32 %v5911_v14, 0.0  ;;  %v9238_v6 = vadd.f32 %v11365_v47, %v5778_v24  ;;  %v9869_v24 = vld [vmem:[%s10257_s10 + $0x159] sm:$0xff] }
 0x660   : > { %5976 = vst [vmem:[%s11374_s12 + $0x68] sm:$0xff] %v5944_v19  ;;  %v5914_v18 = vadd.f32 %v9857_v42, %v9237_v39 }
 0x661   : > { %5975 = vst [vmem:[%s11374_s12 + $0x60] sm:$0xff] %v5943_v12  ;;  %v5913_v23 = vadd.f32 %v9858_v59, %v9238_v6  ;;  %v8593_v31 = vpop.f32.mrb[16].mxu1  ;;  %v9870_v6 = vld [vmem:[%s10257_s10 + $0x151] sm:$0xff] }
 0x662   : > { %v5946_v48 = vmax.f32 %v5914_v18, 0.0  ;;  %v9239_v63 = vadd.f32 %v8593_v31, %v11365_v47  ;;  %v5788_v52 = vpop.f32.mrb[17].mxu1 }
 0x663   : > { %v5945_v58 = vmax.f32 %v5913_v23, 0.0  ;;  %v9240_v9 = vadd.f32 %v11365_v47, %v5788_v52  ;;  %v9871_v52 = vld [vmem:[%s10257_s10 + $0x171] sm:$0xff] }
 0x664   : > { %5978 = vst [vmem:[%s11374_s12 + $0x78] sm:$0xff] %v5946_v48  ;;  %v5916_v55 = vadd.f32 %v9859_v33, %v9239_v63 }
 0x665   : > { %5977 = vst [vmem:[%s11374_s12 + $0x70] sm:$0xff] %v5945_v58  ;;  %v5915_v20 = vadd.f32 %v9860_v57, %v9240_v9  ;;  %v8596_v10 = vpop.f32.mrb[18].mxu1  ;;  %v9872_v9 = vld [vmem:[%s10257_s10 + $0x169] sm:$0xff] }
 0x666   : > { %v5948_v4 = vmax.f32 %v5916_v55, 0.0  ;;  %v9241_v5 = vadd.f32 %v8596_v10, %v11365_v47  ;;  %v5798_v62 = vpop.f32.mrb[19].mxu1 }
 0x667   : > { %v5947_v56 = vmax.f32 %v5915_v20, 0.0  ;;  %v9242_v60 = vadd.f32 %v11365_v47, %v5798_v62  ;;  %v9873_v62 = vld [vmem:[%s10257_s10 + $0x189] sm:$0xff] }
 0x668   : > { %5980 = vst [vmem:[%s11374_s12 + $0x88] sm:$0xff] %v5948_v4  ;;  %v5918_v26 = vadd.f32 %v9861_v2, %v9241_v5 }
 0x669   : > { %5979 = vst [vmem:[%s11374_s12 + $0x80] sm:$0xff] %v5947_v56  ;;  %v5917_v29 = vadd.f32 %v9862_v25, %v9242_v60  ;;  %v8599_v61 = vpop.f32.mrb[20].mxu1  ;;  %v9874_v60 = vld [vmem:[%s10257_s10 + $0x181] sm:$0xff]  ;;  %s9967_s10 = scalar_lea.vmem %s9966_s9, 8192 }
 0x66a   : > { %v5950_v35 = vmax.f32 %v5918_v26, 0.0  ;;  %v9243_v36 = vadd.f32 %v8599_v61, %v11365_v47  ;;  %v5808_v1 = vpop.f32.mrb[21].mxu1  ;;  %p9969_p9 = scmp.lt.s32.totalorder %s9967_s10, %s9961_s14 }
 0x66b   : > { %v5949_v40 = vmax.f32 %v5917_v29, 0.0  ;;  %v9244_v46 = vadd.f32 %v11365_v47, %v5808_v1 }
 0x66c   : > { %5982 = vst [vmem:[%s11374_s12 + $0x98] sm:$0xff] %v5950_v35  ;;  %v5920_v8 = vadd.f32 %v9863_v44, %v9243_v36  ;;  %p9970_p12 = por %p9969_p9, %p9968_p7 }
 0x66d   : > { %5981 = vst [vmem:[%s11374_s12 + $0x90] sm:$0xff] %v5949_v40  ;;  %v5919_v27 = vadd.f32 %v9864_v0, %v9244_v46  ;;  %v8602_v30 = vpop.f32.mrb[22].mxu1 }
 0x66e   : > { %v5952_v3 = vmax.f32 %v5920_v8, 0.0  ;;  %v9245_v41 = vadd.f32 %v8602_v30, %v11365_v47  ;;  %v5818_v51 = vpop.f32.mrb[23].mxu1  ;;  %p9971_p1 = pnand %p9970_p12, %p9964_p3 }
 0x66f   : > { %v5951_v32 = vmax.f32 %v5919_v27, 0.0  ;;  %v9246_v22 = vadd.f32 %v11365_v47, %v5818_v51 }
 0x670   : > { %5984 = vst [vmem:[%s11374_s12 + $0xa8] sm:$0xff] %v5952_v3  ;;  %v5922_v54 = vadd.f32 %v9865_v38, %v9245_v41 }
 0x671   : > { %5983 = vst [vmem:[%s11374_s12 + $0xa0] sm:$0xff] %v5951_v32  ;;  %v5921_v7 = vadd.f32 %v9866_v21, %v9246_v22  ;;  %v8605_v45 = vpop.f32.mrb[24].mxu1 }
 0x672   : > { %v5954_v11 = vmax.f32 %v5922_v54, 0.0  ;;  %v9247_v17 = vadd.f32 %v8605_v45, %v11365_v47  ;;  %v5828_v15 = vpop.f32.mrb[25].mxu1 }
 0x673   : > { %v5953_v50 = vmax.f32 %v5921_v7, 0.0  ;;  %v9248_v53 = vadd.f32 %v11365_v47, %v5828_v15 }
 0x674   : > { %5986 = vst [vmem:[%s11374_s12 + $0xb8] sm:$0xff] %v5954_v11  ;;  %v5924_v49 = vadd.f32 %v9867_v16, %v9247_v17 }
 0x675   : > { %5985 = vst [vmem:[%s11374_s12 + $0xb0] sm:$0xff] %v5953_v50  ;;  %v5923_v43 = vadd.f32 %v9868_v34, %v9248_v53  ;;  %v8608_v13 = vpop.f32.mrb[26].mxu1 }
 0x676   : > { %v5956_v28 = vmax.f32 %v5924_v49, 0.0  ;;  %v9249_v14 = vadd.f32 %v8608_v13, %v11365_v47  ;;  %v5838_v37 = vpop.f32.mrb[27].mxu1 }
 0x677   : > { %v5955_v19 = vmax.f32 %v5923_v43, 0.0  ;;  %v9250_v39 = vadd.f32 %v11365_v47, %v5838_v37 }
 0x678   : > { %5988 = vst [vmem:[%s11374_s12 + $0xc8] sm:$0xff] %v5956_v28  ;;  %v5926_v12 = vadd.f32 %v9869_v24, %v9249_v14 }
 0x679   : > { %5987 = vst [vmem:[%s11374_s12 + $0xc0] sm:$0xff] %v5955_v19  ;;  %v5925_v42 = vadd.f32 %v9870_v6, %v9250_v39  ;;  %v8611_v18 = vpop.f32.mrb[28].mxu1 }
 0x67a   : > { %v5958_v59 = vmax.f32 %v5926_v12, 0.0  ;;  %v9251_v23 = vadd.f32 %v8611_v18, %v11365_v47  ;;  %v5848_v31 = vpop.f32.mrb[29].mxu1 }
 0x67b   : > { %v5957_v48 = vmax.f32 %v5925_v42, 0.0  ;;  %v9252_v63 = vadd.f32 %v11365_v47, %v5848_v31 }
 0x67c   : > { %5990 = vst [vmem:[%s11374_s12 + $0xd8] sm:$0xff] %v5958_v59  ;;  %v5928_v58 = vadd.f32 %v9871_v52, %v9251_v23 }
 0x67d   : > { %5989 = vst [vmem:[%s11374_s12 + $0xd0] sm:$0xff] %v5957_v48  ;;  %v5927_v33 = vadd.f32 %v9872_v9, %v9252_v63  ;;  %v8614_v55 = vpop.f32.mrb[30].mxu1 }
 0x67e   : > { %v5960_v57 = vmax.f32 %v5928_v58, 0.0  ;;  %v9253_v20 = vadd.f32 %v8614_v55, %v11365_v47  ;;  %v5858_v10 = vpop.f32.mrb[31].mxu1 }
 0x67f   : > { %v5959_v4 = vmax.f32 %v5927_v33, 0.0  ;;  %v9254_v5 = vadd.f32 %v11365_v47, %v5858_v10 }
 0x680   : > { %5992 = vst [vmem:[%s11374_s12 + $0xe8] sm:$0xff] %v5960_v57  ;;  %v5930_v56 = vadd.f32 %v9873_v62, %v9253_v20 }
 0x681   : > { %5991 = vst [vmem:[%s11374_s12 + $0xe0] sm:$0xff] %v5959_v4  ;;  %v5929_v2 = vadd.f32 %v9874_v60, %v9254_v5 }
 0x682   : > { %v5962_v26 = vmax.f32 %v5930_v56, 0.0 }
 0x683   : > { %v5961_v47 = vmax.f32 %v5929_v2, 0.0 }
 0x684   : > { %5994 = vst [vmem:[%s11374_s12 + $0xf8] sm:$0xff] %v5962_v26 }
 0x685   : > { %5993 = vst [vmem:[%s11374_s12 + $0xf0] sm:$0xff] %v5961_v47 }
 0x686   : > { %9974 = shalt.err (!%p9971_p1)
}
 0x687   : > { %s9975_s24 = scalar_lea.hbm %s11469_s15, 4096  ;;  %s9979_s8 = scalar_lea.hbm %s11522_s5, 8192 }
 0x688   : > { %p9976_p13 = scmp.ne.s32.totalorder %s11469_s15, %s9975_s24  ;;  %p9980_p4 = scmp.lt.u32.totalorder %s11469_s15, %s11522_s5 }
 0x689   : > { %p9981_p5 = scmp.lt.u32.totalorder %s9979_s8, %s9975_s24  ;;  %p9983_p11 = scmp.lt.u32.totalorder %s9975_s24, %s11469_s15 }
 0x68a   : > { %p9977_p6 = pnand %p9976_p13, %p11753_p0 }
 0x68b   : > { %p9982_p8 = por %p9981_p5, %p9980_p4 }
 0x68c   : > { %p9978_p10 = pneg %p9977_p6 }
 0x68d   : > { %p9984_p2 = por %p9983_p11, %p9982_p8 }
 0x68f   : > { %p9985_p3 = pnand %p9984_p2, %p9978_p10 }
 0x691   : > { %9988 = shalt.err (!%p9985_p3)
}
 0x692   : > { %s10040_s13 = smov 128   ;;  %s10041_s7 = smov 8  }
 0x693   : > { %9780 = dma.vmem_to_hbm [thread:$0]  (%p11753_p0), %s11471_s30, 4096, %s11469_s15, %s5996_s22, %s10040_s13, %s10040_s13, %s10041_s7  }
 0x694 PF: > { %s6024_s28 = sand.u32 1, %s10019_s18   ;;  %p11754_p7 = scmp.ne.s32.totalorder %s11604_s25, 0 }
 0x695   : > { %p11755_p9 = scmp.ge.s32.totalorder %s10031_s21, 2  ;;  %s6025_s14 = scalar_lea.sflag [#allocation5], %s6024_s28 }
 0x697   : > { %p9794_p12 = pnand %p11755_p9, %p11754_p7 }
 0x699   : > { %10014 = dma.done.wait (!%p9794_p12), %s6025_s14, 4096  }
 0x69a   : > { %10016 = vsyncadd (!%p9794_p12), %s6025_s14, 4294963200  ;;  %p19_p1 = scmp.ge.s32.totalorder %s10188_s29, 4   ;;  %s11756_s18 = smov %s10023_s19 }
 0x69b   : > { %s11757_s19 = smov %s10027_s20  ;;  %s11758_s20 = smov %s10204_s27 }
 0x69c   : > { %s11759_s21 = smov %s10188_s29  ;;  %21 = sbr.rel (!%p19_p1) target bundleno = 6 (0x6), region = 114 }
 0x6a3   :  { %6030 = vsyncpa [#allocation4], 1 }
 0x6a4   :  { %6032 = vsyncpa [#allocation4 + $0x1], 1 }
 0x6a5   :  { %6033 = vsyncpa [#allocation7], 1 }
 0x6a6   :  { %6034 = vsyncpa [#allocation5], 1 }
 0x6a7   :  { %6036 = vsyncpa [#allocation5 + $0x1], 1 }

</bundles_post_ra>
